<compile_context>
chip_gen: v6e
topology: v6e:2x2x1
jax: 0.10.0
libtpu: 0.0.40
codegen_flags: <defaults>
</compile_context>

<pallas_src>
import functools

import jax
import jax.numpy as jnp
from jax.experimental import pallas as pl
from jax.experimental.pallas import tpu as pltpu

NEG_INF = -1e30


def _sigmoid(x):
    # sigmoid(x) == 0.5*tanh(x/2) + 0.5 : keeps the transcendental on the EUP, no VPU divide.
    return 0.5 * jnp.tanh(0.5 * x) + 0.5


def _log_softmax(x):
    m = jnp.max(x, axis=-1, keepdims=True)
    z = x - m
    return z - jnp.log(jnp.sum(jnp.exp(z), axis=-1, keepdims=True))


def _lstm_cell(pre_gates, h, c, w_hh, H):
    """pre_gates already holds x@W_ih + b; only h@W_hh is on the recurrent chain."""
    g = pre_gates + jnp.dot(h, w_hh, preferred_element_type=jnp.float32)
    i = _sigmoid(g[:, 0:H])
    f = _sigmoid(g[:, H:2 * H])
    u = jnp.tanh(g[:, 2 * H:3 * H])
    o = _sigmoid(g[:, 3 * H:4 * H])
    c_new = f * c + i * u
    h_new = o * jnp.tanh(c_new)
    return h_new, c_new


# ----------------------------------------------------------------------------
# Fused kernel: embeddings -> encoder LSTM -> intent attention -> enc2dec -> slot decoder.
# Everything (tables, weights, enc outputs, states) stays VMEM / vreg resident.
# ----------------------------------------------------------------------------
def _fused_focus_kernel(T, B, H,
                        word_ids_ref, slot_ids_ref, lens_ref,
                        word_tbl_ref, slot_tbl_ref,
                        w_ih_enc_ref, w_hh_enc_ref, b_enc_ref,
                        w_q_ref, w_int_h_ref, w_int_c_ref, b_int_ref,
                        w_e2d_h_ref, b_e2d_h_ref, w_e2d_c_ref, b_e2d_c_ref,
                        w_ih_e_ref, w_ih_m_ref, w_hh_dec_ref, b_dec_ref,
                        w_out_ref, b_out_ref,
                        bios_ref, intents_ref):
    V_WORD = word_tbl_ref.shape[0]
    V_SLOT = slot_tbl_ref.shape[0]
    NP = b_out_ref.shape[-1]
    lens = lens_ref[...]                                         # (B, 1) int32

    # ---- embeddings: gathers folded into the kernel as one-hot matmuls (time-major rows t*B+b)
    oh_w = (jax.lax.broadcasted_iota(jnp.int32, (T * B, V_WORD), 1)
            == word_ids_ref[...]).astype(jnp.float32)            # (T*B, V_WORD)
    x_emb = jnp.dot(oh_w, word_tbl_ref[...], preferred_element_type=jnp.float32)   # (T*B, E)
    oh_s = (jax.lax.broadcasted_iota(jnp.int32, (T * B, V_SLOT), 1)
            == slot_ids_ref[...]).astype(jnp.float32)            # (T*B, V_SLOT)
    s_emb = jnp.dot(oh_s, slot_tbl_ref[...], preferred_element_type=jnp.float32)   # (T*B, ES)

    # ---- encoder: input projection + bias hoisted out of the recurrence ----
    xg = (jnp.dot(x_emb, w_ih_enc_ref[...], preferred_element_type=jnp.float32)
          + b_enc_ref[...])                                      # (T*B, 4H)
    w_hh_enc = w_hh_enc_ref[...]

    h = jnp.zeros((B, H), jnp.float32)
    c = jnp.zeros((B, H), jnp.float32)
    enc_list = []
    for t in range(T):                  # static unroll: T is a trace-time constant
        h_new, c_new = _lstm_cell(xg[t * B:(t + 1) * B, :], h, c, w_hh_enc, H)
        valid = lens > t                                         # (B, 1) bool
        h = jnp.where(valid, h_new, h)                           # freeze state past each length
        c = jnp.where(valid, c_new, c)
        enc_list.append(jnp.where(valid, h_new, jnp.zeros_like(h_new)))  # zero padded steps
    h_final, c_final = h, c

    # ---- intent decoder: length-masked scaled dot-product attention + linear + log_softmax ----
    # NOTE: a length of 0 degenerates to a uniform attention over (zeroed) padding, as before;
    # the demo always uses lens >= 1.
    q = jnp.dot(h_final, w_q_ref[...], preferred_element_type=jnp.float32)          # (B, H)
    scale = 1.0 / jnp.sqrt(jnp.float32(H))
    e_list = []
    for t in range(T):
        e_t = jnp.sum(enc_list[t] * q, axis=-1, keepdims=True) * scale              # (B, 1)
        e_list.append(jnp.where(lens > t, e_t, NEG_INF))
    e_max = e_list[0]
    for t in range(1, T):
        e_max = jnp.maximum(e_max, e_list[t])
    p_list = [jnp.exp(e_t - e_max) for e_t in e_list]
    denom = p_list[0]
    for t in range(1, T):
        denom = denom + p_list[t]
    ctx = jnp.zeros((B, H), jnp.float32)
    for t in range(T):
        ctx = ctx + p_list[t] * enc_list[t]
    ctx = ctx / denom                                                                # (B, H)

    logits_int = (jnp.dot(h_final, w_int_h_ref[...], preferred_element_type=jnp.float32)
                  + jnp.dot(ctx, w_int_c_ref[...], preferred_element_type=jnp.float32)
                  + b_int_ref[...])       # (B, NP); padded classes carry a -1e30 bias
    intents_ref[...] = _log_softmax(logits_int)                  # lane-dense (B, 128) store

    # ---- enc2dec: tanh(Linear) on (h, c) ----
    h_dec = jnp.tanh(jnp.dot(h_final, w_e2d_h_ref[...], preferred_element_type=jnp.float32)
                     + b_e2d_h_ref[...])
    c_dec = jnp.tanh(jnp.dot(c_final, w_e2d_c_ref[...], preferred_element_type=jnp.float32)
                     + b_e2d_c_ref[...])

    # ---- slot ("focus") decoder: both input projections hoisted out of the recurrence ----
    enc_flat = jnp.concatenate(enc_list, axis=0)                 # (T*B, H), rows t*B+b
    dg = (jnp.dot(s_emb, w_ih_e_ref[...], preferred_element_type=jnp.float32)
          + jnp.dot(enc_flat, w_ih_m_ref[...], preferred_element_type=jnp.float32)
          + b_dec_ref[...])                                      # (T*B, 4H)
    w_hh_dec = w_hh_dec_ref[...]
    w_out = w_out_ref[...]
    b_out_b = jnp.broadcast_to(b_out_ref[...], (B, NP))          # hoisted bias broadcast

    out_list = []
    for t in range(T):
        h_dec, c_dec = _lstm_cell(dg[t * B:(t + 1) * B, :], h_dec, c_dec, w_hh_dec, H)
        logits = jnp.dot(h_dec, w_out, preferred_element_type=jnp.float32) + b_out_b  # (B, NP)
        out_list.append(_log_softmax(logits))
    # TODO(synk): as in the PyTorch forward, the slot decoder runs over all padded positions
    # (teacher forcing); masking by `lens` is done by the downstream loss, not here.
    bios_ref[...] = jnp.concatenate(out_list, axis=0)            # one lane-dense (T*B, 128) store


# ----------------------------------------------------------------------------
# Forward wrapper: only id transposes / padded-class slicing stay outside the kernel.
# ----------------------------------------------------------------------------
def focus_model_forward(inputs, lens, dec_inputs, params):
    B, T = inputs.shape
    H = params["w_hh_enc"].shape[0]
    NP = params["b_out"].shape[-1]
    n_int = params["n_intent"]
    n_slot = params["n_slot"]

    word_ids = jnp.transpose(inputs).reshape(T * B, 1).astype(jnp.int32)            # time-major
    slot_ids = jnp.transpose(dec_inputs[:, :-1]).reshape(T * B, 1).astype(jnp.int32)
    lens_col = lens.reshape(B, 1).astype(jnp.int32)

    operands = (
        word_ids, slot_ids, lens_col,
        params["word_embed"], params["slot_embed"],
        params["w_ih_enc"], params["w_hh_enc"], params["b_enc"],
        params["w_q"], params["w_int_h"], params["w_int_c"], params["b_int"],
        params["w_e2d_h"], params["b_e2d_h"], params["w_e2d_c"], params["b_e2d_c"],
        params["w_ih_e"], params["w_ih_m"], params["w_hh_dec"], params["b_dec"],
        params["w_out"], params["b_out"],
    )

    kernel = functools.partial(_fused_focus_kernel, T, B, H)
    bios_flat, intents_pad = pl.pallas_call(
        kernel,
        out_shape=(jax.ShapeDtypeStruct((T * B, NP), jnp.float32),
                   jax.ShapeDtypeStruct((B, NP), jnp.float32)),
        grid=(1,),
        in_specs=[pl.BlockSpec(x.shape, lambda i: (0, 0)) for x in operands],
        out_specs=(pl.BlockSpec((T * B, NP), lambda i: (0, 0)),
                   pl.BlockSpec((B, NP), lambda i: (0, 0))),
        compiler_params=pltpu.CompilerParams(dimension_semantics=("arbitrary",)),
    )(*operands)

    bios = bios_flat.reshape(T, B, NP)[:, :, :n_slot].transpose(1, 0, 2)             # (B, T, N_SLOT)
    intents = intents_pad[:, :n_int]                                                 # (B, N_INT)
    return bios, intents


# ----------------------------------------------------------------------------
# Pure-JAX reference (same concrete sub-module instantiation) for a correctness check.
# ----------------------------------------------------------------------------
def focus_model_reference(inputs, lens, dec_inputs, params):
    B, T = inputs.shape
    H = params["w_hh_enc"].shape[0]
    n_int = params["n_intent"]
    n_slot = params["n_slot"]
    hp = jax.lax.Precision.HIGHEST

    def sigmoid(x):
        return 1.0 / (1.0 + jnp.exp(-x))

    def log_softmax(x):
        m = jnp.max(x, -1, keepdims=True)
        z = x - m
        return z - jnp.log(jnp.sum(jnp.exp(z), -1, keepdims=True))

    def lstm_step(x_parts, h, c, ws, whh, b):
        g = sum(jnp.dot(x, w, precision=hp) for x, w in zip(x_parts, ws))
        g = g + jnp.dot(h, whh, precision=hp) + b
        i, f, u, o = (sigmoid(g[:, :H]), sigmoid(g[:, H:2 * H]),
                      jnp.tanh(g[:, 2 * H:3 * H]), sigmoid(g[:, 3 * H:]))
        c2 = f * c + i * u
        return o * jnp.tanh(c2), c2

    x = params["word_embed"][inputs]                             # (B, T, E)
    h = jnp.zeros((B, H), jnp.float32)
    c = jnp.zeros((B, H), jnp.float32)
    enc = []
    for t in range(T):
        hn, cn = lstm_step((x[:, t, :],), h, c, (params["w_ih_enc"],),
                           params["w_hh_enc"], params["b_enc"])
        valid = lens.reshape(B, 1) > t
        h = jnp.where(valid, hn, h)
        c = jnp.where(valid, cn, c)
        enc.append(jnp.where(valid, hn, 0.0))
    enc = jnp.stack(enc, axis=1)                                 # (B, T, H)

    q = jnp.dot(h, params["w_q"], precision=hp)
    e = jnp.einsum("bth,bh->bt", enc, q, precision=hp) / jnp.sqrt(jnp.float32(H))
    mask = jnp.arange(T)[None, :] < lens.reshape(B, 1)
    e = jnp.where(mask, e, NEG_INF)
    a = jax.nn.softmax(e, axis=-1)
    ctx = jnp.einsum("bt,bth->bh", a, enc, precision=hp)
    logits_i = (jnp.dot(h, params["w_int_h"][:, :n_int], precision=hp)
                + jnp.dot(ctx, params["w_int_c"][:, :n_int], precision=hp)
                + params["b_int"][:, :n_int])
    intents = log_softmax(logits_i)

    hd = jnp.tanh(jnp.dot(h, params["w_e2d_h"], precision=hp) + params["b_e2d_h"])
    cd = jnp.tanh(jnp.dot(c, params["w_e2d_c"], precision=hp) + params["b_e2d_c"])
    demb = params["slot_embed"][dec_inputs[:, :-1]]              # (B, T, ES)
    bios = []
    for t in range(T):
        hd, cd = lstm_step((demb[:, t, :], enc[:, t, :]), hd, cd,
                           (params["w_ih_e"], params["w_ih_m"]),
                           params["w_hh_dec"], params["b_dec"])
        logit = (jnp.dot(hd, params["w_out"][:, :n_slot], precision=hp)
                 + params["b_out"][:, :n_slot])
        bios.append(log_softmax(logit))
    return jnp.stack(bios, axis=1), intents


# ----------------------------------------------------------------------------
# Parameter init (class dims padded to 128 lanes; padded classes masked via -1e30 bias).
# ----------------------------------------------------------------------------
def init_params(key, V_WORD, V_SLOT, E, ES, H, N_INT, N_SLOT, NP=128):
    ks = jax.random.split(key, 16)
    s = 0.1

    def pad_cols(w):
        return jnp.zeros((w.shape[0], NP), jnp.float32).at[:, :w.shape[1]].set(w)

    def masked_bias(n_real):
        return jnp.full((1, NP), NEG_INF, jnp.float32).at[:, :n_real].set(0.0)

    return {
        "n_intent": N_INT, "n_slot": N_SLOT,
        "word_embed": s * jax.random.normal(ks[0], (V_WORD, E), jnp.float32),
        "slot_embed": s * jax.random.normal(ks[1], (V_SLOT, ES), jnp.float32),
        # encoder LSTM
        "w_ih_enc": s * jax.random.normal(ks[2], (E, 4 * H), jnp.float32),
        "w_hh_enc": s * jax.random.normal(ks[3], (H, 4 * H), jnp.float32),
        "b_enc": jnp.zeros((1, 4 * H), jnp.float32),
        # intent decoder (attention + linear), class dim padded to NP lanes
        "w_q": s * jax.random.normal(ks[4], (H, H), jnp.float32),
        "w_int_h": pad_cols(s * jax.random.normal(ks[5], (H, N_INT), jnp.float32)),
        "w_int_c": pad_cols(s * jax.random.normal(ks[6], (H, N_INT), jnp.float32)),
        "b_int": masked_bias(N_INT),
        # enc2dec
        "w_e2d_h": s * jax.random.normal(ks[7], (H, H), jnp.float32),
        "b_e2d_h": jnp.zeros((1, H), jnp.float32),
        "w_e2d_c": s * jax.random.normal(ks[8], (H, H), jnp.float32),
        "b_e2d_c": jnp.zeros((1, H), jnp.float32),
        # slot decoder LSTMCell on [slot_emb ; focus enc_out] (weights split to avoid concat)
        "w_ih_e": s * jax.random.normal(ks[9], (ES, 4 * H), jnp.float32),
        "w_ih_m": s * jax.random.normal(ks[10], (H, 4 * H), jnp.float32),
        "w_hh_dec": s * jax.random.normal(ks[11], (H, 4 * H), jnp.float32),
        "b_dec": jnp.zeros((1, 4 * H), jnp.float32),
        # slot output head, class dim padded to NP lanes
        "w_out": pad_cols(s * jax.random.normal(ks[12], (H, N_SLOT), jnp.float32)),
        "b_out": masked_bias(N_SLOT),
    }


if __name__ == "__main__":
    B, T = 2, 8
    V_WORD, V_SLOT = 50, 12
    E, ES, H = 32, 16, 32
    N_INT, N_SLOT = 6, 12

    key = jax.random.PRNGKey(0)
    k_in, k_dec, k_par = jax.random.split(key, 3)

    inputs = jax.random.randint(k_in, (B, T), 1, V_WORD, dtype=jnp.int32)
    lens = jnp.array([T, 5], dtype=jnp.int32)
    dec_inputs = jax.random.randint(k_dec, (B, T + 1), 1, V_SLOT, dtype=jnp.int32)

    params = init_params(k_par, V_WORD, V_SLOT, E, ES, H, N_INT, N_SLOT)

    bios, intents = focus_model_forward(inputs, lens, dec_inputs, params)
    jax.block_until_ready((bios, intents))

    assert bios.shape == (B, T, N_SLOT), bios.shape
    assert intents.shape == (B, N_INT), intents.shape
    assert bool(jnp.all(jnp.isfinite(bios))) and bool(jnp.all(jnp.isfinite(intents)))
    # log-softmax rows normalize
    assert bool(jnp.all(jnp.abs(jnp.sum(jnp.exp(intents), axis=-1) - 1.0) < 1e-3))
    assert bool(jnp.all(jnp.abs(jnp.sum(jnp.exp(bios), axis=-1) - 1.0) < 1e-3))

    # pure-JAX reference check
    bios_want, intents_want = focus_model_reference(inputs, lens, dec_inputs, params)
    assert bool(jnp.allclose(bios, bios_want, atol=2e-2, rtol=2e-2)), \
        float(jnp.max(jnp.abs(bios - bios_want)))
    assert bool(jnp.allclose(intents, intents_want, atol=2e-2, rtol=2e-2)), \
        float(jnp.max(jnp.abs(intents - intents_want)))

    # TODO(synk): decode_greed / decode_beam_search are host-side search loops (not forward);
    # they are intentionally not implemented as kernels.
    print("KERNEL_OK")
</pallas_src>

<mosaic_0001>
module attributes {stable_mosaic.version = 11 : i64} {
  func.func @_fused_focus_kernel(%arg0: i32, %arg1: memref<16x1xi32, #tpu.memory_space<vmem>>, %arg2: memref<16x1xi32, #tpu.memory_space<vmem>>, %arg3: memref<2x1xi32, #tpu.memory_space<vmem>>, %arg4: memref<50x32xf32, #tpu.memory_space<vmem>>, %arg5: memref<12x16xf32, #tpu.memory_space<vmem>>, %arg6: memref<32x128xf32, #tpu.memory_space<vmem>>, %arg7: memref<32x128xf32, #tpu.memory_space<vmem>>, %arg8: memref<1x128xf32, #tpu.memory_space<vmem>>, %arg9: memref<32x32xf32, #tpu.memory_space<vmem>>, %arg10: memref<32x128xf32, #tpu.memory_space<vmem>>, %arg11: memref<32x128xf32, #tpu.memory_space<vmem>>, %arg12: memref<1x128xf32, #tpu.memory_space<vmem>>, %arg13: memref<32x32xf32, #tpu.memory_space<vmem>>, %arg14: memref<1x32xf32, #tpu.memory_space<vmem>>, %arg15: memref<32x32xf32, #tpu.memory_space<vmem>>, %arg16: memref<1x32xf32, #tpu.memory_space<vmem>>, %arg17: memref<16x128xf32, #tpu.memory_space<vmem>>, %arg18: memref<32x128xf32, #tpu.memory_space<vmem>>, %arg19: memref<32x128xf32, #tpu.memory_space<vmem>>, %arg20: memref<1x128xf32, #tpu.memory_space<vmem>>, %arg21: memref<32x128xf32, #tpu.memory_space<vmem>>, %arg22: memref<1x128xf32, #tpu.memory_space<vmem>>, %arg23: memref<16x128xf32, #tpu.memory_space<vmem>>, %arg24: memref<2x128xf32, #tpu.memory_space<vmem>>) attributes {dimension_semantics = [#tpu.dimension_semantics<arbitrary>], iteration_bounds = array<i64: 1>, scalar_prefetch = 0 : i64, scratch_operands = 0 : i64, tpu.core_type = #tpu.core_type<tc>, window_params = [{pipeline_mode = #tpu.pipeline_mode<synchronous>, transform_indices = @transform_0, window_bounds = array<i64: 16, 1>}, {pipeline_mode = #tpu.pipeline_mode<synchronous>, transform_indices = @transform_1, window_bounds = array<i64: 16, 1>}, {pipeline_mode = #tpu.pipeline_mode<synchronous>, transform_indices = @transform_2, window_bounds = array<i64: 2, 1>}, {pipeline_mode = #tpu.pipeline_mode<synchronous>, transform_indices = @transform_3, window_bounds = array<i64: 50, 32>}, {pipeline_mode = #tpu.pipeline_mode<synchronous>, transform_indices = @transform_4, window_bounds = array<i64: 12, 16>}, {pipeline_mode = #tpu.pipeline_mode<synchronous>, transform_indices = @transform_5, window_bounds = array<i64: 32, 128>}, {pipeline_mode = #tpu.pipeline_mode<synchronous>, transform_indices = @transform_6, window_bounds = array<i64: 32, 128>}, {pipeline_mode = #tpu.pipeline_mode<synchronous>, transform_indices = @transform_7, window_bounds = array<i64: 1, 128>}, {pipeline_mode = #tpu.pipeline_mode<synchronous>, transform_indices = @transform_8, window_bounds = array<i64: 32, 32>}, {pipeline_mode = #tpu.pipeline_mode<synchronous>, transform_indices = @transform_9, window_bounds = array<i64: 32, 128>}, {pipeline_mode = #tpu.pipeline_mode<synchronous>, transform_indices = @transform_10, window_bounds = array<i64: 32, 128>}, {pipeline_mode = #tpu.pipeline_mode<synchronous>, transform_indices = @transform_11, window_bounds = array<i64: 1, 128>}, {pipeline_mode = #tpu.pipeline_mode<synchronous>, transform_indices = @transform_12, window_bounds = array<i64: 32, 32>}, {pipeline_mode = #tpu.pipeline_mode<synchronous>, transform_indices = @transform_13, window_bounds = array<i64: 1, 32>}, {pipeline_mode = #tpu.pipeline_mode<synchronous>, transform_indices = @transform_14, window_bounds = array<i64: 32, 32>}, {pipeline_mode = #tpu.pipeline_mode<synchronous>, transform_indices = @transform_15, window_bounds = array<i64: 1, 32>}, {pipeline_mode = #tpu.pipeline_mode<synchronous>, transform_indices = @transform_16, window_bounds = array<i64: 16, 128>}, {pipeline_mode = #tpu.pipeline_mode<synchronous>, transform_indices = @transform_17, window_bounds = array<i64: 32, 128>}, {pipeline_mode = #tpu.pipeline_mode<synchronous>, transform_indices = @transform_18, window_bounds = array<i64: 32, 128>}, {pipeline_mode = #tpu.pipeline_mode<synchronous>, transform_indices = @transform_19, window_bounds = array<i64: 1, 128>}, {pipeline_mode = #tpu.pipeline_mode<synchronous>, transform_indices = @transform_20, window_bounds = array<i64: 32, 128>}, {pipeline_mode = #tpu.pipeline_mode<synchronous>, transform_indices = @transform_21, window_bounds = array<i64: 1, 128>}, {pipeline_mode = #tpu.pipeline_mode<synchronous>, transform_indices = @transform_22, window_bounds = array<i64: 16, 128>}, {pipeline_mode = #tpu.pipeline_mode<synchronous>, transform_indices = @transform_23, window_bounds = array<i64: 2, 128>}]} {
    %c0 = arith.constant 0 : index
    %c0_0 = arith.constant 0 : index
    %0 = vector.load %arg3[%c0, %c0_0] : memref<2x1xi32, #tpu.memory_space<vmem>>, vector<2x1xi32>
    %1 = tpu.iota {dimensions = array<i32: 1>} : vector<16x50xi32>
    %c0_1 = arith.constant 0 : index
    %c0_2 = arith.constant 0 : index
    %2 = vector.load %arg1[%c0_1, %c0_2] : memref<16x1xi32, #tpu.memory_space<vmem>>, vector<16x1xi32>
    %3 = vector.broadcast %2 : vector<16x1xi32> to vector<16x50xi32>
    %4 = arith.cmpi eq, %1, %3 : vector<16x50xi32>
    %5 = arith.extui %4 : vector<16x50xi1> to vector<16x50xi32>
    %6 = arith.sitofp %5 : vector<16x50xi32> to vector<16x50xf32>
    %c0_3 = arith.constant 0 : index
    %c0_4 = arith.constant 0 : index
    %7 = vector.load %arg4[%c0_3, %c0_4] : memref<50x32xf32, #tpu.memory_space<vmem>>, vector<50x32xf32>
    %cst = arith.constant dense<0.000000e+00> : vector<16x32xf32>
    %8 = tpu.matmul %6, %7, %cst {dimension_numbers = #tpu.dot_dimension_numbers<[1], [0], [0], [1], [0, 0, 1, 1], [], []>} : vector<16x50xf32>, vector<50x32xf32>, vector<16x32xf32> -> vector<16x32xf32>
    %9 = tpu.iota {dimensions = array<i32: 1>} : vector<16x12xi32>
    %c0_5 = arith.constant 0 : index
    %c0_6 = arith.constant 0 : index
    %10 = vector.load %arg2[%c0_5, %c0_6] : memref<16x1xi32, #tpu.memory_space<vmem>>, vector<16x1xi32>
    %11 = vector.broadcast %10 : vector<16x1xi32> to vector<16x12xi32>
    %12 = arith.cmpi eq, %9, %11 : vector<16x12xi32>
    %13 = arith.extui %12 : vector<16x12xi1> to vector<16x12xi32>
    %14 = arith.sitofp %13 : vector<16x12xi32> to vector<16x12xf32>
    %c0_7 = arith.constant 0 : index
    %c0_8 = arith.constant 0 : index
    %15 = vector.load %arg5[%c0_7, %c0_8] : memref<12x16xf32, #tpu.memory_space<vmem>>, vector<12x16xf32>
    %cst_9 = arith.constant dense<0.000000e+00> : vector<16x16xf32>
    %16 = tpu.matmul %14, %15, %cst_9 {dimension_numbers = #tpu.dot_dimension_numbers<[1], [0], [0], [1], [0, 0, 1, 1], [], []>} : vector<16x12xf32>, vector<12x16xf32>, vector<16x16xf32> -> vector<16x16xf32>
    %c0_10 = arith.constant 0 : index
    %c0_11 = arith.constant 0 : index
    %17 = vector.load %arg6[%c0_10, %c0_11] : memref<32x128xf32, #tpu.memory_space<vmem>>, vector<32x128xf32>
    %cst_12 = arith.constant dense<0.000000e+00> : vector<16x128xf32>
    %18 = tpu.matmul %8, %17, %cst_12 {dimension_numbers = #tpu.dot_dimension_numbers<[1], [0], [0], [1], [0, 0, 1, 1], [], []>} : vector<16x32xf32>, vector<32x128xf32>, vector<16x128xf32> -> vector<16x128xf32>
    %c0_13 = arith.constant 0 : index
    %c0_14 = arith.constant 0 : index
    %19 = vector.load %arg8[%c0_13, %c0_14] : memref<1x128xf32, #tpu.memory_space<vmem>>, vector<1x128xf32>
    %20 = vector.broadcast %19 : vector<1x128xf32> to vector<16x128xf32>
    %21 = arith.addf %18, %20 : vector<16x128xf32>
    %c0_15 = arith.constant 0 : index
    %c0_16 = arith.constant 0 : index
    %22 = vector.load %arg7[%c0_15, %c0_16] : memref<32x128xf32, #tpu.memory_space<vmem>>, vector<32x128xf32>
    %cst_17 = arith.constant 0.000000e+00 : f32
    %23 = vector.broadcast %cst_17 : f32 to vector<2x32xf32>
    %cst_18 = arith.constant 0.000000e+00 : f32
    %24 = vector.broadcast %cst_18 : f32 to vector<2x32xf32>
    %25 = vector.extract_strided_slice %21 {offsets = [0, 0], sizes = [2, 128], strides = [1, 1]} : vector<16x128xf32> to vector<2x128xf32>
    %cst_19 = arith.constant dense<0.000000e+00> : vector<2x128xf32>
    %26 = tpu.matmul %23, %22, %cst_19 {dimension_numbers = #tpu.dot_dimension_numbers<[1], [0], [0], [1], [0, 0, 1, 1], [], []>} : vector<2x32xf32>, vector<32x128xf32>, vector<2x128xf32> -> vector<2x128xf32>
    %27 = arith.addf %25, %26 : vector<2x128xf32>
    %28 = vector.extract_strided_slice %27 {offsets = [0, 0], sizes = [2, 32], strides = [1, 1]} : vector<2x128xf32> to vector<2x32xf32>
    %cst_20 = arith.constant 5.000000e-01 : f32
    %29 = vector.broadcast %cst_20 : f32 to vector<2x32xf32>
    %30 = arith.mulf %29, %28 : vector<2x32xf32>
    %31 = math.tanh %30 : vector<2x32xf32>
    %cst_21 = arith.constant 5.000000e-01 : f32
    %32 = vector.broadcast %cst_21 : f32 to vector<2x32xf32>
    %33 = arith.mulf %32, %31 : vector<2x32xf32>
    %cst_22 = arith.constant 5.000000e-01 : f32
    %34 = vector.broadcast %cst_22 : f32 to vector<2x32xf32>
    %35 = arith.addf %33, %34 : vector<2x32xf32>
    %36 = vector.extract_strided_slice %27 {offsets = [0, 32], sizes = [2, 32], strides = [1, 1]} : vector<2x128xf32> to vector<2x32xf32>
    %cst_23 = arith.constant 5.000000e-01 : f32
    %37 = vector.broadcast %cst_23 : f32 to vector<2x32xf32>
    %38 = arith.mulf %37, %36 : vector<2x32xf32>
    %39 = math.tanh %38 : vector<2x32xf32>
    %cst_24 = arith.constant 5.000000e-01 : f32
    %40 = vector.broadcast %cst_24 : f32 to vector<2x32xf32>
    %41 = arith.mulf %40, %39 : vector<2x32xf32>
    %cst_25 = arith.constant 5.000000e-01 : f32
    %42 = vector.broadcast %cst_25 : f32 to vector<2x32xf32>
    %43 = arith.addf %41, %42 : vector<2x32xf32>
    %44 = vector.extract_strided_slice %27 {offsets = [0, 64], sizes = [2, 32], strides = [1, 1]} : vector<2x128xf32> to vector<2x32xf32>
    %45 = math.tanh %44 : vector<2x32xf32>
    %46 = vector.extract_strided_slice %27 {offsets = [0, 96], sizes = [2, 32], strides = [1, 1]} : vector<2x128xf32> to vector<2x32xf32>
    %cst_26 = arith.constant 5.000000e-01 : f32
    %47 = vector.broadcast %cst_26 : f32 to vector<2x32xf32>
    %48 = arith.mulf %47, %46 : vector<2x32xf32>
    %49 = math.tanh %48 : vector<2x32xf32>
    %cst_27 = arith.constant 5.000000e-01 : f32
    %50 = vector.broadcast %cst_27 : f32 to vector<2x32xf32>
    %51 = arith.mulf %50, %49 : vector<2x32xf32>
    %cst_28 = arith.constant 5.000000e-01 : f32
    %52 = vector.broadcast %cst_28 : f32 to vector<2x32xf32>
    %53 = arith.addf %51, %52 : vector<2x32xf32>
    %54 = arith.mulf %43, %24 : vector<2x32xf32>
    %55 = arith.mulf %35, %45 : vector<2x32xf32>
    %56 = arith.addf %54, %55 : vector<2x32xf32>
    %57 = math.tanh %56 : vector<2x32xf32>
    %58 = arith.mulf %53, %57 : vector<2x32xf32>
    %c0_i32 = arith.constant 0 : i32
    %59 = vector.broadcast %c0_i32 : i32 to vector<2x1xi32>
    %60 = arith.cmpi sgt, %0, %59 : vector<2x1xi32>
    %61 = vector.shape_cast %60 : vector<2x1xi1> to vector<2x1xi1>
    %62 = vector.broadcast %61 : vector<2x1xi1> to vector<2x32xi1>
    %63 = arith.select %62, %58, %23 : vector<2x32xi1>, vector<2x32xf32>
    %64 = vector.shape_cast %60 : vector<2x1xi1> to vector<2x1xi1>
    %65 = vector.broadcast %64 : vector<2x1xi1> to vector<2x32xi1>
    %66 = arith.select %65, %56, %24 : vector<2x32xi1>, vector<2x32xf32>
    %cst_29 = arith.constant 0.000000e+00 : f32
    %67 = vector.broadcast %cst_29 : f32 to vector<2x32xf32>
    %68 = vector.shape_cast %60 : vector<2x1xi1> to vector<2x1xi1>
    %69 = vector.broadcast %68 : vector<2x1xi1> to vector<2x32xi1>
    %70 = arith.select %69, %58, %67 : vector<2x32xi1>, vector<2x32xf32>
    %71 = vector.extract_strided_slice %21 {offsets = [2, 0], sizes = [2, 128], strides = [1, 1]} : vector<16x128xf32> to vector<2x128xf32>
    %cst_30 = arith.constant dense<0.000000e+00> : vector<2x128xf32>
    %72 = tpu.matmul %63, %22, %cst_30 {dimension_numbers = #tpu.dot_dimension_numbers<[1], [0], [0], [1], [0, 0, 1, 1], [], []>} : vector<2x32xf32>, vector<32x128xf32>, vector<2x128xf32> -> vector<2x128xf32>
    %73 = arith.addf %71, %72 : vector<2x128xf32>
    %74 = vector.extract_strided_slice %73 {offsets = [0, 0], sizes = [2, 32], strides = [1, 1]} : vector<2x128xf32> to vector<2x32xf32>
    %cst_31 = arith.constant 5.000000e-01 : f32
    %75 = vector.broadcast %cst_31 : f32 to vector<2x32xf32>
    %76 = arith.mulf %75, %74 : vector<2x32xf32>
    %77 = math.tanh %76 : vector<2x32xf32>
    %cst_32 = arith.constant 5.000000e-01 : f32
    %78 = vector.broadcast %cst_32 : f32 to vector<2x32xf32>
    %79 = arith.mulf %78, %77 : vector<2x32xf32>
    %cst_33 = arith.constant 5.000000e-01 : f32
    %80 = vector.broadcast %cst_33 : f32 to vector<2x32xf32>
    %81 = arith.addf %79, %80 : vector<2x32xf32>
    %82 = vector.extract_strided_slice %73 {offsets = [0, 32], sizes = [2, 32], strides = [1, 1]} : vector<2x128xf32> to vector<2x32xf32>
    %cst_34 = arith.constant 5.000000e-01 : f32
    %83 = vector.broadcast %cst_34 : f32 to vector<2x32xf32>
    %84 = arith.mulf %83, %82 : vector<2x32xf32>
    %85 = math.tanh %84 : vector<2x32xf32>
    %cst_35 = arith.constant 5.000000e-01 : f32
    %86 = vector.broadcast %cst_35 : f32 to vector<2x32xf32>
    %87 = arith.mulf %86, %85 : vector<2x32xf32>
    %cst_36 = arith.constant 5.000000e-01 : f32
    %88 = vector.broadcast %cst_36 : f32 to vector<2x32xf32>
    %89 = arith.addf %87, %88 : vector<2x32xf32>
    %90 = vector.extract_strided_slice %73 {offsets = [0, 64], sizes = [2, 32], strides = [1, 1]} : vector<2x128xf32> to vector<2x32xf32>
    %91 = math.tanh %90 : vector<2x32xf32>
    %92 = vector.extract_strided_slice %73 {offsets = [0, 96], sizes = [2, 32], strides = [1, 1]} : vector<2x128xf32> to vector<2x32xf32>
    %cst_37 = arith.constant 5.000000e-01 : f32
    %93 = vector.broadcast %cst_37 : f32 to vector<2x32xf32>
    %94 = arith.mulf %93, %92 : vector<2x32xf32>
    %95 = math.tanh %94 : vector<2x32xf32>
    %cst_38 = arith.constant 5.000000e-01 : f32
    %96 = vector.broadcast %cst_38 : f32 to vector<2x32xf32>
    %97 = arith.mulf %96, %95 : vector<2x32xf32>
    %cst_39 = arith.constant 5.000000e-01 : f32
    %98 = vector.broadcast %cst_39 : f32 to vector<2x32xf32>
    %99 = arith.addf %97, %98 : vector<2x32xf32>
    %100 = arith.mulf %89, %66 : vector<2x32xf32>
    %101 = arith.mulf %81, %91 : vector<2x32xf32>
    %102 = arith.addf %100, %101 : vector<2x32xf32>
    %103 = math.tanh %102 : vector<2x32xf32>
    %104 = arith.mulf %99, %103 : vector<2x32xf32>
    %c1_i32 = arith.constant 1 : i32
    %105 = vector.broadcast %c1_i32 : i32 to vector<2x1xi32>
    %106 = arith.cmpi sgt, %0, %105 : vector<2x1xi32>
    %107 = vector.shape_cast %106 : vector<2x1xi1> to vector<2x1xi1>
    %108 = vector.broadcast %107 : vector<2x1xi1> to vector<2x32xi1>
    %109 = arith.select %108, %104, %63 : vector<2x32xi1>, vector<2x32xf32>
    %110 = vector.shape_cast %106 : vector<2x1xi1> to vector<2x1xi1>
    %111 = vector.broadcast %110 : vector<2x1xi1> to vector<2x32xi1>
    %112 = arith.select %111, %102, %66 : vector<2x32xi1>, vector<2x32xf32>
    %cst_40 = arith.constant 0.000000e+00 : f32
    %113 = vector.broadcast %cst_40 : f32 to vector<2x32xf32>
    %114 = vector.shape_cast %106 : vector<2x1xi1> to vector<2x1xi1>
    %115 = vector.broadcast %114 : vector<2x1xi1> to vector<2x32xi1>
    %116 = arith.select %115, %104, %113 : vector<2x32xi1>, vector<2x32xf32>
    %117 = vector.extract_strided_slice %21 {offsets = [4, 0], sizes = [2, 128], strides = [1, 1]} : vector<16x128xf32> to vector<2x128xf32>
    %cst_41 = arith.constant dense<0.000000e+00> : vector<2x128xf32>
    %118 = tpu.matmul %109, %22, %cst_41 {dimension_numbers = #tpu.dot_dimension_numbers<[1], [0], [0], [1], [0, 0, 1, 1], [], []>} : vector<2x32xf32>, vector<32x128xf32>, vector<2x128xf32> -> vector<2x128xf32>
    %119 = arith.addf %117, %118 : vector<2x128xf32>
    %120 = vector.extract_strided_slice %119 {offsets = [0, 0], sizes = [2, 32], strides = [1, 1]} : vector<2x128xf32> to vector<2x32xf32>
    %cst_42 = arith.constant 5.000000e-01 : f32
    %121 = vector.broadcast %cst_42 : f32 to vector<2x32xf32>
    %122 = arith.mulf %121, %120 : vector<2x32xf32>
    %123 = math.tanh %122 : vector<2x32xf32>
    %cst_43 = arith.constant 5.000000e-01 : f32
    %124 = vector.broadcast %cst_43 : f32 to vector<2x32xf32>
    %125 = arith.mulf %124, %123 : vector<2x32xf32>
    %cst_44 = arith.constant 5.000000e-01 : f32
    %126 = vector.broadcast %cst_44 : f32 to vector<2x32xf32>
    %127 = arith.addf %125, %126 : vector<2x32xf32>
    %128 = vector.extract_strided_slice %119 {offsets = [0, 32], sizes = [2, 32], strides = [1, 1]} : vector<2x128xf32> to vector<2x32xf32>
    %cst_45 = arith.constant 5.000000e-01 : f32
    %129 = vector.broadcast %cst_45 : f32 to vector<2x32xf32>
    %130 = arith.mulf %129, %128 : vector<2x32xf32>
    %131 = math.tanh %130 : vector<2x32xf32>
    %cst_46 = arith.constant 5.000000e-01 : f32
    %132 = vector.broadcast %cst_46 : f32 to vector<2x32xf32>
    %133 = arith.mulf %132, %131 : vector<2x32xf32>
    %cst_47 = arith.constant 5.000000e-01 : f32
    %134 = vector.broadcast %cst_47 : f32 to vector<2x32xf32>
    %135 = arith.addf %133, %134 : vector<2x32xf32>
    %136 = vector.extract_strided_slice %119 {offsets = [0, 64], sizes = [2, 32], strides = [1, 1]} : vector<2x128xf32> to vector<2x32xf32>
    %137 = math.tanh %136 : vector<2x32xf32>
    %138 = vector.extract_strided_slice %119 {offsets = [0, 96], sizes = [2, 32], strides = [1, 1]} : vector<2x128xf32> to vector<2x32xf32>
    %cst_48 = arith.constant 5.000000e-01 : f32
    %139 = vector.broadcast %cst_48 : f32 to vector<2x32xf32>
    %140 = arith.mulf %139, %138 : vector<2x32xf32>
    %141 = math.tanh %140 : vector<2x32xf32>
    %cst_49 = arith.constant 5.000000e-01 : f32
    %142 = vector.broadcast %cst_49 : f32 to vector<2x32xf32>
    %143 = arith.mulf %142, %141 : vector<2x32xf32>
    %cst_50 = arith.constant 5.000000e-01 : f32
    %144 = vector.broadcast %cst_50 : f32 to vector<2x32xf32>
    %145 = arith.addf %143, %144 : vector<2x32xf32>
    %146 = arith.mulf %135, %112 : vector<2x32xf32>
    %147 = arith.mulf %127, %137 : vector<2x32xf32>
    %148 = arith.addf %146, %147 : vector<2x32xf32>
    %149 = math.tanh %148 : vector<2x32xf32>
    %150 = arith.mulf %145, %149 : vector<2x32xf32>
    %c2_i32 = arith.constant 2 : i32
    %151 = vector.broadcast %c2_i32 : i32 to vector<2x1xi32>
    %152 = arith.cmpi sgt, %0, %151 : vector<2x1xi32>
    %153 = vector.shape_cast %152 : vector<2x1xi1> to vector<2x1xi1>
    %154 = vector.broadcast %153 : vector<2x1xi1> to vector<2x32xi1>
    %155 = arith.select %154, %150, %109 : vector<2x32xi1>, vector<2x32xf32>
    %156 = vector.shape_cast %152 : vector<2x1xi1> to vector<2x1xi1>
    %157 = vector.broadcast %156 : vector<2x1xi1> to vector<2x32xi1>
    %158 = arith.select %157, %148, %112 : vector<2x32xi1>, vector<2x32xf32>
    %cst_51 = arith.constant 0.000000e+00 : f32
    %159 = vector.broadcast %cst_51 : f32 to vector<2x32xf32>
    %160 = vector.shape_cast %152 : vector<2x1xi1> to vector<2x1xi1>
    %161 = vector.broadcast %160 : vector<2x1xi1> to vector<2x32xi1>
    %162 = arith.select %161, %150, %159 : vector<2x32xi1>, vector<2x32xf32>
    %163 = vector.extract_strided_slice %21 {offsets = [6, 0], sizes = [2, 128], strides = [1, 1]} : vector<16x128xf32> to vector<2x128xf32>
    %cst_52 = arith.constant dense<0.000000e+00> : vector<2x128xf32>
    %164 = tpu.matmul %155, %22, %cst_52 {dimension_numbers = #tpu.dot_dimension_numbers<[1], [0], [0], [1], [0, 0, 1, 1], [], []>} : vector<2x32xf32>, vector<32x128xf32>, vector<2x128xf32> -> vector<2x128xf32>
    %165 = arith.addf %163, %164 : vector<2x128xf32>
    %166 = vector.extract_strided_slice %165 {offsets = [0, 0], sizes = [2, 32], strides = [1, 1]} : vector<2x128xf32> to vector<2x32xf32>
    %cst_53 = arith.constant 5.000000e-01 : f32
    %167 = vector.broadcast %cst_53 : f32 to vector<2x32xf32>
    %168 = arith.mulf %167, %166 : vector<2x32xf32>
    %169 = math.tanh %168 : vector<2x32xf32>
    %cst_54 = arith.constant 5.000000e-01 : f32
    %170 = vector.broadcast %cst_54 : f32 to vector<2x32xf32>
    %171 = arith.mulf %170, %169 : vector<2x32xf32>
    %cst_55 = arith.constant 5.000000e-01 : f32
    %172 = vector.broadcast %cst_55 : f32 to vector<2x32xf32>
    %173 = arith.addf %171, %172 : vector<2x32xf32>
    %174 = vector.extract_strided_slice %165 {offsets = [0, 32], sizes = [2, 32], strides = [1, 1]} : vector<2x128xf32> to vector<2x32xf32>
    %cst_56 = arith.constant 5.000000e-01 : f32
    %175 = vector.broadcast %cst_56 : f32 to vector<2x32xf32>
    %176 = arith.mulf %175, %174 : vector<2x32xf32>
    %177 = math.tanh %176 : vector<2x32xf32>
    %cst_57 = arith.constant 5.000000e-01 : f32
    %178 = vector.broadcast %cst_57 : f32 to vector<2x32xf32>
    %179 = arith.mulf %178, %177 : vector<2x32xf32>
    %cst_58 = arith.constant 5.000000e-01 : f32
    %180 = vector.broadcast %cst_58 : f32 to vector<2x32xf32>
    %181 = arith.addf %179, %180 : vector<2x32xf32>
    %182 = vector.extract_strided_slice %165 {offsets = [0, 64], sizes = [2, 32], strides = [1, 1]} : vector<2x128xf32> to vector<2x32xf32>
    %183 = math.tanh %182 : vector<2x32xf32>
    %184 = vector.extract_strided_slice %165 {offsets = [0, 96], sizes = [2, 32], strides = [1, 1]} : vector<2x128xf32> to vector<2x32xf32>
    %cst_59 = arith.constant 5.000000e-01 : f32
    %185 = vector.broadcast %cst_59 : f32 to vector<2x32xf32>
    %186 = arith.mulf %185, %184 : vector<2x32xf32>
    %187 = math.tanh %186 : vector<2x32xf32>
    %cst_60 = arith.constant 5.000000e-01 : f32
    %188 = vector.broadcast %cst_60 : f32 to vector<2x32xf32>
    %189 = arith.mulf %188, %187 : vector<2x32xf32>
    %cst_61 = arith.constant 5.000000e-01 : f32
    %190 = vector.broadcast %cst_61 : f32 to vector<2x32xf32>
    %191 = arith.addf %189, %190 : vector<2x32xf32>
    %192 = arith.mulf %181, %158 : vector<2x32xf32>
    %193 = arith.mulf %173, %183 : vector<2x32xf32>
    %194 = arith.addf %192, %193 : vector<2x32xf32>
    %195 = math.tanh %194 : vector<2x32xf32>
    %196 = arith.mulf %191, %195 : vector<2x32xf32>
    %c3_i32 = arith.constant 3 : i32
    %197 = vector.broadcast %c3_i32 : i32 to vector<2x1xi32>
    %198 = arith.cmpi sgt, %0, %197 : vector<2x1xi32>
    %199 = vector.shape_cast %198 : vector<2x1xi1> to vector<2x1xi1>
    %200 = vector.broadcast %199 : vector<2x1xi1> to vector<2x32xi1>
    %201 = arith.select %200, %196, %155 : vector<2x32xi1>, vector<2x32xf32>
    %202 = vector.shape_cast %198 : vector<2x1xi1> to vector<2x1xi1>
    %203 = vector.broadcast %202 : vector<2x1xi1> to vector<2x32xi1>
    %204 = arith.select %203, %194, %158 : vector<2x32xi1>, vector<2x32xf32>
    %cst_62 = arith.constant 0.000000e+00 : f32
    %205 = vector.broadcast %cst_62 : f32 to vector<2x32xf32>
    %206 = vector.shape_cast %198 : vector<2x1xi1> to vector<2x1xi1>
    %207 = vector.broadcast %206 : vector<2x1xi1> to vector<2x32xi1>
    %208 = arith.select %207, %196, %205 : vector<2x32xi1>, vector<2x32xf32>
    %209 = vector.extract_strided_slice %21 {offsets = [8, 0], sizes = [2, 128], strides = [1, 1]} : vector<16x128xf32> to vector<2x128xf32>
    %cst_63 = arith.constant dense<0.000000e+00> : vector<2x128xf32>
    %210 = tpu.matmul %201, %22, %cst_63 {dimension_numbers = #tpu.dot_dimension_numbers<[1], [0], [0], [1], [0, 0, 1, 1], [], []>} : vector<2x32xf32>, vector<32x128xf32>, vector<2x128xf32> -> vector<2x128xf32>
    %211 = arith.addf %209, %210 : vector<2x128xf32>
    %212 = vector.extract_strided_slice %211 {offsets = [0, 0], sizes = [2, 32], strides = [1, 1]} : vector<2x128xf32> to vector<2x32xf32>
    %cst_64 = arith.constant 5.000000e-01 : f32
    %213 = vector.broadcast %cst_64 : f32 to vector<2x32xf32>
    %214 = arith.mulf %213, %212 : vector<2x32xf32>
    %215 = math.tanh %214 : vector<2x32xf32>
    %cst_65 = arith.constant 5.000000e-01 : f32
    %216 = vector.broadcast %cst_65 : f32 to vector<2x32xf32>
    %217 = arith.mulf %216, %215 : vector<2x32xf32>
    %cst_66 = arith.constant 5.000000e-01 : f32
    %218 = vector.broadcast %cst_66 : f32 to vector<2x32xf32>
    %219 = arith.addf %217, %218 : vector<2x32xf32>
    %220 = vector.extract_strided_slice %211 {offsets = [0, 32], sizes = [2, 32], strides = [1, 1]} : vector<2x128xf32> to vector<2x32xf32>
    %cst_67 = arith.constant 5.000000e-01 : f32
    %221 = vector.broadcast %cst_67 : f32 to vector<2x32xf32>
    %222 = arith.mulf %221, %220 : vector<2x32xf32>
    %223 = math.tanh %222 : vector<2x32xf32>
    %cst_68 = arith.constant 5.000000e-01 : f32
    %224 = vector.broadcast %cst_68 : f32 to vector<2x32xf32>
    %225 = arith.mulf %224, %223 : vector<2x32xf32>
    %cst_69 = arith.constant 5.000000e-01 : f32
    %226 = vector.broadcast %cst_69 : f32 to vector<2x32xf32>
    %227 = arith.addf %225, %226 : vector<2x32xf32>
    %228 = vector.extract_strided_slice %211 {offsets = [0, 64], sizes = [2, 32], strides = [1, 1]} : vector<2x128xf32> to vector<2x32xf32>
    %229 = math.tanh %228 : vector<2x32xf32>
    %230 = vector.extract_strided_slice %211 {offsets = [0, 96], sizes = [2, 32], strides = [1, 1]} : vector<2x128xf32> to vector<2x32xf32>
    %cst_70 = arith.constant 5.000000e-01 : f32
    %231 = vector.broadcast %cst_70 : f32 to vector<2x32xf32>
    %232 = arith.mulf %231, %230 : vector<2x32xf32>
    %233 = math.tanh %232 : vector<2x32xf32>
    %cst_71 = arith.constant 5.000000e-01 : f32
    %234 = vector.broadcast %cst_71 : f32 to vector<2x32xf32>
    %235 = arith.mulf %234, %233 : vector<2x32xf32>
    %cst_72 = arith.constant 5.000000e-01 : f32
    %236 = vector.broadcast %cst_72 : f32 to vector<2x32xf32>
    %237 = arith.addf %235, %236 : vector<2x32xf32>
    %238 = arith.mulf %227, %204 : vector<2x32xf32>
    %239 = arith.mulf %219, %229 : vector<2x32xf32>
    %240 = arith.addf %238, %239 : vector<2x32xf32>
    %241 = math.tanh %240 : vector<2x32xf32>
    %242 = arith.mulf %237, %241 : vector<2x32xf32>
    %c4_i32 = arith.constant 4 : i32
    %243 = vector.broadcast %c4_i32 : i32 to vector<2x1xi32>
    %244 = arith.cmpi sgt, %0, %243 : vector<2x1xi32>
    %245 = vector.shape_cast %244 : vector<2x1xi1> to vector<2x1xi1>
    %246 = vector.broadcast %245 : vector<2x1xi1> to vector<2x32xi1>
    %247 = arith.select %246, %242, %201 : vector<2x32xi1>, vector<2x32xf32>
    %248 = vector.shape_cast %244 : vector<2x1xi1> to vector<2x1xi1>
    %249 = vector.broadcast %248 : vector<2x1xi1> to vector<2x32xi1>
    %250 = arith.select %249, %240, %204 : vector<2x32xi1>, vector<2x32xf32>
    %cst_73 = arith.constant 0.000000e+00 : f32
    %251 = vector.broadcast %cst_73 : f32 to vector<2x32xf32>
    %252 = vector.shape_cast %244 : vector<2x1xi1> to vector<2x1xi1>
    %253 = vector.broadcast %252 : vector<2x1xi1> to vector<2x32xi1>
    %254 = arith.select %253, %242, %251 : vector<2x32xi1>, vector<2x32xf32>
    %255 = vector.extract_strided_slice %21 {offsets = [10, 0], sizes = [2, 128], strides = [1, 1]} : vector<16x128xf32> to vector<2x128xf32>
    %cst_74 = arith.constant dense<0.000000e+00> : vector<2x128xf32>
    %256 = tpu.matmul %247, %22, %cst_74 {dimension_numbers = #tpu.dot_dimension_numbers<[1], [0], [0], [1], [0, 0, 1, 1], [], []>} : vector<2x32xf32>, vector<32x128xf32>, vector<2x128xf32> -> vector<2x128xf32>
    %257 = arith.addf %255, %256 : vector<2x128xf32>
    %258 = vector.extract_strided_slice %257 {offsets = [0, 0], sizes = [2, 32], strides = [1, 1]} : vector<2x128xf32> to vector<2x32xf32>
    %cst_75 = arith.constant 5.000000e-01 : f32
    %259 = vector.broadcast %cst_75 : f32 to vector<2x32xf32>
    %260 = arith.mulf %259, %258 : vector<2x32xf32>
    %261 = math.tanh %260 : vector<2x32xf32>
    %cst_76 = arith.constant 5.000000e-01 : f32
    %262 = vector.broadcast %cst_76 : f32 to vector<2x32xf32>
    %263 = arith.mulf %262, %261 : vector<2x32xf32>
    %cst_77 = arith.constant 5.000000e-01 : f32
    %264 = vector.broadcast %cst_77 : f32 to vector<2x32xf32>
    %265 = arith.addf %263, %264 : vector<2x32xf32>
    %266 = vector.extract_strided_slice %257 {offsets = [0, 32], sizes = [2, 32], strides = [1, 1]} : vector<2x128xf32> to vector<2x32xf32>
    %cst_78 = arith.constant 5.000000e-01 : f32
    %267 = vector.broadcast %cst_78 : f32 to vector<2x32xf32>
    %268 = arith.mulf %267, %266 : vector<2x32xf32>
    %269 = math.tanh %268 : vector<2x32xf32>
    %cst_79 = arith.constant 5.000000e-01 : f32
    %270 = vector.broadcast %cst_79 : f32 to vector<2x32xf32>
    %271 = arith.mulf %270, %269 : vector<2x32xf32>
    %cst_80 = arith.constant 5.000000e-01 : f32
    %272 = vector.broadcast %cst_80 : f32 to vector<2x32xf32>
    %273 = arith.addf %271, %272 : vector<2x32xf32>
    %274 = vector.extract_strided_slice %257 {offsets = [0, 64], sizes = [2, 32], strides = [1, 1]} : vector<2x128xf32> to vector<2x32xf32>
    %275 = math.tanh %274 : vector<2x32xf32>
    %276 = vector.extract_strided_slice %257 {offsets = [0, 96], sizes = [2, 32], strides = [1, 1]} : vector<2x128xf32> to vector<2x32xf32>
    %cst_81 = arith.constant 5.000000e-01 : f32
    %277 = vector.broadcast %cst_81 : f32 to vector<2x32xf32>
    %278 = arith.mulf %277, %276 : vector<2x32xf32>
    %279 = math.tanh %278 : vector<2x32xf32>
    %cst_82 = arith.constant 5.000000e-01 : f32
    %280 = vector.broadcast %cst_82 : f32 to vector<2x32xf32>
    %281 = arith.mulf %280, %279 : vector<2x32xf32>
    %cst_83 = arith.constant 5.000000e-01 : f32
    %282 = vector.broadcast %cst_83 : f32 to vector<2x32xf32>
    %283 = arith.addf %281, %282 : vector<2x32xf32>
    %284 = arith.mulf %273, %250 : vector<2x32xf32>
    %285 = arith.mulf %265, %275 : vector<2x32xf32>
    %286 = arith.addf %284, %285 : vector<2x32xf32>
    %287 = math.tanh %286 : vector<2x32xf32>
    %288 = arith.mulf %283, %287 : vector<2x32xf32>
    %c5_i32 = arith.constant 5 : i32
    %289 = vector.broadcast %c5_i32 : i32 to vector<2x1xi32>
    %290 = arith.cmpi sgt, %0, %289 : vector<2x1xi32>
    %291 = vector.shape_cast %290 : vector<2x1xi1> to vector<2x1xi1>
    %292 = vector.broadcast %291 : vector<2x1xi1> to vector<2x32xi1>
    %293 = arith.select %292, %288, %247 : vector<2x32xi1>, vector<2x32xf32>
    %294 = vector.shape_cast %290 : vector<2x1xi1> to vector<2x1xi1>
    %295 = vector.broadcast %294 : vector<2x1xi1> to vector<2x32xi1>
    %296 = arith.select %295, %286, %250 : vector<2x32xi1>, vector<2x32xf32>
    %cst_84 = arith.constant 0.000000e+00 : f32
    %297 = vector.broadcast %cst_84 : f32 to vector<2x32xf32>
    %298 = vector.shape_cast %290 : vector<2x1xi1> to vector<2x1xi1>
    %299 = vector.broadcast %298 : vector<2x1xi1> to vector<2x32xi1>
    %300 = arith.select %299, %288, %297 : vector<2x32xi1>, vector<2x32xf32>
    %301 = vector.extract_strided_slice %21 {offsets = [12, 0], sizes = [2, 128], strides = [1, 1]} : vector<16x128xf32> to vector<2x128xf32>
    %cst_85 = arith.constant dense<0.000000e+00> : vector<2x128xf32>
    %302 = tpu.matmul %293, %22, %cst_85 {dimension_numbers = #tpu.dot_dimension_numbers<[1], [0], [0], [1], [0, 0, 1, 1], [], []>} : vector<2x32xf32>, vector<32x128xf32>, vector<2x128xf32> -> vector<2x128xf32>
    %303 = arith.addf %301, %302 : vector<2x128xf32>
    %304 = vector.extract_strided_slice %303 {offsets = [0, 0], sizes = [2, 32], strides = [1, 1]} : vector<2x128xf32> to vector<2x32xf32>
    %cst_86 = arith.constant 5.000000e-01 : f32
    %305 = vector.broadcast %cst_86 : f32 to vector<2x32xf32>
    %306 = arith.mulf %305, %304 : vector<2x32xf32>
    %307 = math.tanh %306 : vector<2x32xf32>
    %cst_87 = arith.constant 5.000000e-01 : f32
    %308 = vector.broadcast %cst_87 : f32 to vector<2x32xf32>
    %309 = arith.mulf %308, %307 : vector<2x32xf32>
    %cst_88 = arith.constant 5.000000e-01 : f32
    %310 = vector.broadcast %cst_88 : f32 to vector<2x32xf32>
    %311 = arith.addf %309, %310 : vector<2x32xf32>
    %312 = vector.extract_strided_slice %303 {offsets = [0, 32], sizes = [2, 32], strides = [1, 1]} : vector<2x128xf32> to vector<2x32xf32>
    %cst_89 = arith.constant 5.000000e-01 : f32
    %313 = vector.broadcast %cst_89 : f32 to vector<2x32xf32>
    %314 = arith.mulf %313, %312 : vector<2x32xf32>
    %315 = math.tanh %314 : vector<2x32xf32>
    %cst_90 = arith.constant 5.000000e-01 : f32
    %316 = vector.broadcast %cst_90 : f32 to vector<2x32xf32>
    %317 = arith.mulf %316, %315 : vector<2x32xf32>
    %cst_91 = arith.constant 5.000000e-01 : f32
    %318 = vector.broadcast %cst_91 : f32 to vector<2x32xf32>
    %319 = arith.addf %317, %318 : vector<2x32xf32>
    %320 = vector.extract_strided_slice %303 {offsets = [0, 64], sizes = [2, 32], strides = [1, 1]} : vector<2x128xf32> to vector<2x32xf32>
    %321 = math.tanh %320 : vector<2x32xf32>
    %322 = vector.extract_strided_slice %303 {offsets = [0, 96], sizes = [2, 32], strides = [1, 1]} : vector<2x128xf32> to vector<2x32xf32>
    %cst_92 = arith.constant 5.000000e-01 : f32
    %323 = vector.broadcast %cst_92 : f32 to vector<2x32xf32>
    %324 = arith.mulf %323, %322 : vector<2x32xf32>
    %325 = math.tanh %324 : vector<2x32xf32>
    %cst_93 = arith.constant 5.000000e-01 : f32
    %326 = vector.broadcast %cst_93 : f32 to vector<2x32xf32>
    %327 = arith.mulf %326, %325 : vector<2x32xf32>
    %cst_94 = arith.constant 5.000000e-01 : f32
    %328 = vector.broadcast %cst_94 : f32 to vector<2x32xf32>
    %329 = arith.addf %327, %328 : vector<2x32xf32>
    %330 = arith.mulf %319, %296 : vector<2x32xf32>
    %331 = arith.mulf %311, %321 : vector<2x32xf32>
    %332 = arith.addf %330, %331 : vector<2x32xf32>
    %333 = math.tanh %332 : vector<2x32xf32>
    %334 = arith.mulf %329, %333 : vector<2x32xf32>
    %c6_i32 = arith.constant 6 : i32
    %335 = vector.broadcast %c6_i32 : i32 to vector<2x1xi32>
    %336 = arith.cmpi sgt, %0, %335 : vector<2x1xi32>
    %337 = vector.shape_cast %336 : vector<2x1xi1> to vector<2x1xi1>
    %338 = vector.broadcast %337 : vector<2x1xi1> to vector<2x32xi1>
    %339 = arith.select %338, %334, %293 : vector<2x32xi1>, vector<2x32xf32>
    %340 = vector.shape_cast %336 : vector<2x1xi1> to vector<2x1xi1>
    %341 = vector.broadcast %340 : vector<2x1xi1> to vector<2x32xi1>
    %342 = arith.select %341, %332, %296 : vector<2x32xi1>, vector<2x32xf32>
    %cst_95 = arith.constant 0.000000e+00 : f32
    %343 = vector.broadcast %cst_95 : f32 to vector<2x32xf32>
    %344 = vector.shape_cast %336 : vector<2x1xi1> to vector<2x1xi1>
    %345 = vector.broadcast %344 : vector<2x1xi1> to vector<2x32xi1>
    %346 = arith.select %345, %334, %343 : vector<2x32xi1>, vector<2x32xf32>
    %347 = vector.extract_strided_slice %21 {offsets = [14, 0], sizes = [2, 128], strides = [1, 1]} : vector<16x128xf32> to vector<2x128xf32>
    %cst_96 = arith.constant dense<0.000000e+00> : vector<2x128xf32>
    %348 = tpu.matmul %339, %22, %cst_96 {dimension_numbers = #tpu.dot_dimension_numbers<[1], [0], [0], [1], [0, 0, 1, 1], [], []>} : vector<2x32xf32>, vector<32x128xf32>, vector<2x128xf32> -> vector<2x128xf32>
    %349 = arith.addf %347, %348 : vector<2x128xf32>
    %350 = vector.extract_strided_slice %349 {offsets = [0, 0], sizes = [2, 32], strides = [1, 1]} : vector<2x128xf32> to vector<2x32xf32>
    %cst_97 = arith.constant 5.000000e-01 : f32
    %351 = vector.broadcast %cst_97 : f32 to vector<2x32xf32>
    %352 = arith.mulf %351, %350 : vector<2x32xf32>
    %353 = math.tanh %352 : vector<2x32xf32>
    %cst_98 = arith.constant 5.000000e-01 : f32
    %354 = vector.broadcast %cst_98 : f32 to vector<2x32xf32>
    %355 = arith.mulf %354, %353 : vector<2x32xf32>
    %cst_99 = arith.constant 5.000000e-01 : f32
    %356 = vector.broadcast %cst_99 : f32 to vector<2x32xf32>
    %357 = arith.addf %355, %356 : vector<2x32xf32>
    %358 = vector.extract_strided_slice %349 {offsets = [0, 32], sizes = [2, 32], strides = [1, 1]} : vector<2x128xf32> to vector<2x32xf32>
    %cst_100 = arith.constant 5.000000e-01 : f32
    %359 = vector.broadcast %cst_100 : f32 to vector<2x32xf32>
    %360 = arith.mulf %359, %358 : vector<2x32xf32>
    %361 = math.tanh %360 : vector<2x32xf32>
    %cst_101 = arith.constant 5.000000e-01 : f32
    %362 = vector.broadcast %cst_101 : f32 to vector<2x32xf32>
    %363 = arith.mulf %362, %361 : vector<2x32xf32>
    %cst_102 = arith.constant 5.000000e-01 : f32
    %364 = vector.broadcast %cst_102 : f32 to vector<2x32xf32>
    %365 = arith.addf %363, %364 : vector<2x32xf32>
    %366 = vector.extract_strided_slice %349 {offsets = [0, 64], sizes = [2, 32], strides = [1, 1]} : vector<2x128xf32> to vector<2x32xf32>
    %367 = math.tanh %366 : vector<2x32xf32>
    %368 = vector.extract_strided_slice %349 {offsets = [0, 96], sizes = [2, 32], strides = [1, 1]} : vector<2x128xf32> to vector<2x32xf32>
    %cst_103 = arith.constant 5.000000e-01 : f32
    %369 = vector.broadcast %cst_103 : f32 to vector<2x32xf32>
    %370 = arith.mulf %369, %368 : vector<2x32xf32>
    %371 = math.tanh %370 : vector<2x32xf32>
    %cst_104 = arith.constant 5.000000e-01 : f32
    %372 = vector.broadcast %cst_104 : f32 to vector<2x32xf32>
    %373 = arith.mulf %372, %371 : vector<2x32xf32>
    %cst_105 = arith.constant 5.000000e-01 : f32
    %374 = vector.broadcast %cst_105 : f32 to vector<2x32xf32>
    %375 = arith.addf %373, %374 : vector<2x32xf32>
    %376 = arith.mulf %365, %342 : vector<2x32xf32>
    %377 = arith.mulf %357, %367 : vector<2x32xf32>
    %378 = arith.addf %376, %377 : vector<2x32xf32>
    %379 = math.tanh %378 : vector<2x32xf32>
    %380 = arith.mulf %375, %379 : vector<2x32xf32>
    %c7_i32 = arith.constant 7 : i32
    %381 = vector.broadcast %c7_i32 : i32 to vector<2x1xi32>
    %382 = arith.cmpi sgt, %0, %381 : vector<2x1xi32>
    %383 = vector.shape_cast %382 : vector<2x1xi1> to vector<2x1xi1>
    %384 = vector.broadcast %383 : vector<2x1xi1> to vector<2x32xi1>
    %385 = arith.select %384, %380, %339 : vector<2x32xi1>, vector<2x32xf32>
    %386 = vector.shape_cast %382 : vector<2x1xi1> to vector<2x1xi1>
    %387 = vector.broadcast %386 : vector<2x1xi1> to vector<2x32xi1>
    %388 = arith.select %387, %378, %342 : vector<2x32xi1>, vector<2x32xf32>
    %cst_106 = arith.constant 0.000000e+00 : f32
    %389 = vector.broadcast %cst_106 : f32 to vector<2x32xf32>
    %390 = vector.shape_cast %382 : vector<2x1xi1> to vector<2x1xi1>
    %391 = vector.broadcast %390 : vector<2x1xi1> to vector<2x32xi1>
    %392 = arith.select %391, %380, %389 : vector<2x32xi1>, vector<2x32xf32>
    %c0_107 = arith.constant 0 : index
    %c0_108 = arith.constant 0 : index
    %393 = vector.load %arg9[%c0_107, %c0_108] : memref<32x32xf32, #tpu.memory_space<vmem>>, vector<32x32xf32>
    %cst_109 = arith.constant dense<0.000000e+00> : vector<2x32xf32>
    %394 = tpu.matmul %385, %393, %cst_109 {dimension_numbers = #tpu.dot_dimension_numbers<[1], [0], [0], [1], [0, 0, 1, 1], [], []>} : vector<2x32xf32>, vector<32x32xf32>, vector<2x32xf32> -> vector<2x32xf32>
    %cst_110 = arith.constant 3.200000e+01 : f32
    %395 = math.sqrt %cst_110 : f32
    %cst_111 = arith.constant 1.000000e+00 : f32
    %396 = arith.divf %cst_111, %395 : f32
    %397 = arith.mulf %70, %394 : vector<2x32xf32>
    %cst_112 = arith.constant dense<0.000000e+00> : vector<2xf32>
    %398 = vector.multi_reduction <add>, %397, %cst_112 [1] : vector<2x32xf32> to vector<2xf32>
    %399 = vector.shape_cast %398 : vector<2xf32> to vector<2x1xf32>
    %400 = vector.broadcast %396 : f32 to vector<2x1xf32>
    %401 = arith.mulf %399, %400 : vector<2x1xf32>
    %c0_i32_113 = arith.constant 0 : i32
    %402 = vector.broadcast %c0_i32_113 : i32 to vector<2x1xi32>
    %403 = arith.cmpi sgt, %0, %402 : vector<2x1xi32>
    %cst_114 = arith.constant -1.000000e+30 : f32
    %404 = vector.broadcast %cst_114 : f32 to vector<2x1xf32>
    %405 = arith.select %403, %401, %404 : vector<2x1xi1>, vector<2x1xf32>
    %406 = arith.mulf %116, %394 : vector<2x32xf32>
    %cst_115 = arith.constant dense<0.000000e+00> : vector<2xf32>
    %407 = vector.multi_reduction <add>, %406, %cst_115 [1] : vector<2x32xf32> to vector<2xf32>
    %408 = vector.shape_cast %407 : vector<2xf32> to vector<2x1xf32>
    %409 = vector.broadcast %396 : f32 to vector<2x1xf32>
    %410 = arith.mulf %408, %409 : vector<2x1xf32>
    %c1_i32_116 = arith.constant 1 : i32
    %411 = vector.broadcast %c1_i32_116 : i32 to vector<2x1xi32>
    %412 = arith.cmpi sgt, %0, %411 : vector<2x1xi32>
    %cst_117 = arith.constant -1.000000e+30 : f32
    %413 = vector.broadcast %cst_117 : f32 to vector<2x1xf32>
    %414 = arith.select %412, %410, %413 : vector<2x1xi1>, vector<2x1xf32>
    %415 = arith.mulf %162, %394 : vector<2x32xf32>
    %cst_118 = arith.constant dense<0.000000e+00> : vector<2xf32>
    %416 = vector.multi_reduction <add>, %415, %cst_118 [1] : vector<2x32xf32> to vector<2xf32>
    %417 = vector.shape_cast %416 : vector<2xf32> to vector<2x1xf32>
    %418 = vector.broadcast %396 : f32 to vector<2x1xf32>
    %419 = arith.mulf %417, %418 : vector<2x1xf32>
    %c2_i32_119 = arith.constant 2 : i32
    %420 = vector.broadcast %c2_i32_119 : i32 to vector<2x1xi32>
    %421 = arith.cmpi sgt, %0, %420 : vector<2x1xi32>
    %cst_120 = arith.constant -1.000000e+30 : f32
    %422 = vector.broadcast %cst_120 : f32 to vector<2x1xf32>
    %423 = arith.select %421, %419, %422 : vector<2x1xi1>, vector<2x1xf32>
    %424 = arith.mulf %208, %394 : vector<2x32xf32>
    %cst_121 = arith.constant dense<0.000000e+00> : vector<2xf32>
    %425 = vector.multi_reduction <add>, %424, %cst_121 [1] : vector<2x32xf32> to vector<2xf32>
    %426 = vector.shape_cast %425 : vector<2xf32> to vector<2x1xf32>
    %427 = vector.broadcast %396 : f32 to vector<2x1xf32>
    %428 = arith.mulf %426, %427 : vector<2x1xf32>
    %c3_i32_122 = arith.constant 3 : i32
    %429 = vector.broadcast %c3_i32_122 : i32 to vector<2x1xi32>
    %430 = arith.cmpi sgt, %0, %429 : vector<2x1xi32>
    %cst_123 = arith.constant -1.000000e+30 : f32
    %431 = vector.broadcast %cst_123 : f32 to vector<2x1xf32>
    %432 = arith.select %430, %428, %431 : vector<2x1xi1>, vector<2x1xf32>
    %433 = arith.mulf %254, %394 : vector<2x32xf32>
    %cst_124 = arith.constant dense<0.000000e+00> : vector<2xf32>
    %434 = vector.multi_reduction <add>, %433, %cst_124 [1] : vector<2x32xf32> to vector<2xf32>
    %435 = vector.shape_cast %434 : vector<2xf32> to vector<2x1xf32>
    %436 = vector.broadcast %396 : f32 to vector<2x1xf32>
    %437 = arith.mulf %435, %436 : vector<2x1xf32>
    %c4_i32_125 = arith.constant 4 : i32
    %438 = vector.broadcast %c4_i32_125 : i32 to vector<2x1xi32>
    %439 = arith.cmpi sgt, %0, %438 : vector<2x1xi32>
    %cst_126 = arith.constant -1.000000e+30 : f32
    %440 = vector.broadcast %cst_126 : f32 to vector<2x1xf32>
    %441 = arith.select %439, %437, %440 : vector<2x1xi1>, vector<2x1xf32>
    %442 = arith.mulf %300, %394 : vector<2x32xf32>
    %cst_127 = arith.constant dense<0.000000e+00> : vector<2xf32>
    %443 = vector.multi_reduction <add>, %442, %cst_127 [1] : vector<2x32xf32> to vector<2xf32>
    %444 = vector.shape_cast %443 : vector<2xf32> to vector<2x1xf32>
    %445 = vector.broadcast %396 : f32 to vector<2x1xf32>
    %446 = arith.mulf %444, %445 : vector<2x1xf32>
    %c5_i32_128 = arith.constant 5 : i32
    %447 = vector.broadcast %c5_i32_128 : i32 to vector<2x1xi32>
    %448 = arith.cmpi sgt, %0, %447 : vector<2x1xi32>
    %cst_129 = arith.constant -1.000000e+30 : f32
    %449 = vector.broadcast %cst_129 : f32 to vector<2x1xf32>
    %450 = arith.select %448, %446, %449 : vector<2x1xi1>, vector<2x1xf32>
    %451 = arith.mulf %346, %394 : vector<2x32xf32>
    %cst_130 = arith.constant dense<0.000000e+00> : vector<2xf32>
    %452 = vector.multi_reduction <add>, %451, %cst_130 [1] : vector<2x32xf32> to vector<2xf32>
    %453 = vector.shape_cast %452 : vector<2xf32> to vector<2x1xf32>
    %454 = vector.broadcast %396 : f32 to vector<2x1xf32>
    %455 = arith.mulf %453, %454 : vector<2x1xf32>
    %c6_i32_131 = arith.constant 6 : i32
    %456 = vector.broadcast %c6_i32_131 : i32 to vector<2x1xi32>
    %457 = arith.cmpi sgt, %0, %456 : vector<2x1xi32>
    %cst_132 = arith.constant -1.000000e+30 : f32
    %458 = vector.broadcast %cst_132 : f32 to vector<2x1xf32>
    %459 = arith.select %457, %455, %458 : vector<2x1xi1>, vector<2x1xf32>
    %460 = arith.mulf %392, %394 : vector<2x32xf32>
    %cst_133 = arith.constant dense<0.000000e+00> : vector<2xf32>
    %461 = vector.multi_reduction <add>, %460, %cst_133 [1] : vector<2x32xf32> to vector<2xf32>
    %462 = vector.shape_cast %461 : vector<2xf32> to vector<2x1xf32>
    %463 = vector.broadcast %396 : f32 to vector<2x1xf32>
    %464 = arith.mulf %462, %463 : vector<2x1xf32>
    %c7_i32_134 = arith.constant 7 : i32
    %465 = vector.broadcast %c7_i32_134 : i32 to vector<2x1xi32>
    %466 = arith.cmpi sgt, %0, %465 : vector<2x1xi32>
    %cst_135 = arith.constant -1.000000e+30 : f32
    %467 = vector.broadcast %cst_135 : f32 to vector<2x1xf32>
    %468 = arith.select %466, %464, %467 : vector<2x1xi1>, vector<2x1xf32>
    %469 = arith.maximumf %405, %414 : vector<2x1xf32>
    %470 = arith.maximumf %469, %423 : vector<2x1xf32>
    %471 = arith.maximumf %470, %432 : vector<2x1xf32>
    %472 = arith.maximumf %471, %441 : vector<2x1xf32>
    %473 = arith.maximumf %472, %450 : vector<2x1xf32>
    %474 = arith.maximumf %473, %459 : vector<2x1xf32>
    %475 = arith.maximumf %474, %468 : vector<2x1xf32>
    %476 = arith.subf %405, %475 : vector<2x1xf32>
    %477 = math.exp %476 : vector<2x1xf32>
    %478 = arith.subf %414, %475 : vector<2x1xf32>
    %479 = math.exp %478 : vector<2x1xf32>
    %480 = arith.subf %423, %475 : vector<2x1xf32>
    %481 = math.exp %480 : vector<2x1xf32>
    %482 = arith.subf %432, %475 : vector<2x1xf32>
    %483 = math.exp %482 : vector<2x1xf32>
    %484 = arith.subf %441, %475 : vector<2x1xf32>
    %485 = math.exp %484 : vector<2x1xf32>
    %486 = arith.subf %450, %475 : vector<2x1xf32>
    %487 = math.exp %486 : vector<2x1xf32>
    %488 = arith.subf %459, %475 : vector<2x1xf32>
    %489 = math.exp %488 : vector<2x1xf32>
    %490 = arith.subf %468, %475 : vector<2x1xf32>
    %491 = math.exp %490 : vector<2x1xf32>
    %492 = arith.addf %477, %479 : vector<2x1xf32>
    %493 = arith.addf %492, %481 : vector<2x1xf32>
    %494 = arith.addf %493, %483 : vector<2x1xf32>
    %495 = arith.addf %494, %485 : vector<2x1xf32>
    %496 = arith.addf %495, %487 : vector<2x1xf32>
    %497 = arith.addf %496, %489 : vector<2x1xf32>
    %498 = arith.addf %497, %491 : vector<2x1xf32>
    %cst_136 = arith.constant 0.000000e+00 : f32
    %499 = vector.broadcast %cst_136 : f32 to vector<2x32xf32>
    %500 = vector.broadcast %477 : vector<2x1xf32> to vector<2x32xf32>
    %501 = arith.mulf %500, %70 : vector<2x32xf32>
    %502 = arith.addf %499, %501 : vector<2x32xf32>
    %503 = vector.broadcast %479 : vector<2x1xf32> to vector<2x32xf32>
    %504 = arith.mulf %503, %116 : vector<2x32xf32>
    %505 = arith.addf %502, %504 : vector<2x32xf32>
    %506 = vector.broadcast %481 : vector<2x1xf32> to vector<2x32xf32>
    %507 = arith.mulf %506, %162 : vector<2x32xf32>
    %508 = arith.addf %505, %507 : vector<2x32xf32>
    %509 = vector.broadcast %483 : vector<2x1xf32> to vector<2x32xf32>
    %510 = arith.mulf %509, %208 : vector<2x32xf32>
    %511 = arith.addf %508, %510 : vector<2x32xf32>
    %512 = vector.broadcast %485 : vector<2x1xf32> to vector<2x32xf32>
    %513 = arith.mulf %512, %254 : vector<2x32xf32>
    %514 = arith.addf %511, %513 : vector<2x32xf32>
    %515 = vector.broadcast %487 : vector<2x1xf32> to vector<2x32xf32>
    %516 = arith.mulf %515, %300 : vector<2x32xf32>
    %517 = arith.addf %514, %516 : vector<2x32xf32>
    %518 = vector.broadcast %489 : vector<2x1xf32> to vector<2x32xf32>
    %519 = arith.mulf %518, %346 : vector<2x32xf32>
    %520 = arith.addf %517, %519 : vector<2x32xf32>
    %521 = vector.broadcast %491 : vector<2x1xf32> to vector<2x32xf32>
    %522 = arith.mulf %521, %392 : vector<2x32xf32>
    %523 = arith.addf %520, %522 : vector<2x32xf32>
    %524 = vector.broadcast %498 : vector<2x1xf32> to vector<2x32xf32>
    %525 = arith.divf %523, %524 : vector<2x32xf32>
    %c0_137 = arith.constant 0 : index
    %c0_138 = arith.constant 0 : index
    %526 = vector.load %arg10[%c0_137, %c0_138] : memref<32x128xf32, #tpu.memory_space<vmem>>, vector<32x128xf32>
    %cst_139 = arith.constant dense<0.000000e+00> : vector<2x128xf32>
    %527 = tpu.matmul %385, %526, %cst_139 {dimension_numbers = #tpu.dot_dimension_numbers<[1], [0], [0], [1], [0, 0, 1, 1], [], []>} : vector<2x32xf32>, vector<32x128xf32>, vector<2x128xf32> -> vector<2x128xf32>
    %c0_140 = arith.constant 0 : index
    %c0_141 = arith.constant 0 : index
    %528 = vector.load %arg11[%c0_140, %c0_141] : memref<32x128xf32, #tpu.memory_space<vmem>>, vector<32x128xf32>
    %cst_142 = arith.constant dense<0.000000e+00> : vector<2x128xf32>
    %529 = tpu.matmul %525, %528, %cst_142 {dimension_numbers = #tpu.dot_dimension_numbers<[1], [0], [0], [1], [0, 0, 1, 1], [], []>} : vector<2x32xf32>, vector<32x128xf32>, vector<2x128xf32> -> vector<2x128xf32>
    %530 = arith.addf %527, %529 : vector<2x128xf32>
    %c0_143 = arith.constant 0 : index
    %c0_144 = arith.constant 0 : index
    %531 = vector.load %arg12[%c0_143, %c0_144] : memref<1x128xf32, #tpu.memory_space<vmem>>, vector<1x128xf32>
    %532 = vector.broadcast %531 : vector<1x128xf32> to vector<2x128xf32>
    %533 = arith.addf %530, %532 : vector<2x128xf32>
    %cst_145 = arith.constant dense<0xFF800000> : vector<2xf32>
    %534 = vector.multi_reduction <maximumf>, %533, %cst_145 [1] : vector<2x128xf32> to vector<2xf32>
    %535 = vector.shape_cast %534 : vector<2xf32> to vector<2x1xf32>
    %536 = vector.broadcast %535 : vector<2x1xf32> to vector<2x128xf32>
    %537 = arith.subf %533, %536 : vector<2x128xf32>
    %538 = math.exp %537 : vector<2x128xf32>
    %cst_146 = arith.constant dense<0.000000e+00> : vector<2xf32>
    %539 = vector.multi_reduction <add>, %538, %cst_146 [1] : vector<2x128xf32> to vector<2xf32>
    %540 = vector.shape_cast %539 : vector<2xf32> to vector<2x1xf32>
    %541 = math.log %540 : vector<2x1xf32>
    %542 = vector.broadcast %541 : vector<2x1xf32> to vector<2x128xf32>
    %543 = arith.subf %537, %542 : vector<2x128xf32>
    %c0_147 = arith.constant 0 : index
    %c0_148 = arith.constant 0 : index
    %544 = vector.load %arg24[%c0_147, %c0_148] : memref<2x128xf32, #tpu.memory_space<vmem>>, vector<2x128xf32>
    tpu.vector_store %arg24[%c0_147, %c0_148], %543 {strides = array<i32>} : memref<2x128xf32, #tpu.memory_space<vmem>>, vector<2x128xf32>,
    %c0_149 = arith.constant 0 : index
    %c0_150 = arith.constant 0 : index
    %545 = vector.load %arg13[%c0_149, %c0_150] : memref<32x32xf32, #tpu.memory_space<vmem>>, vector<32x32xf32>
    %cst_151 = arith.constant dense<0.000000e+00> : vector<2x32xf32>
    %546 = tpu.matmul %385, %545, %cst_151 {dimension_numbers = #tpu.dot_dimension_numbers<[1], [0], [0], [1], [0, 0, 1, 1], [], []>} : vector<2x32xf32>, vector<32x32xf32>, vector<2x32xf32> -> vector<2x32xf32>
    %c0_152 = arith.constant 0 : index
    %c0_153 = arith.constant 0 : index
    %547 = vector.load %arg14[%c0_152, %c0_153] : memref<1x32xf32, #tpu.memory_space<vmem>>, vector<1x32xf32>
    %548 = vector.broadcast %547 : vector<1x32xf32> to vector<2x32xf32>
    %549 = arith.addf %546, %548 : vector<2x32xf32>
    %550 = math.tanh %549 : vector<2x32xf32>
    %c0_154 = arith.constant 0 : index
    %c0_155 = arith.constant 0 : index
    %551 = vector.load %arg15[%c0_154, %c0_155] : memref<32x32xf32, #tpu.memory_space<vmem>>, vector<32x32xf32>
    %cst_156 = arith.constant dense<0.000000e+00> : vector<2x32xf32>
    %552 = tpu.matmul %388, %551, %cst_156 {dimension_numbers = #tpu.dot_dimension_numbers<[1], [0], [0], [1], [0, 0, 1, 1], [], []>} : vector<2x32xf32>, vector<32x32xf32>, vector<2x32xf32> -> vector<2x32xf32>
    %c0_157 = arith.constant 0 : index
    %c0_158 = arith.constant 0 : index
    %553 = vector.load %arg16[%c0_157, %c0_158] : memref<1x32xf32, #tpu.memory_space<vmem>>, vector<1x32xf32>
    %554 = vector.broadcast %553 : vector<1x32xf32> to vector<2x32xf32>
    %555 = arith.addf %552, %554 : vector<2x32xf32>
    %556 = math.tanh %555 : vector<2x32xf32>
    %557 = tpu.concatenate %70, %116, %162, %208, %254, %300, %346, %392 in 0 : vector<2x32xf32>, vector<2x32xf32>, vector<2x32xf32>, vector<2x32xf32>, vector<2x32xf32>, vector<2x32xf32>, vector<2x32xf32>, vector<2x32xf32> -> vector<16x32xf32>
    %c0_159 = arith.constant 0 : index
    %c0_160 = arith.constant 0 : index
    %558 = vector.load %arg17[%c0_159, %c0_160] : memref<16x128xf32, #tpu.memory_space<vmem>>, vector<16x128xf32>
    %cst_161 = arith.constant dense<0.000000e+00> : vector<16x128xf32>
    %559 = tpu.matmul %16, %558, %cst_161 {dimension_numbers = #tpu.dot_dimension_numbers<[1], [0], [0], [1], [0, 0, 1, 1], [], []>} : vector<16x16xf32>, vector<16x128xf32>, vector<16x128xf32> -> vector<16x128xf32>
    %c0_162 = arith.constant 0 : index
    %c0_163 = arith.constant 0 : index
    %560 = vector.load %arg18[%c0_162, %c0_163] : memref<32x128xf32, #tpu.memory_space<vmem>>, vector<32x128xf32>
    %cst_164 = arith.constant dense<0.000000e+00> : vector<16x128xf32>
    %561 = tpu.matmul %557, %560, %cst_164 {dimension_numbers = #tpu.dot_dimension_numbers<[1], [0], [0], [1], [0, 0, 1, 1], [], []>} : vector<16x32xf32>, vector<32x128xf32>, vector<16x128xf32> -> vector<16x128xf32>
    %562 = arith.addf %559, %561 : vector<16x128xf32>
    %c0_165 = arith.constant 0 : index
    %c0_166 = arith.constant 0 : index
    %563 = vector.load %arg20[%c0_165, %c0_166] : memref<1x128xf32, #tpu.memory_space<vmem>>, vector<1x128xf32>
    %564 = vector.broadcast %563 : vector<1x128xf32> to vector<16x128xf32>
    %565 = arith.addf %562, %564 : vector<16x128xf32>
    %c0_167 = arith.constant 0 : index
    %c0_168 = arith.constant 0 : index
    %566 = vector.load %arg19[%c0_167, %c0_168] : memref<32x128xf32, #tpu.memory_space<vmem>>, vector<32x128xf32>
    %c0_169 = arith.constant 0 : index
    %c0_170 = arith.constant 0 : index
    %567 = vector.load %arg21[%c0_169, %c0_170] : memref<32x128xf32, #tpu.memory_space<vmem>>, vector<32x128xf32>
    %c0_171 = arith.constant 0 : index
    %c0_172 = arith.constant 0 : index
    %568 = vector.load %arg22[%c0_171, %c0_172] : memref<1x128xf32, #tpu.memory_space<vmem>>, vector<1x128xf32>
    %569 = vector.shape_cast %568 : vector<1x128xf32> to vector<1x128xf32>
    %570 = vector.broadcast %569 : vector<1x128xf32> to vector<2x128xf32>
    %571 = vector.extract_strided_slice %565 {offsets = [0, 0], sizes = [2, 128], strides = [1, 1]} : vector<16x128xf32> to vector<2x128xf32>
    %cst_173 = arith.constant dense<0.000000e+00> : vector<2x128xf32>
    %572 = tpu.matmul %550, %566, %cst_173 {dimension_numbers = #tpu.dot_dimension_numbers<[1], [0], [0], [1], [0, 0, 1, 1], [], []>} : vector<2x32xf32>, vector<32x128xf32>, vector<2x128xf32> -> vector<2x128xf32>
    %573 = arith.addf %571, %572 : vector<2x128xf32>
    %574 = vector.extract_strided_slice %573 {offsets = [0, 0], sizes = [2, 32], strides = [1, 1]} : vector<2x128xf32> to vector<2x32xf32>
    %cst_174 = arith.constant 5.000000e-01 : f32
    %575 = vector.broadcast %cst_174 : f32 to vector<2x32xf32>
    %576 = arith.mulf %575, %574 : vector<2x32xf32>
    %577 = math.tanh %576 : vector<2x32xf32>
    %cst_175 = arith.constant 5.000000e-01 : f32
    %578 = vector.broadcast %cst_175 : f32 to vector<2x32xf32>
    %579 = arith.mulf %578, %577 : vector<2x32xf32>
    %cst_176 = arith.constant 5.000000e-01 : f32
    %580 = vector.broadcast %cst_176 : f32 to vector<2x32xf32>
    %581 = arith.addf %579, %580 : vector<2x32xf32>
    %582 = vector.extract_strided_slice %573 {offsets = [0, 32], sizes = [2, 32], strides = [1, 1]} : vector<2x128xf32> to vector<2x32xf32>
    %cst_177 = arith.constant 5.000000e-01 : f32
    %583 = vector.broadcast %cst_177 : f32 to vector<2x32xf32>
    %584 = arith.mulf %583, %582 : vector<2x32xf32>
    %585 = math.tanh %584 : vector<2x32xf32>
    %cst_178 = arith.constant 5.000000e-01 : f32
    %586 = vector.broadcast %cst_178 : f32 to vector<2x32xf32>
    %587 = arith.mulf %586, %585 : vector<2x32xf32>
    %cst_179 = arith.constant 5.000000e-01 : f32
    %588 = vector.broadcast %cst_179 : f32 to vector<2x32xf32>
    %589 = arith.addf %587, %588 : vector<2x32xf32>
    %590 = vector.extract_strided_slice %573 {offsets = [0, 64], sizes = [2, 32], strides = [1, 1]} : vector<2x128xf32> to vector<2x32xf32>
    %591 = math.tanh %590 : vector<2x32xf32>
    %592 = vector.extract_strided_slice %573 {offsets = [0, 96], sizes = [2, 32], strides = [1, 1]} : vector<2x128xf32> to vector<2x32xf32>
    %cst_180 = arith.constant 5.000000e-01 : f32
    %593 = vector.broadcast %cst_180 : f32 to vector<2x32xf32>
    %594 = arith.mulf %593, %592 : vector<2x32xf32>
    %595 = math.tanh %594 : vector<2x32xf32>
    %cst_181 = arith.constant 5.000000e-01 : f32
    %596 = vector.broadcast %cst_181 : f32 to vector<2x32xf32>
    %597 = arith.mulf %596, %595 : vector<2x32xf32>
    %cst_182 = arith.constant 5.000000e-01 : f32
    %598 = vector.broadcast %cst_182 : f32 to vector<2x32xf32>
    %599 = arith.addf %597, %598 : vector<2x32xf32>
    %600 = arith.mulf %589, %556 : vector<2x32xf32>
    %601 = arith.mulf %581, %591 : vector<2x32xf32>
    %602 = arith.addf %600, %601 : vector<2x32xf32>
    %603 = math.tanh %602 : vector<2x32xf32>
    %604 = arith.mulf %599, %603 : vector<2x32xf32>
    %cst_183 = arith.constant dense<0.000000e+00> : vector<2x128xf32>
    %605 = tpu.matmul %604, %567, %cst_183 {dimension_numbers = #tpu.dot_dimension_numbers<[1], [0], [0], [1], [0, 0, 1, 1], [], []>} : vector<2x32xf32>, vector<32x128xf32>, vector<2x128xf32> -> vector<2x128xf32>
    %606 = arith.addf %605, %570 : vector<2x128xf32>
    %cst_184 = arith.constant dense<0xFF800000> : vector<2xf32>
    %607 = vector.multi_reduction <maximumf>, %606, %cst_184 [1] : vector<2x128xf32> to vector<2xf32>
    %608 = vector.shape_cast %607 : vector<2xf32> to vector<2x1xf32>
    %609 = vector.broadcast %608 : vector<2x1xf32> to vector<2x128xf32>
    %610 = arith.subf %606, %609 : vector<2x128xf32>
    %611 = math.exp %610 : vector<2x128xf32>
    %cst_185 = arith.constant dense<0.000000e+00> : vector<2xf32>
    %612 = vector.multi_reduction <add>, %611, %cst_185 [1] : vector<2x128xf32> to vector<2xf32>
    %613 = vector.shape_cast %612 : vector<2xf32> to vector<2x1xf32>
    %614 = math.log %613 : vector<2x1xf32>
    %615 = vector.broadcast %614 : vector<2x1xf32> to vector<2x128xf32>
    %616 = arith.subf %610, %615 : vector<2x128xf32>
    %617 = vector.extract_strided_slice %565 {offsets = [2, 0], sizes = [2, 128], strides = [1, 1]} : vector<16x128xf32> to vector<2x128xf32>
    %cst_186 = arith.constant dense<0.000000e+00> : vector<2x128xf32>
    %618 = tpu.matmul %604, %566, %cst_186 {dimension_numbers = #tpu.dot_dimension_numbers<[1], [0], [0], [1], [0, 0, 1, 1], [], []>} : vector<2x32xf32>, vector<32x128xf32>, vector<2x128xf32> -> vector<2x128xf32>
    %619 = arith.addf %617, %618 : vector<2x128xf32>
    %620 = vector.extract_strided_slice %619 {offsets = [0, 0], sizes = [2, 32], strides = [1, 1]} : vector<2x128xf32> to vector<2x32xf32>
    %cst_187 = arith.constant 5.000000e-01 : f32
    %621 = vector.broadcast %cst_187 : f32 to vector<2x32xf32>
    %622 = arith.mulf %621, %620 : vector<2x32xf32>
    %623 = math.tanh %622 : vector<2x32xf32>
    %cst_188 = arith.constant 5.000000e-01 : f32
    %624 = vector.broadcast %cst_188 : f32 to vector<2x32xf32>
    %625 = arith.mulf %624, %623 : vector<2x32xf32>
    %cst_189 = arith.constant 5.000000e-01 : f32
    %626 = vector.broadcast %cst_189 : f32 to vector<2x32xf32>
    %627 = arith.addf %625, %626 : vector<2x32xf32>
    %628 = vector.extract_strided_slice %619 {offsets = [0, 32], sizes = [2, 32], strides = [1, 1]} : vector<2x128xf32> to vector<2x32xf32>
    %cst_190 = arith.constant 5.000000e-01 : f32
    %629 = vector.broadcast %cst_190 : f32 to vector<2x32xf32>
    %630 = arith.mulf %629, %628 : vector<2x32xf32>
    %631 = math.tanh %630 : vector<2x32xf32>
    %cst_191 = arith.constant 5.000000e-01 : f32
    %632 = vector.broadcast %cst_191 : f32 to vector<2x32xf32>
    %633 = arith.mulf %632, %631 : vector<2x32xf32>
    %cst_192 = arith.constant 5.000000e-01 : f32
    %634 = vector.broadcast %cst_192 : f32 to vector<2x32xf32>
    %635 = arith.addf %633, %634 : vector<2x32xf32>
    %636 = vector.extract_strided_slice %619 {offsets = [0, 64], sizes = [2, 32], strides = [1, 1]} : vector<2x128xf32> to vector<2x32xf32>
    %637 = math.tanh %636 : vector<2x32xf32>
    %638 = vector.extract_strided_slice %619 {offsets = [0, 96], sizes = [2, 32], strides = [1, 1]} : vector<2x128xf32> to vector<2x32xf32>
    %cst_193 = arith.constant 5.000000e-01 : f32
    %639 = vector.broadcast %cst_193 : f32 to vector<2x32xf32>
    %640 = arith.mulf %639, %638 : vector<2x32xf32>
    %641 = math.tanh %640 : vector<2x32xf32>
    %cst_194 = arith.constant 5.000000e-01 : f32
    %642 = vector.broadcast %cst_194 : f32 to vector<2x32xf32>
    %643 = arith.mulf %642, %641 : vector<2x32xf32>
    %cst_195 = arith.constant 5.000000e-01 : f32
    %644 = vector.broadcast %cst_195 : f32 to vector<2x32xf32>
    %645 = arith.addf %643, %644 : vector<2x32xf32>
    %646 = arith.mulf %635, %602 : vector<2x32xf32>
    %647 = arith.mulf %627, %637 : vector<2x32xf32>
    %648 = arith.addf %646, %647 : vector<2x32xf32>
    %649 = math.tanh %648 : vector<2x32xf32>
    %650 = arith.mulf %645, %649 : vector<2x32xf32>
    %cst_196 = arith.constant dense<0.000000e+00> : vector<2x128xf32>
    %651 = tpu.matmul %650, %567, %cst_196 {dimension_numbers = #tpu.dot_dimension_numbers<[1], [0], [0], [1], [0, 0, 1, 1], [], []>} : vector<2x32xf32>, vector<32x128xf32>, vector<2x128xf32> -> vector<2x128xf32>
    %652 = arith.addf %651, %570 : vector<2x128xf32>
    %cst_197 = arith.constant dense<0xFF800000> : vector<2xf32>
    %653 = vector.multi_reduction <maximumf>, %652, %cst_197 [1] : vector<2x128xf32> to vector<2xf32>
    %654 = vector.shape_cast %653 : vector<2xf32> to vector<2x1xf32>
    %655 = vector.broadcast %654 : vector<2x1xf32> to vector<2x128xf32>
    %656 = arith.subf %652, %655 : vector<2x128xf32>
    %657 = math.exp %656 : vector<2x128xf32>
    %cst_198 = arith.constant dense<0.000000e+00> : vector<2xf32>
    %658 = vector.multi_reduction <add>, %657, %cst_198 [1] : vector<2x128xf32> to vector<2xf32>
    %659 = vector.shape_cast %658 : vector<2xf32> to vector<2x1xf32>
    %660 = math.log %659 : vector<2x1xf32>
    %661 = vector.broadcast %660 : vector<2x1xf32> to vector<2x128xf32>
    %662 = arith.subf %656, %661 : vector<2x128xf32>
    %663 = vector.extract_strided_slice %565 {offsets = [4, 0], sizes = [2, 128], strides = [1, 1]} : vector<16x128xf32> to vector<2x128xf32>
    %cst_199 = arith.constant dense<0.000000e+00> : vector<2x128xf32>
    %664 = tpu.matmul %650, %566, %cst_199 {dimension_numbers = #tpu.dot_dimension_numbers<[1], [0], [0], [1], [0, 0, 1, 1], [], []>} : vector<2x32xf32>, vector<32x128xf32>, vector<2x128xf32> -> vector<2x128xf32>
    %665 = arith.addf %663, %664 : vector<2x128xf32>
    %666 = vector.extract_strided_slice %665 {offsets = [0, 0], sizes = [2, 32], strides = [1, 1]} : vector<2x128xf32> to vector<2x32xf32>
    %cst_200 = arith.constant 5.000000e-01 : f32
    %667 = vector.broadcast %cst_200 : f32 to vector<2x32xf32>
    %668 = arith.mulf %667, %666 : vector<2x32xf32>
    %669 = math.tanh %668 : vector<2x32xf32>
    %cst_201 = arith.constant 5.000000e-01 : f32
    %670 = vector.broadcast %cst_201 : f32 to vector<2x32xf32>
    %671 = arith.mulf %670, %669 : vector<2x32xf32>
    %cst_202 = arith.constant 5.000000e-01 : f32
    %672 = vector.broadcast %cst_202 : f32 to vector<2x32xf32>
    %673 = arith.addf %671, %672 : vector<2x32xf32>
    %674 = vector.extract_strided_slice %665 {offsets = [0, 32], sizes = [2, 32], strides = [1, 1]} : vector<2x128xf32> to vector<2x32xf32>
    %cst_203 = arith.constant 5.000000e-01 : f32
    %675 = vector.broadcast %cst_203 : f32 to vector<2x32xf32>
    %676 = arith.mulf %675, %674 : vector<2x32xf32>
    %677 = math.tanh %676 : vector<2x32xf32>
    %cst_204 = arith.constant 5.000000e-01 : f32
    %678 = vector.broadcast %cst_204 : f32 to vector<2x32xf32>
    %679 = arith.mulf %678, %677 : vector<2x32xf32>
    %cst_205 = arith.constant 5.000000e-01 : f32
    %680 = vector.broadcast %cst_205 : f32 to vector<2x32xf32>
    %681 = arith.addf %679, %680 : vector<2x32xf32>
    %682 = vector.extract_strided_slice %665 {offsets = [0, 64], sizes = [2, 32], strides = [1, 1]} : vector<2x128xf32> to vector<2x32xf32>
    %683 = math.tanh %682 : vector<2x32xf32>
    %684 = vector.extract_strided_slice %665 {offsets = [0, 96], sizes = [2, 32], strides = [1, 1]} : vector<2x128xf32> to vector<2x32xf32>
    %cst_206 = arith.constant 5.000000e-01 : f32
    %685 = vector.broadcast %cst_206 : f32 to vector<2x32xf32>
    %686 = arith.mulf %685, %684 : vector<2x32xf32>
    %687 = math.tanh %686 : vector<2x32xf32>
    %cst_207 = arith.constant 5.000000e-01 : f32
    %688 = vector.broadcast %cst_207 : f32 to vector<2x32xf32>
    %689 = arith.mulf %688, %687 : vector<2x32xf32>
    %cst_208 = arith.constant 5.000000e-01 : f32
    %690 = vector.broadcast %cst_208 : f32 to vector<2x32xf32>
    %691 = arith.addf %689, %690 : vector<2x32xf32>
    %692 = arith.mulf %681, %648 : vector<2x32xf32>
    %693 = arith.mulf %673, %683 : vector<2x32xf32>
    %694 = arith.addf %692, %693 : vector<2x32xf32>
    %695 = math.tanh %694 : vector<2x32xf32>
    %696 = arith.mulf %691, %695 : vector<2x32xf32>
    %cst_209 = arith.constant dense<0.000000e+00> : vector<2x128xf32>
    %697 = tpu.matmul %696, %567, %cst_209 {dimension_numbers = #tpu.dot_dimension_numbers<[1], [0], [0], [1], [0, 0, 1, 1], [], []>} : vector<2x32xf32>, vector<32x128xf32>, vector<2x128xf32> -> vector<2x128xf32>
    %698 = arith.addf %697, %570 : vector<2x128xf32>
    %cst_210 = arith.constant dense<0xFF800000> : vector<2xf32>
    %699 = vector.multi_reduction <maximumf>, %698, %cst_210 [1] : vector<2x128xf32> to vector<2xf32>
    %700 = vector.shape_cast %699 : vector<2xf32> to vector<2x1xf32>
    %701 = vector.broadcast %700 : vector<2x1xf32> to vector<2x128xf32>
    %702 = arith.subf %698, %701 : vector<2x128xf32>
    %703 = math.exp %702 : vector<2x128xf32>
    %cst_211 = arith.constant dense<0.000000e+00> : vector<2xf32>
    %704 = vector.multi_reduction <add>, %703, %cst_211 [1] : vector<2x128xf32> to vector<2xf32>
    %705 = vector.shape_cast %704 : vector<2xf32> to vector<2x1xf32>
    %706 = math.log %705 : vector<2x1xf32>
    %707 = vector.broadcast %706 : vector<2x1xf32> to vector<2x128xf32>
    %708 = arith.subf %702, %707 : vector<2x128xf32>
    %709 = vector.extract_strided_slice %565 {offsets = [6, 0], sizes = [2, 128], strides = [1, 1]} : vector<16x128xf32> to vector<2x128xf32>
    %cst_212 = arith.constant dense<0.000000e+00> : vector<2x128xf32>
    %710 = tpu.matmul %696, %566, %cst_212 {dimension_numbers = #tpu.dot_dimension_numbers<[1], [0], [0], [1], [0, 0, 1, 1], [], []>} : vector<2x32xf32>, vector<32x128xf32>, vector<2x128xf32> -> vector<2x128xf32>
    %711 = arith.addf %709, %710 : vector<2x128xf32>
    %712 = vector.extract_strided_slice %711 {offsets = [0, 0], sizes = [2, 32], strides = [1, 1]} : vector<2x128xf32> to vector<2x32xf32>
    %cst_213 = arith.constant 5.000000e-01 : f32
    %713 = vector.broadcast %cst_213 : f32 to vector<2x32xf32>
    %714 = arith.mulf %713, %712 : vector<2x32xf32>
    %715 = math.tanh %714 : vector<2x32xf32>
    %cst_214 = arith.constant 5.000000e-01 : f32
    %716 = vector.broadcast %cst_214 : f32 to vector<2x32xf32>
    %717 = arith.mulf %716, %715 : vector<2x32xf32>
    %cst_215 = arith.constant 5.000000e-01 : f32
    %718 = vector.broadcast %cst_215 : f32 to vector<2x32xf32>
    %719 = arith.addf %717, %718 : vector<2x32xf32>
    %720 = vector.extract_strided_slice %711 {offsets = [0, 32], sizes = [2, 32], strides = [1, 1]} : vector<2x128xf32> to vector<2x32xf32>
    %cst_216 = arith.constant 5.000000e-01 : f32
    %721 = vector.broadcast %cst_216 : f32 to vector<2x32xf32>
    %722 = arith.mulf %721, %720 : vector<2x32xf32>
    %723 = math.tanh %722 : vector<2x32xf32>
    %cst_217 = arith.constant 5.000000e-01 : f32
    %724 = vector.broadcast %cst_217 : f32 to vector<2x32xf32>
    %725 = arith.mulf %724, %723 : vector<2x32xf32>
    %cst_218 = arith.constant 5.000000e-01 : f32
    %726 = vector.broadcast %cst_218 : f32 to vector<2x32xf32>
    %727 = arith.addf %725, %726 : vector<2x32xf32>
    %728 = vector.extract_strided_slice %711 {offsets = [0, 64], sizes = [2, 32], strides = [1, 1]} : vector<2x128xf32> to vector<2x32xf32>
    %729 = math.tanh %728 : vector<2x32xf32>
    %730 = vector.extract_strided_slice %711 {offsets = [0, 96], sizes = [2, 32], strides = [1, 1]} : vector<2x128xf32> to vector<2x32xf32>
    %cst_219 = arith.constant 5.000000e-01 : f32
    %731 = vector.broadcast %cst_219 : f32 to vector<2x32xf32>
    %732 = arith.mulf %731, %730 : vector<2x32xf32>
    %733 = math.tanh %732 : vector<2x32xf32>
    %cst_220 = arith.constant 5.000000e-01 : f32
    %734 = vector.broadcast %cst_220 : f32 to vector<2x32xf32>
    %735 = arith.mulf %734, %733 : vector<2x32xf32>
    %cst_221 = arith.constant 5.000000e-01 : f32
    %736 = vector.broadcast %cst_221 : f32 to vector<2x32xf32>
    %737 = arith.addf %735, %736 : vector<2x32xf32>
    %738 = arith.mulf %727, %694 : vector<2x32xf32>
    %739 = arith.mulf %719, %729 : vector<2x32xf32>
    %740 = arith.addf %738, %739 : vector<2x32xf32>
    %741 = math.tanh %740 : vector<2x32xf32>
    %742 = arith.mulf %737, %741 : vector<2x32xf32>
    %cst_222 = arith.constant dense<0.000000e+00> : vector<2x128xf32>
    %743 = tpu.matmul %742, %567, %cst_222 {dimension_numbers = #tpu.dot_dimension_numbers<[1], [0], [0], [1], [0, 0, 1, 1], [], []>} : vector<2x32xf32>, vector<32x128xf32>, vector<2x128xf32> -> vector<2x128xf32>
    %744 = arith.addf %743, %570 : vector<2x128xf32>
    %cst_223 = arith.constant dense<0xFF800000> : vector<2xf32>
    %745 = vector.multi_reduction <maximumf>, %744, %cst_223 [1] : vector<2x128xf32> to vector<2xf32>
    %746 = vector.shape_cast %745 : vector<2xf32> to vector<2x1xf32>
    %747 = vector.broadcast %746 : vector<2x1xf32> to vector<2x128xf32>
    %748 = arith.subf %744, %747 : vector<2x128xf32>
    %749 = math.exp %748 : vector<2x128xf32>
    %cst_224 = arith.constant dense<0.000000e+00> : vector<2xf32>
    %750 = vector.multi_reduction <add>, %749, %cst_224 [1] : vector<2x128xf32> to vector<2xf32>
    %751 = vector.shape_cast %750 : vector<2xf32> to vector<2x1xf32>
    %752 = math.log %751 : vector<2x1xf32>
    %753 = vector.broadcast %752 : vector<2x1xf32> to vector<2x128xf32>
    %754 = arith.subf %748, %753 : vector<2x128xf32>
    %755 = vector.extract_strided_slice %565 {offsets = [8, 0], sizes = [2, 128], strides = [1, 1]} : vector<16x128xf32> to vector<2x128xf32>
    %cst_225 = arith.constant dense<0.000000e+00> : vector<2x128xf32>
    %756 = tpu.matmul %742, %566, %cst_225 {dimension_numbers = #tpu.dot_dimension_numbers<[1], [0], [0], [1], [0, 0, 1, 1], [], []>} : vector<2x32xf32>, vector<32x128xf32>, vector<2x128xf32> -> vector<2x128xf32>
    %757 = arith.addf %755, %756 : vector<2x128xf32>
    %758 = vector.extract_strided_slice %757 {offsets = [0, 0], sizes = [2, 32], strides = [1, 1]} : vector<2x128xf32> to vector<2x32xf32>
    %cst_226 = arith.constant 5.000000e-01 : f32
    %759 = vector.broadcast %cst_226 : f32 to vector<2x32xf32>
    %760 = arith.mulf %759, %758 : vector<2x32xf32>
    %761 = math.tanh %760 : vector<2x32xf32>
    %cst_227 = arith.constant 5.000000e-01 : f32
    %762 = vector.broadcast %cst_227 : f32 to vector<2x32xf32>
    %763 = arith.mulf %762, %761 : vector<2x32xf32>
    %cst_228 = arith.constant 5.000000e-01 : f32
    %764 = vector.broadcast %cst_228 : f32 to vector<2x32xf32>
    %765 = arith.addf %763, %764 : vector<2x32xf32>
    %766 = vector.extract_strided_slice %757 {offsets = [0, 32], sizes = [2, 32], strides = [1, 1]} : vector<2x128xf32> to vector<2x32xf32>
    %cst_229 = arith.constant 5.000000e-01 : f32
    %767 = vector.broadcast %cst_229 : f32 to vector<2x32xf32>
    %768 = arith.mulf %767, %766 : vector<2x32xf32>
    %769 = math.tanh %768 : vector<2x32xf32>
    %cst_230 = arith.constant 5.000000e-01 : f32
    %770 = vector.broadcast %cst_230 : f32 to vector<2x32xf32>
    %771 = arith.mulf %770, %769 : vector<2x32xf32>
    %cst_231 = arith.constant 5.000000e-01 : f32
    %772 = vector.broadcast %cst_231 : f32 to vector<2x32xf32>
    %773 = arith.addf %771, %772 : vector<2x32xf32>
    %774 = vector.extract_strided_slice %757 {offsets = [0, 64], sizes = [2, 32], strides = [1, 1]} : vector<2x128xf32> to vector<2x32xf32>
    %775 = math.tanh %774 : vector<2x32xf32>
    %776 = vector.extract_strided_slice %757 {offsets = [0, 96], sizes = [2, 32], strides = [1, 1]} : vector<2x128xf32> to vector<2x32xf32>
    %cst_232 = arith.constant 5.000000e-01 : f32
    %777 = vector.broadcast %cst_232 : f32 to vector<2x32xf32>
    %778 = arith.mulf %777, %776 : vector<2x32xf32>
    %779 = math.tanh %778 : vector<2x32xf32>
    %cst_233 = arith.constant 5.000000e-01 : f32
    %780 = vector.broadcast %cst_233 : f32 to vector<2x32xf32>
    %781 = arith.mulf %780, %779 : vector<2x32xf32>
    %cst_234 = arith.constant 5.000000e-01 : f32
    %782 = vector.broadcast %cst_234 : f32 to vector<2x32xf32>
    %783 = arith.addf %781, %782 : vector<2x32xf32>
    %784 = arith.mulf %773, %740 : vector<2x32xf32>
    %785 = arith.mulf %765, %775 : vector<2x32xf32>
    %786 = arith.addf %784, %785 : vector<2x32xf32>
    %787 = math.tanh %786 : vector<2x32xf32>
    %788 = arith.mulf %783, %787 : vector<2x32xf32>
    %cst_235 = arith.constant dense<0.000000e+00> : vector<2x128xf32>
    %789 = tpu.matmul %788, %567, %cst_235 {dimension_numbers = #tpu.dot_dimension_numbers<[1], [0], [0], [1], [0, 0, 1, 1], [], []>} : vector<2x32xf32>, vector<32x128xf32>, vector<2x128xf32> -> vector<2x128xf32>
    %790 = arith.addf %789, %570 : vector<2x128xf32>
    %cst_236 = arith.constant dense<0xFF800000> : vector<2xf32>
    %791 = vector.multi_reduction <maximumf>, %790, %cst_236 [1] : vector<2x128xf32> to vector<2xf32>
    %792 = vector.shape_cast %791 : vector<2xf32> to vector<2x1xf32>
    %793 = vector.broadcast %792 : vector<2x1xf32> to vector<2x128xf32>
    %794 = arith.subf %790, %793 : vector<2x128xf32>
    %795 = math.exp %794 : vector<2x128xf32>
    %cst_237 = arith.constant dense<0.000000e+00> : vector<2xf32>
    %796 = vector.multi_reduction <add>, %795, %cst_237 [1] : vector<2x128xf32> to vector<2xf32>
    %797 = vector.shape_cast %796 : vector<2xf32> to vector<2x1xf32>
    %798 = math.log %797 : vector<2x1xf32>
    %799 = vector.broadcast %798 : vector<2x1xf32> to vector<2x128xf32>
    %800 = arith.subf %794, %799 : vector<2x128xf32>
    %801 = vector.extract_strided_slice %565 {offsets = [10, 0], sizes = [2, 128], strides = [1, 1]} : vector<16x128xf32> to vector<2x128xf32>
    %cst_238 = arith.constant dense<0.000000e+00> : vector<2x128xf32>
    %802 = tpu.matmul %788, %566, %cst_238 {dimension_numbers = #tpu.dot_dimension_numbers<[1], [0], [0], [1], [0, 0, 1, 1], [], []>} : vector<2x32xf32>, vector<32x128xf32>, vector<2x128xf32> -> vector<2x128xf32>
    %803 = arith.addf %801, %802 : vector<2x128xf32>
    %804 = vector.extract_strided_slice %803 {offsets = [0, 0], sizes = [2, 32], strides = [1, 1]} : vector<2x128xf32> to vector<2x32xf32>
    %cst_239 = arith.constant 5.000000e-01 : f32
    %805 = vector.broadcast %cst_239 : f32 to vector<2x32xf32>
    %806 = arith.mulf %805, %804 : vector<2x32xf32>
    %807 = math.tanh %806 : vector<2x32xf32>
    %cst_240 = arith.constant 5.000000e-01 : f32
    %808 = vector.broadcast %cst_240 : f32 to vector<2x32xf32>
    %809 = arith.mulf %808, %807 : vector<2x32xf32>
    %cst_241 = arith.constant 5.000000e-01 : f32
    %810 = vector.broadcast %cst_241 : f32 to vector<2x32xf32>
    %811 = arith.addf %809, %810 : vector<2x32xf32>
    %812 = vector.extract_strided_slice %803 {offsets = [0, 32], sizes = [2, 32], strides = [1, 1]} : vector<2x128xf32> to vector<2x32xf32>
    %cst_242 = arith.constant 5.000000e-01 : f32
    %813 = vector.broadcast %cst_242 : f32 to vector<2x32xf32>
    %814 = arith.mulf %813, %812 : vector<2x32xf32>
    %815 = math.tanh %814 : vector<2x32xf32>
    %cst_243 = arith.constant 5.000000e-01 : f32
    %816 = vector.broadcast %cst_243 : f32 to vector<2x32xf32>
    %817 = arith.mulf %816, %815 : vector<2x32xf32>
    %cst_244 = arith.constant 5.000000e-01 : f32
    %818 = vector.broadcast %cst_244 : f32 to vector<2x32xf32>
    %819 = arith.addf %817, %818 : vector<2x32xf32>
    %820 = vector.extract_strided_slice %803 {offsets = [0, 64], sizes = [2, 32], strides = [1, 1]} : vector<2x128xf32> to vector<2x32xf32>
    %821 = math.tanh %820 : vector<2x32xf32>
    %822 = vector.extract_strided_slice %803 {offsets = [0, 96], sizes = [2, 32], strides = [1, 1]} : vector<2x128xf32> to vector<2x32xf32>
    %cst_245 = arith.constant 5.000000e-01 : f32
    %823 = vector.broadcast %cst_245 : f32 to vector<2x32xf32>
    %824 = arith.mulf %823, %822 : vector<2x32xf32>
    %825 = math.tanh %824 : vector<2x32xf32>
    %cst_246 = arith.constant 5.000000e-01 : f32
    %826 = vector.broadcast %cst_246 : f32 to vector<2x32xf32>
    %827 = arith.mulf %826, %825 : vector<2x32xf32>
    %cst_247 = arith.constant 5.000000e-01 : f32
    %828 = vector.broadcast %cst_247 : f32 to vector<2x32xf32>
    %829 = arith.addf %827, %828 : vector<2x32xf32>
    %830 = arith.mulf %819, %786 : vector<2x32xf32>
    %831 = arith.mulf %811, %821 : vector<2x32xf32>
    %832 = arith.addf %830, %831 : vector<2x32xf32>
    %833 = math.tanh %832 : vector<2x32xf32>
    %834 = arith.mulf %829, %833 : vector<2x32xf32>
    %cst_248 = arith.constant dense<0.000000e+00> : vector<2x128xf32>
    %835 = tpu.matmul %834, %567, %cst_248 {dimension_numbers = #tpu.dot_dimension_numbers<[1], [0], [0], [1], [0, 0, 1, 1], [], []>} : vector<2x32xf32>, vector<32x128xf32>, vector<2x128xf32> -> vector<2x128xf32>
    %836 = arith.addf %835, %570 : vector<2x128xf32>
    %cst_249 = arith.constant dense<0xFF800000> : vector<2xf32>
    %837 = vector.multi_reduction <maximumf>, %836, %cst_249 [1] : vector<2x128xf32> to vector<2xf32>
    %838 = vector.shape_cast %837 : vector<2xf32> to vector<2x1xf32>
    %839 = vector.broadcast %838 : vector<2x1xf32> to vector<2x128xf32>
    %840 = arith.subf %836, %839 : vector<2x128xf32>
    %841 = math.exp %840 : vector<2x128xf32>
    %cst_250 = arith.constant dense<0.000000e+00> : vector<2xf32>
    %842 = vector.multi_reduction <add>, %841, %cst_250 [1] : vector<2x128xf32> to vector<2xf32>
    %843 = vector.shape_cast %842 : vector<2xf32> to vector<2x1xf32>
    %844 = math.log %843 : vector<2x1xf32>
    %845 = vector.broadcast %844 : vector<2x1xf32> to vector<2x128xf32>
    %846 = arith.subf %840, %845 : vector<2x128xf32>
    %847 = vector.extract_strided_slice %565 {offsets = [12, 0], sizes = [2, 128], strides = [1, 1]} : vector<16x128xf32> to vector<2x128xf32>
    %cst_251 = arith.constant dense<0.000000e+00> : vector<2x128xf32>
    %848 = tpu.matmul %834, %566, %cst_251 {dimension_numbers = #tpu.dot_dimension_numbers<[1], [0], [0], [1], [0, 0, 1, 1], [], []>} : vector<2x32xf32>, vector<32x128xf32>, vector<2x128xf32> -> vector<2x128xf32>
    %849 = arith.addf %847, %848 : vector<2x128xf32>
    %850 = vector.extract_strided_slice %849 {offsets = [0, 0], sizes = [2, 32], strides = [1, 1]} : vector<2x128xf32> to vector<2x32xf32>
    %cst_252 = arith.constant 5.000000e-01 : f32
    %851 = vector.broadcast %cst_252 : f32 to vector<2x32xf32>
    %852 = arith.mulf %851, %850 : vector<2x32xf32>
    %853 = math.tanh %852 : vector<2x32xf32>
    %cst_253 = arith.constant 5.000000e-01 : f32
    %854 = vector.broadcast %cst_253 : f32 to vector<2x32xf32>
    %855 = arith.mulf %854, %853 : vector<2x32xf32>
    %cst_254 = arith.constant 5.000000e-01 : f32
    %856 = vector.broadcast %cst_254 : f32 to vector<2x32xf32>
    %857 = arith.addf %855, %856 : vector<2x32xf32>
    %858 = vector.extract_strided_slice %849 {offsets = [0, 32], sizes = [2, 32], strides = [1, 1]} : vector<2x128xf32> to vector<2x32xf32>
    %cst_255 = arith.constant 5.000000e-01 : f32
    %859 = vector.broadcast %cst_255 : f32 to vector<2x32xf32>
    %860 = arith.mulf %859, %858 : vector<2x32xf32>
    %861 = math.tanh %860 : vector<2x32xf32>
    %cst_256 = arith.constant 5.000000e-01 : f32
    %862 = vector.broadcast %cst_256 : f32 to vector<2x32xf32>
    %863 = arith.mulf %862, %861 : vector<2x32xf32>
    %cst_257 = arith.constant 5.000000e-01 : f32
    %864 = vector.broadcast %cst_257 : f32 to vector<2x32xf32>
    %865 = arith.addf %863, %864 : vector<2x32xf32>
    %866 = vector.extract_strided_slice %849 {offsets = [0, 64], sizes = [2, 32], strides = [1, 1]} : vector<2x128xf32> to vector<2x32xf32>
    %867 = math.tanh %866 : vector<2x32xf32>
    %868 = vector.extract_strided_slice %849 {offsets = [0, 96], sizes = [2, 32], strides = [1, 1]} : vector<2x128xf32> to vector<2x32xf32>
    %cst_258 = arith.constant 5.000000e-01 : f32
    %869 = vector.broadcast %cst_258 : f32 to vector<2x32xf32>
    %870 = arith.mulf %869, %868 : vector<2x32xf32>
    %871 = math.tanh %870 : vector<2x32xf32>
    %cst_259 = arith.constant 5.000000e-01 : f32
    %872 = vector.broadcast %cst_259 : f32 to vector<2x32xf32>
    %873 = arith.mulf %872, %871 : vector<2x32xf32>
    %cst_260 = arith.constant 5.000000e-01 : f32
    %874 = vector.broadcast %cst_260 : f32 to vector<2x32xf32>
    %875 = arith.addf %873, %874 : vector<2x32xf32>
    %876 = arith.mulf %865, %832 : vector<2x32xf32>
    %877 = arith.mulf %857, %867 : vector<2x32xf32>
    %878 = arith.addf %876, %877 : vector<2x32xf32>
    %879 = math.tanh %878 : vector<2x32xf32>
    %880 = arith.mulf %875, %879 : vector<2x32xf32>
    %cst_261 = arith.constant dense<0.000000e+00> : vector<2x128xf32>
    %881 = tpu.matmul %880, %567, %cst_261 {dimension_numbers = #tpu.dot_dimension_numbers<[1], [0], [0], [1], [0, 0, 1, 1], [], []>} : vector<2x32xf32>, vector<32x128xf32>, vector<2x128xf32> -> vector<2x128xf32>
    %882 = arith.addf %881, %570 : vector<2x128xf32>
    %cst_262 = arith.constant dense<0xFF800000> : vector<2xf32>
    %883 = vector.multi_reduction <maximumf>, %882, %cst_262 [1] : vector<2x128xf32> to vector<2xf32>
    %884 = vector.shape_cast %883 : vector<2xf32> to vector<2x1xf32>
    %885 = vector.broadcast %884 : vector<2x1xf32> to vector<2x128xf32>
    %886 = arith.subf %882, %885 : vector<2x128xf32>
    %887 = math.exp %886 : vector<2x128xf32>
    %cst_263 = arith.constant dense<0.000000e+00> : vector<2xf32>
    %888 = vector.multi_reduction <add>, %887, %cst_263 [1] : vector<2x128xf32> to vector<2xf32>
    %889 = vector.shape_cast %888 : vector<2xf32> to vector<2x1xf32>
    %890 = math.log %889 : vector<2x1xf32>
    %891 = vector.broadcast %890 : vector<2x1xf32> to vector<2x128xf32>
    %892 = arith.subf %886, %891 : vector<2x128xf32>
    %893 = vector.extract_strided_slice %565 {offsets = [14, 0], sizes = [2, 128], strides = [1, 1]} : vector<16x128xf32> to vector<2x128xf32>
    %cst_264 = arith.constant dense<0.000000e+00> : vector<2x128xf32>
    %894 = tpu.matmul %880, %566, %cst_264 {dimension_numbers = #tpu.dot_dimension_numbers<[1], [0], [0], [1], [0, 0, 1, 1], [], []>} : vector<2x32xf32>, vector<32x128xf32>, vector<2x128xf32> -> vector<2x128xf32>
    %895 = arith.addf %893, %894 : vector<2x128xf32>
    %896 = vector.extract_strided_slice %895 {offsets = [0, 0], sizes = [2, 32], strides = [1, 1]} : vector<2x128xf32> to vector<2x32xf32>
    %cst_265 = arith.constant 5.000000e-01 : f32
    %897 = vector.broadcast %cst_265 : f32 to vector<2x32xf32>
    %898 = arith.mulf %897, %896 : vector<2x32xf32>
    %899 = math.tanh %898 : vector<2x32xf32>
    %cst_266 = arith.constant 5.000000e-01 : f32
    %900 = vector.broadcast %cst_266 : f32 to vector<2x32xf32>
    %901 = arith.mulf %900, %899 : vector<2x32xf32>
    %cst_267 = arith.constant 5.000000e-01 : f32
    %902 = vector.broadcast %cst_267 : f32 to vector<2x32xf32>
    %903 = arith.addf %901, %902 : vector<2x32xf32>
    %904 = vector.extract_strided_slice %895 {offsets = [0, 32], sizes = [2, 32], strides = [1, 1]} : vector<2x128xf32> to vector<2x32xf32>
    %cst_268 = arith.constant 5.000000e-01 : f32
    %905 = vector.broadcast %cst_268 : f32 to vector<2x32xf32>
    %906 = arith.mulf %905, %904 : vector<2x32xf32>
    %907 = math.tanh %906 : vector<2x32xf32>
    %cst_269 = arith.constant 5.000000e-01 : f32
    %908 = vector.broadcast %cst_269 : f32 to vector<2x32xf32>
    %909 = arith.mulf %908, %907 : vector<2x32xf32>
    %cst_270 = arith.constant 5.000000e-01 : f32
    %910 = vector.broadcast %cst_270 : f32 to vector<2x32xf32>
    %911 = arith.addf %909, %910 : vector<2x32xf32>
    %912 = vector.extract_strided_slice %895 {offsets = [0, 64], sizes = [2, 32], strides = [1, 1]} : vector<2x128xf32> to vector<2x32xf32>
    %913 = math.tanh %912 : vector<2x32xf32>
    %914 = vector.extract_strided_slice %895 {offsets = [0, 96], sizes = [2, 32], strides = [1, 1]} : vector<2x128xf32> to vector<2x32xf32>
    %cst_271 = arith.constant 5.000000e-01 : f32
    %915 = vector.broadcast %cst_271 : f32 to vector<2x32xf32>
    %916 = arith.mulf %915, %914 : vector<2x32xf32>
    %917 = math.tanh %916 : vector<2x32xf32>
    %cst_272 = arith.constant 5.000000e-01 : f32
    %918 = vector.broadcast %cst_272 : f32 to vector<2x32xf32>
    %919 = arith.mulf %918, %917 : vector<2x32xf32>
    %cst_273 = arith.constant 5.000000e-01 : f32
    %920 = vector.broadcast %cst_273 : f32 to vector<2x32xf32>
    %921 = arith.addf %919, %920 : vector<2x32xf32>
    %922 = arith.mulf %911, %878 : vector<2x32xf32>
    %923 = arith.mulf %903, %913 : vector<2x32xf32>
    %924 = arith.addf %922, %923 : vector<2x32xf32>
    %925 = math.tanh %924 : vector<2x32xf32>
    %926 = arith.mulf %921, %925 : vector<2x32xf32>
    %cst_274 = arith.constant dense<0.000000e+00> : vector<2x128xf32>
    %927 = tpu.matmul %926, %567, %cst_274 {dimension_numbers = #tpu.dot_dimension_numbers<[1], [0], [0], [1], [0, 0, 1, 1], [], []>} : vector<2x32xf32>, vector<32x128xf32>, vector<2x128xf32> -> vector<2x128xf32>
    %928 = arith.addf %927, %570 : vector<2x128xf32>
    %cst_275 = arith.constant dense<0xFF800000> : vector<2xf32>
    %929 = vector.multi_reduction <maximumf>, %928, %cst_275 [1] : vector<2x128xf32> to vector<2xf32>
    %930 = vector.shape_cast %929 : vector<2xf32> to vector<2x1xf32>
    %931 = vector.broadcast %930 : vector<2x1xf32> to vector<2x128xf32>
    %932 = arith.subf %928, %931 : vector<2x128xf32>
    %933 = math.exp %932 : vector<2x128xf32>
    %cst_276 = arith.constant dense<0.000000e+00> : vector<2xf32>
    %934 = vector.multi_reduction <add>, %933, %cst_276 [1] : vector<2x128xf32> to vector<2xf32>
    %935 = vector.shape_cast %934 : vector<2xf32> to vector<2x1xf32>
    %936 = math.log %935 : vector<2x1xf32>
    %937 = vector.broadcast %936 : vector<2x1xf32> to vector<2x128xf32>
    %938 = arith.subf %932, %937 : vector<2x128xf32>
    %939 = tpu.concatenate %616, %662, %708, %754, %800, %846, %892, %938 in 0 : vector<2x128xf32>, vector<2x128xf32>, vector<2x128xf32>, vector<2x128xf32>, vector<2x128xf32>, vector<2x128xf32>, vector<2x128xf32>, vector<2x128xf32> -> vector<16x128xf32>
    %c0_277 = arith.constant 0 : index
    %c0_278 = arith.constant 0 : index
    %940 = vector.load %arg23[%c0_277, %c0_278] : memref<16x128xf32, #tpu.memory_space<vmem>>, vector<16x128xf32>
    tpu.vector_store %arg23[%c0_277, %c0_278], %939 {strides = array<i32>} : memref<16x128xf32, #tpu.memory_space<vmem>>, vector<16x128xf32>,
    return
  }
  func.func @transform_0(%arg0: i32) -> (i32, i32) {
    %c0_i32 = arith.constant 0 : i32
    %c0_i32_0 = arith.constant 0 : i32
    %c0_i32_1 = arith.constant 0 : i32
    return %c0_i32, %c0_i32_0 : i32, i32
  }
  func.func @transform_1(%arg0: i32) -> (i32, i32) {
    %c0_i32 = arith.constant 0 : i32
    %c0_i32_0 = arith.constant 0 : i32
    %c0_i32_1 = arith.constant 0 : i32
    return %c0_i32, %c0_i32_0 : i32, i32
  }
  func.func @transform_2(%arg0: i32) -> (i32, i32) {
    %c0_i32 = arith.constant 0 : i32
    %c0_i32_0 = arith.constant 0 : i32
    %c0_i32_1 = arith.constant 0 : i32
    return %c0_i32, %c0_i32_0 : i32, i32
  }
  func.func @transform_3(%arg0: i32) -> (i32, i32) {
    %c0_i32 = arith.constant 0 : i32
    %c0_i32_0 = arith.constant 0 : i32
    %c0_i32_1 = arith.constant 0 : i32
    return %c0_i32, %c0_i32_0 : i32, i32
  }
  func.func @transform_4(%arg0: i32) -> (i32, i32) {
    %c0_i32 = arith.constant 0 : i32
    %c0_i32_0 = arith.constant 0 : i32
    %c0_i32_1 = arith.constant 0 : i32
    return %c0_i32, %c0_i32_0 : i32, i32
  }
  func.func @transform_5(%arg0: i32) -> (i32, i32) {
    %c0_i32 = arith.constant 0 : i32
    %c0_i32_0 = arith.constant 0 : i32
    %c0_i32_1 = arith.constant 0 : i32
    return %c0_i32, %c0_i32_0 : i32, i32
  }
  func.func @transform_6(%arg0: i32) -> (i32, i32) {
    %c0_i32 = arith.constant 0 : i32
    %c0_i32_0 = arith.constant 0 : i32
    %c0_i32_1 = arith.constant 0 : i32
    return %c0_i32, %c0_i32_0 : i32, i32
  }
  func.func @transform_7(%arg0: i32) -> (i32, i32) {
    %c0_i32 = arith.constant 0 : i32
    %c0_i32_0 = arith.constant 0 : i32
    %c0_i32_1 = arith.constant 0 : i32
    return %c0_i32, %c0_i32_0 : i32, i32
  }
  func.func @transform_8(%arg0: i32) -> (i32, i32) {
    %c0_i32 = arith.constant 0 : i32
    %c0_i32_0 = arith.constant 0 : i32
    %c0_i32_1 = arith.constant 0 : i32
    return %c0_i32, %c0_i32_0 : i32, i32
  }
  func.func @transform_9(%arg0: i32) -> (i32, i32) {
    %c0_i32 = arith.constant 0 : i32
    %c0_i32_0 = arith.constant 0 : i32
    %c0_i32_1 = arith.constant 0 : i32
    return %c0_i32, %c0_i32_0 : i32, i32
  }
  func.func @transform_10(%arg0: i32) -> (i32, i32) {
    %c0_i32 = arith.constant 0 : i32
    %c0_i32_0 = arith.constant 0 : i32
    %c0_i32_1 = arith.constant 0 : i32
    return %c0_i32, %c0_i32_0 : i32, i32
  }
  func.func @transform_11(%arg0: i32) -> (i32, i32) {
    %c0_i32 = arith.constant 0 : i32
    %c0_i32_0 = arith.constant 0 : i32
    %c0_i32_1 = arith.constant 0 : i32
    return %c0_i32, %c0_i32_0 : i32, i32
  }
  func.func @transform_12(%arg0: i32) -> (i32, i32) {
    %c0_i32 = arith.constant 0 : i32
    %c0_i32_0 = arith.constant 0 : i32
    %c0_i32_1 = arith.constant 0 : i32
    return %c0_i32, %c0_i32_0 : i32, i32
  }
  func.func @transform_13(%arg0: i32) -> (i32, i32) {
    %c0_i32 = arith.constant 0 : i32
    %c0_i32_0 = arith.constant 0 : i32
    %c0_i32_1 = arith.constant 0 : i32
    return %c0_i32, %c0_i32_0 : i32, i32
  }
  func.func @transform_14(%arg0: i32) -> (i32, i32) {
    %c0_i32 = arith.constant 0 : i32
    %c0_i32_0 = arith.constant 0 : i32
    %c0_i32_1 = arith.constant 0 : i32
    return %c0_i32, %c0_i32_0 : i32, i32
  }
  func.func @transform_15(%arg0: i32) -> (i32, i32) {
    %c0_i32 = arith.constant 0 : i32
    %c0_i32_0 = arith.constant 0 : i32
    %c0_i32_1 = arith.constant 0 : i32
    return %c0_i32, %c0_i32_0 : i32, i32
  }
  func.func @transform_16(%arg0: i32) -> (i32, i32) {
    %c0_i32 = arith.constant 0 : i32
    %c0_i32_0 = arith.constant 0 : i32
    %c0_i32_1 = arith.constant 0 : i32
    return %c0_i32, %c0_i32_0 : i32, i32
  }
  func.func @transform_17(%arg0: i32) -> (i32, i32) {
    %c0_i32 = arith.constant 0 : i32
    %c0_i32_0 = arith.constant 0 : i32
    %c0_i32_1 = arith.constant 0 : i32
    return %c0_i32, %c0_i32_0 : i32, i32
  }
  func.func @transform_18(%arg0: i32) -> (i32, i32) {
    %c0_i32 = arith.constant 0 : i32
    %c0_i32_0 = arith.constant 0 : i32
    %c0_i32_1 = arith.constant 0 : i32
    return %c0_i32, %c0_i32_0 : i32, i32
  }
  func.func @transform_19(%arg0: i32) -> (i32, i32) {
    %c0_i32 = arith.constant 0 : i32
    %c0_i32_0 = arith.constant 0 : i32
    %c0_i32_1 = arith.constant 0 : i32
    return %c0_i32, %c0_i32_0 : i32, i32
  }
  func.func @transform_20(%arg0: i32) -> (i32, i32) {
    %c0_i32 = arith.constant 0 : i32
    %c0_i32_0 = arith.constant 0 : i32
    %c0_i32_1 = arith.constant 0 : i32
    return %c0_i32, %c0_i32_0 : i32, i32
  }
  func.func @transform_21(%arg0: i32) -> (i32, i32) {
    %c0_i32 = arith.constant 0 : i32
    %c0_i32_0 = arith.constant 0 : i32
    %c0_i32_1 = arith.constant 0 : i32
    return %c0_i32, %c0_i32_0 : i32, i32
  }
  func.func @transform_22(%arg0: i32) -> (i32, i32) {
    %c0_i32 = arith.constant 0 : i32
    %c0_i32_0 = arith.constant 0 : i32
    %c0_i32_1 = arith.constant 0 : i32
    return %c0_i32, %c0_i32_0 : i32, i32
  }
  func.func @transform_23(%arg0: i32) -> (i32, i32) {
    %c0_i32 = arith.constant 0 : i32
    %c0_i32_0 = arith.constant 0 : i32
    %c0_i32_1 = arith.constant 0 : i32
    return %c0_i32, %c0_i32_0 : i32, i32
  }
}

</mosaic_0001>

<bundles_post_ra>
// kernel: tpu_custom_call.1
= control target key start
LH: loop header
LB: loop body
LE: loop exit
PB: predicated region body
PF: predicated region fallthrough
CT: control target
= control target key end

     0   :  { %s6027_s0 = inlined_call_operand.vmem [shape: s32[16,1], index: 0, kind: input, shape index: {}]   ;;  %s6028_s1 = inlined_call_operand.vmem [shape: s32[16,1], index: 1, kind: input, shape index: {}]   ;;  %s6029_s2 = inlined_call_operand.vmem [shape: s32[2,1], index: 2, kind: input, shape index: {}]   ;;  %s6030_s3 = inlined_call_operand.vmem [shape: f32[50,32], index: 3, kind: input, shape index: {}]   ;;  %s6031_s4 = inlined_call_operand.hbm [shape: f32[12,16], index: 4, kind: input, shape index: {}]   ;;  %s6032_s5 = inlined_call_operand.vmem [shape: f32[32,128], index: 5, kind: input, shape index: {}]   ;;  %s6033_s6 = inlined_call_operand.vmem [shape: f32[32,128], index: 6, kind: input, shape index: {}]   ;;  %s6034_s7 = inlined_call_operand.vmem [shape: f32[1,128], index: 7, kind: input, shape index: {}]   ;;  %s6035_s8 = inlined_call_operand.vmem [shape: f32[32,32], index: 8, kind: input, shape index: {}]   ;;  %s6036_s9 = inlined_call_operand.hbm [shape: f32[32,128], index: 9, kind: input, shape index: {}]   ;;  %s6037_s10 = inlined_call_operand.hbm [shape: f32[32,128], index: 10, kind: input, shape index: {}]   ;;  %s6038_s11 = inlined_call_operand.hbm [shape: f32[1,128], index: 11, kind: input, shape index: {}]   ;;  %s6039_s12 = inlined_call_operand.hbm [shape: f32[32,32], index: 12, kind: input, shape index: {}]   ;;  %s6040_s13 = inlined_call_operand.hbm [shape: f32[1,32], index: 13, kind: input, shape index: {}]   ;;  %s6041_s14 = inlined_call_operand.hbm [shape: f32[32,32], index: 14, kind: input, shape index: {}]   ;;  %s6042_s15 = inlined_call_operand.hbm [shape: f32[1,32], index: 15, kind: input, shape index: {}]   ;;  %s6043_s16 = inlined_call_operand.hbm [shape: f32[16,128], index: 16, kind: input, shape index: {}]   ;;  %s6044_s17 = inlined_call_operand.hbm [shape: f32[32,128], index: 17, kind: input, shape index: {}]   ;;  %s6045_s18 = inlined_call_operand.hbm [shape: f32[32,128], index: 18, kind: input, shape index: {}]   ;;  %s6046_s19 = inlined_call_operand.hbm [shape: f32[1,128], index: 19, kind: input, shape index: {}]   ;;  %s6047_s20 = inlined_call_operand.vmem [shape: f32[32,128], index: 20, kind: input, shape index: {}]   ;;  %s6048_s21 = inlined_call_operand.vmem [shape: f32[1,128], index: 21, kind: input, shape index: {}]   ;;  %s6049_s22 = inlined_call_operand.hbm [shape: f32[16,128], index: 22, kind: output, shape index: {0}]   ;;  %s6050_s23 = inlined_call_operand.hbm [shape: f32[2,128], index: 23, kind: output, shape index: {1}]  }
   0x1   :  { %6061 = sst [smem:[#allocation34_spill]] %s6027_s0 }
   0x2   :  { %6062 = sst [smem:[#allocation35_spill]] %s6028_s1 }
   0x3   :  { %6063 = sst [smem:[#allocation36_spill]] %s6029_s2 }
   0x4   :  { %6064 = sst [smem:[#allocation37_spill]] %s6030_s3 }
   0x5   :  { %6065 = sst [smem:[#allocation38_spill]] %s6031_s4 }
   0x6   :  { %6066 = sst [smem:[#allocation39_spill]] %s6032_s5 }
   0x7   :  { %6067 = sst [smem:[#allocation40_spill]] %s6033_s6 }
   0x8   :  { %6068 = sst [smem:[#allocation41_spill]] %s6034_s7 }
   0x9   :  { %29 = vsyncpa [#allocation3], 0 }
   0xa   :  { %30 = vsyncpa [#allocation6], 0 }
   0xb   :  { %31 = vsyncpa [#allocation9], 0 }
   0xc   :  { %32 = vsyncpa [#allocation12], 0 }
   0xd   :  { %33 = vsyncpa [#allocation15], 0 }
   0xe   :  { %34 = vsyncpa [#allocation18], 0 }
   0xf   :  { %35 = vsyncpa [#allocation21], 0 }
  0x10   :  { %36 = vsyncpa [#allocation4], 0 }
  0x11   :  { %37 = vsyncpa [#allocation24], 0  ;;  %s4966_s4 = smov [#allocation5]   ;;  %s4967_s24 = smov [#allocation8]  }
  0x12   :  { %s71_s30 = sshll.u32 %s4966_s4, 4  ;;  %s96_s25 = sshll.u32 %s4967_s24, 4  ;;  %s72_s30 = int_to_ptr.vmem [resolvable:$true] %s71_s30  ;;  %s97_s25 = int_to_ptr.vmem [resolvable:$true] %s96_s25 }
  0x13   :  { %s4676_s5 = scalar_lea.vmem %s72_s30, 512  ;;  %p4681_p1 = scmp.lt.s32.totalorder %s72_s30, %s72_s30 }
  0x14   :  { %p4677_p0 = scmp.ne.s32.totalorder %s72_s30, %s4676_s5  ;;  %p4682_p2 = scmp.lt.s32.totalorder %s4676_s5, %s4676_s5 }
  0x16   :  { %p4683_p3 = por %p4682_p2, %p4681_p1 }
  0x18   :  { %p4684_p4 = pnand %p4683_p3, %p4677_p0 }
  0x1a   :  { %4687 = shalt.err (!%p4684_p4)
}
  0x1b   :  { %s4968_s1 = smov 128   ;;  %s4969_s26 = smov 8  }
  0x1c   :  { %77 = dma.hbm_to_vmem [thread:$0]  %s6036_s9, 512, %s72_s30, [#allocation6], %s4968_s1, %s4968_s1, %s4969_s26  }
  0x1d   :  { %s4696_s27 = scalar_lea.vmem %s97_s25, 16  ;;  %s4700_s7 = scalar_lea.vmem %s97_s25, 32 }
  0x1e   :  { %p4697_p5 = scmp.ne.s32.totalorder %s97_s25, %s4696_s27  ;;  %p4701_p6 = scmp.lt.s32.totalorder %s97_s25, %s97_s25 }
  0x1f   :  { %p4702_p7 = scmp.lt.s32.totalorder %s4700_s7, %s4696_s27 }
  0x21   :  { %p4703_p8 = por %p4702_p7, %p4701_p6 }
  0x23   :  { %p4704_p9 = pnand %p4703_p8, %p4697_p5 }
  0x25   :  { %4707 = shalt.err (!%p4704_p9)
}
  0x26   :  { %99 = dma.hbm_to_vmem [thread:$0]  %s6038_s11, 16, %s97_s25, [#allocation9]  }
  0x27   :  { %s4970_s3 = smov [#allocation11]   ;;  %s4971_s4 = smov [#allocation14]  }
  0x28   :  { %s118_s0 = sshll.u32 %s4970_s3, 4  ;;  %s140_s24 = sshll.u32 %s4971_s4, 4  ;;  %s119_s0 = int_to_ptr.vmem [resolvable:$true] %s118_s0  ;;  %s141_s24 = int_to_ptr.vmem [resolvable:$true] %s140_s24 }
  0x29   :  { %s4716_s5 = scalar_lea.vmem %s119_s0, 16  ;;  %s4720_s9 = scalar_lea.vmem %s119_s0, 32 }
  0x2a   :  { %p4717_p10 = scmp.ne.s32.totalorder %s119_s0, %s4716_s5  ;;  %p4721_p11 = scmp.lt.s32.totalorder %s119_s0, %s119_s0 }
  0x2b   :  { %p4722_p12 = scmp.lt.s32.totalorder %s4720_s9, %s4716_s5 }
  0x2d   :  { %p4723_p13 = por %p4722_p12, %p4721_p11 }
  0x2f   :  { %p4724_p0 = pnand %p4723_p13, %p4717_p10 }
  0x31   :  { %4727 = shalt.err (!%p4724_p0)
}
  0x32   :  { %121 = dma.hbm_to_vmem [thread:$0]  %s6040_s13, 16, %s119_s0, [#allocation12]  }
  0x33   :  { %s4736_s6 = scalar_lea.vmem %s141_s24, 16  ;;  %s4740_s11 = scalar_lea.vmem %s141_s24, 32 }
  0x34   :  { %p4737_p1 = scmp.ne.s32.totalorder %s141_s24, %s4736_s6  ;;  %p4741_p2 = scmp.lt.s32.totalorder %s141_s24, %s141_s24 }
  0x35   :  { %p4742_p3 = scmp.lt.s32.totalorder %s4740_s11, %s4736_s6 }
  0x37   :  { %p4743_p4 = por %p4742_p3, %p4741_p2 }
  0x39   :  { %p4744_p5 = pnand %p4743_p4, %p4737_p1 }
  0x3b   :  { %4747 = shalt.err (!%p4744_p5)
}
  0x3c   :  { %143 = dma.hbm_to_vmem [thread:$0]  %s6042_s15, 16, %s141_s24, [#allocation15]  }
  0x3d   :  { %s4972_s7 = smov [#allocation17]   ;;  %s4973_s29 = smov [#allocation2]  }
  0x3e   :  { %s161_s28 = sshll.u32 %s4972_s7, 4  ;;  %s51_s3 = sshll.u32 %s4973_s29, 4  ;;  %s162_s28 = int_to_ptr.vmem [resolvable:$true] %s161_s28  ;;  %s52_s3 = int_to_ptr.vmem [resolvable:$true] %s51_s3 }
  0x3f   :  { %s4756_s4 = scalar_lea.vmem %s162_s28, 512  ;;  %p4761_p7 = scmp.lt.s32.totalorder %s162_s28, %s162_s28 }
  0x40   :  { %p4757_p6 = scmp.ne.s32.totalorder %s162_s28, %s4756_s4  ;;  %p4762_p8 = scmp.lt.s32.totalorder %s4756_s4, %s4756_s4 }
  0x42   :  { %p4763_p9 = por %p4762_p8, %p4761_p7 }
  0x44   :  { %p4764_p10 = pnand %p4763_p9, %p4757_p6 }
  0x46   :  { %4767 = shalt.err (!%p4764_p10)
}
  0x47   :  { %167 = dma.hbm_to_vmem [thread:$0]  %s6044_s17, 512, %s162_s28, [#allocation18], %s4968_s1, %s4968_s1, %s4969_s26  }
  0x48   :  { %s4776_s15 = scalar_lea.vmem %s52_s3, 256  ;;  %p4781_p12 = scmp.lt.s32.totalorder %s52_s3, %s52_s3 }
  0x49   :  { %p4777_p11 = scmp.ne.s32.totalorder %s52_s3, %s4776_s15  ;;  %p4782_p13 = scmp.lt.s32.totalorder %s4776_s15, %s4776_s15 }
  0x4b   :  { %p4783_p0 = por %p4782_p13, %p4781_p12 }
  0x4d   :  { %p4784_p1 = pnand %p4783_p0, %p4777_p11 }
  0x4f   :  { %4787 = shalt.err (!%p4784_p1)
}
  0x50   :  { %s6069_s9 = sld [smem:[#allocation38_spill]]  ;;  %s4974_s30 = smov [#allocation7]  }
  0x51   :  { %s83_s2 = sshll.u32 %s4974_s30, 4  ;;  %s4975_s6 = smov [#allocation10]   ;;  %s84_s2 = int_to_ptr.vmem [resolvable:$true] %s83_s2 }
  0x52   :  { %s105_s11 = sshll.u32 %s4975_s6, 4  ;;  %s4796_s17 = scalar_lea.vmem %s84_s2, 512  ;;  %s106_s11 = int_to_ptr.vmem [resolvable:$true] %s105_s11 }
  0x53   :  { %p4797_p2 = scmp.ne.s32.totalorder %s84_s2, %s4796_s17  ;;  %p4801_p3 = scmp.lt.s32.totalorder %s84_s2, %s84_s2 }
  0x54   :  { %p4802_p4 = scmp.lt.s32.totalorder %s4796_s17, %s4796_s17 }
  0x56   :  { %57 = dma.hbm_to_vmem [thread:$0]  %s6069_s9, 256, %s52_s3, [#allocation3], %s4968_s1, %s4968_s1, %s4969_s26  }
  0x57   :  { %p4803_p5 = por %p4802_p4, %p4801_p3 }
  0x59   :  { %p4804_p6 = pnand %p4803_p5, %p4797_p2 }
  0x5b   :  { %4807 = shalt.err (!%p4804_p6)
}
  0x5c   :  { %89 = dma.hbm_to_vmem [thread:$0]  %s6037_s10, 512, %s84_s2, [#allocation6], %s4968_s1, %s4968_s1, %s4969_s26  }
  0x5d   :  { %s4816_s7 = scalar_lea.vmem %s106_s11, 512  ;;  %p4821_p8 = scmp.lt.s32.totalorder %s106_s11, %s106_s11 }
  0x5e   :  { %p4817_p7 = scmp.ne.s32.totalorder %s106_s11, %s4816_s7  ;;  %p4822_p9 = scmp.lt.s32.totalorder %s4816_s7, %s4816_s7 }
  0x60   :  { %p4823_p10 = por %p4822_p9, %p4821_p8 }
  0x62   :  { %p4824_p11 = pnand %p4823_p10, %p4817_p7 }
  0x64   :  { %4827 = shalt.err (!%p4824_p11)
}
  0x65   :  { %111 = dma.hbm_to_vmem [thread:$0]  %s6039_s12, 512, %s106_s11, [#allocation9], %s4968_s1, %s4968_s1, %s4969_s26  }
  0x66   :  { %s4976_s3 = smov [#allocation13]   ;;  %s4977_s13 = smov [#allocation16]  }
  0x67   :  { %s127_s4 = sshll.u32 %s4976_s3, 4  ;;  %s149_s0 = sshll.u32 %s4977_s13, 4  ;;  %s128_s4 = int_to_ptr.vmem [resolvable:$true] %s127_s4  ;;  %s150_s0 = int_to_ptr.vmem [resolvable:$true] %s149_s0 }
  0x68   :  { %s4836_s10 = scalar_lea.vmem %s128_s4, 512  ;;  %p4841_p13 = scmp.lt.s32.totalorder %s128_s4, %s128_s4 }
  0x69   :  { %p4837_p12 = scmp.ne.s32.totalorder %s128_s4, %s4836_s10  ;;  %p4842_p0 = scmp.lt.s32.totalorder %s4836_s10, %s4836_s10 }
  0x6b   :  { %p4843_p1 = por %p4842_p0, %p4841_p13 }
  0x6d   :  { %p4844_p2 = pnand %p4843_p1, %p4837_p12 }
  0x6f   :  { %4847 = shalt.err (!%p4844_p2)
}
  0x70   :  { %133 = dma.hbm_to_vmem [thread:$0]  %s6041_s14, 512, %s128_s4, [#allocation12], %s4968_s1, %s4968_s1, %s4969_s26  }
  0x71   :  { %s4856_s12 = scalar_lea.vmem %s150_s0, 256  ;;  %p4861_p4 = scmp.lt.s32.totalorder %s150_s0, %s150_s0 }
  0x72   :  { %p4857_p3 = scmp.ne.s32.totalorder %s150_s0, %s4856_s12  ;;  %p4862_p5 = scmp.lt.s32.totalorder %s4856_s12, %s4856_s12 }
  0x74   :  { %p4863_p6 = por %p4862_p5, %p4861_p4 }
  0x76   :  { %p4864_p7 = pnand %p4863_p6, %p4857_p3 }
  0x78   :  { %4867 = shalt.err (!%p4864_p7)
}
  0x79   :  { %155 = dma.hbm_to_vmem [thread:$0]  %s6043_s16, 256, %s150_s0, [#allocation15], %s4968_s1, %s4968_s1, %s4969_s26  }
  0x7a   :  { %s4978_s30 = smov [#allocation19]   ;;  %s4979_s6 = smov [#allocation20]  }
  0x7b   :  { %s173_s2 = sshll.u32 %s4978_s30, 4  ;;  %s186_s11 = sshll.u32 %s4979_s6, 4  ;;  %s174_s2 = int_to_ptr.vmem [resolvable:$true] %s173_s2  ;;  %s187_s11 = int_to_ptr.vmem [resolvable:$true] %s186_s11 }
  0x7c   :  { %s4876_s14 = scalar_lea.vmem %s174_s2, 512  ;;  %p4881_p9 = scmp.lt.s32.totalorder %s174_s2, %s174_s2 }
  0x7d   :  { %p4877_p8 = scmp.ne.s32.totalorder %s174_s2, %s4876_s14  ;;  %p4882_p10 = scmp.lt.s32.totalorder %s4876_s14, %s4876_s14 }
  0x7f   :  { %p4883_p11 = por %p4882_p10, %p4881_p9 }
  0x81   :  { %p4884_p12 = pnand %p4883_p11, %p4877_p8 }
  0x83   :  { %4887 = shalt.err (!%p4884_p12)
}
  0x84   :  { %179 = dma.hbm_to_vmem [thread:$0]  %s6045_s18, 512, %s174_s2, [#allocation18], %s4968_s1, %s4968_s1, %s4969_s26  }
  0x85   :  { %s4896_s16 = scalar_lea.vmem %s187_s11, 16  ;;  %s4900_s27 = scalar_lea.vmem %s187_s11, 32 }
  0x86   :  { %p4897_p13 = scmp.ne.s32.totalorder %s187_s11, %s4896_s16  ;;  %p4901_p0 = scmp.lt.s32.totalorder %s187_s11, %s187_s11 }
  0x87   :  { %p4902_p1 = scmp.lt.s32.totalorder %s4900_s27, %s4896_s16 }
  0x89   :  { %p4903_p2 = por %p4902_p1, %p4901_p0 }
  0x8b   :  { %p4904_p3 = pnand %p4903_p2, %p4897_p13 }
  0x8d   :  { %4907 = shalt.err (!%p4904_p3)
}
  0x8e   :  { %189 = dma.hbm_to_vmem [thread:$0]  %s6046_s19, 16, %s187_s11, [#allocation21]  }
  0x8f   :  { %4948 = dma.done.wait [#allocation3], 256  }
  0x90   :  { %4949 = vsyncadd [#allocation3], 4294967040 }
  0x91   :  { %4950 = dma.done.wait [#allocation6], 1024  }
  0x92   :  { %4951 = vsyncadd [#allocation6], 4294966272 }
  0x93   :  { %4952 = dma.done.wait [#allocation9], 528  }
  0x94   :  { %4953 = vsyncadd [#allocation9], 4294966768 }
  0x95   :  { %4954 = dma.done.wait [#allocation12], 528  }
  0x96   :  { %4955 = vsyncadd [#allocation12], 4294966768 }
  0x97   :  { %4956 = dma.done.wait [#allocation15], 272  }
  0x98   :  { %4957 = vsyncadd [#allocation15], 4294967024 }
  0x99   :  { %4958 = dma.done.wait [#allocation18], 1024  }
  0x9a   :  { %4959 = vsyncadd [#allocation18], 4294966272 }
  0x9b   :  { %4960 = dma.done.wait [#allocation21], 16  }
  0x9c   :  { %4961 = vsyncadd [#allocation21], 4294967280  ;;  %v4980_v0 = vmov 0   ;;  %vm6057_vm0 = vcmask 1041408   ;;  %s6070_s29 = sld [smem:[#allocation34_spill]]  ;;  %vm6056_vm1 = vcmask 1043456   ;;  %v231_v16 = vlaneseq }
  0x9d   :  { %4512 = vset.pattern.permute.xlu0 %v4980_v0  ;;  %4513 = vset.pattern.permute.xlu1 %v4980_v0  ;;  %s6071_s13 = sld [smem:[#allocation37_spill]]  ;;  %v355_v7 = vld [vmem:[#allocation2 + $0x8] sm:$0xf]  ;;  %v354_v11 = vld [vmem:[#allocation2] sm:$0xff]  ;;  %v4981_v15 = vmov 0.0   ;;  %vm254_vm2 = vcmask 408576  }
  0x9e   :  { %s6072_s2 = sld [smem:[#allocation35_spill]]  ;;  %4135 = vmatprep.subr.msk.mxu1 %vm6056_vm1, %v355_v7  ;;  %v232_v17 = vand.u32 127, %v231_v16  ;;  %vm356_vm4 = vcmask 97280   ;;  %vm6059_vm8 = vmmov 0   ;;  %vm453_vm9 = vcmask 261120   ;;  %s4985_s3 = smov 96  }
  0x9f   :  { %4136 = vmatpush3.msk.msra.mxu1 %vm6056_vm1, %v355_v7  ;;  %s6073_s19 = sld [smem:[#allocation39_spill]] }
  0xa0   :  { %4137 = vmatprep.subr.mxu1 %v354_v11  ;;  %s6074_s9 = sld [smem:[#allocation40_spill]] }
  0xa1   :  { %4138 = vmatpush3.msra.mxu1 %v354_v11  ;;  %s6075_s27 = sld [smem:[#allocation41_spill]] }
  0xa2   :  { %v233_v1 = vld [vmem:[%s6070_s29] sm:$0xff]  ;;  %v234_v4 = vld [vmem:[%s6070_s29 + $0x8] sm:$0xff]  ;;  %s6076_s18 = sld [smem:[#allocation36_spill]]  ;;  %s4984_s29 = smov 32  }
  0xa3   :  { %v253_v2 = vld [vmem:[%s6071_s13 + $0x30] sm:$0x3]  ;;  %236 = vperm.xlu0 %4512, %v233_v1   ;;  %v252_v3 = vld [vmem:[%s6071_s13 + $0x28] sm:$0xff]  ;;  %v251_v5 = vld [vmem:[%s6071_s13 + $0x20] sm:$0xff] }
  0xa4   :  { %4118 = vmatprep.subr.msk.mxu0 %vm6057_vm0, %v253_v2  ;;  %v340_v6 = vld [vmem:[%s6072_s2] sm:$0xff]  ;;  %v250_v8 = vld [vmem:[%s6071_s13 + $0x18] sm:$0xff]  ;;  %v341_v9 = vld [vmem:[%s6072_s2 + $0x8] sm:$0xff] }
  0xa5   :  { %4119 = vmatpush3.msk.msra.mxu0 %vm6057_vm0, %v253_v2  ;;  %343 = vperm.xlu1 %4513, %v340_v6   ;;  %v249_v10 = vld [vmem:[%s6071_s13 + $0x10] sm:$0xff]  ;;  %v248_v12 = vld [vmem:[%s6071_s13 + $0x8] sm:$0xff]  ;;  %v445_v13 = vld [vmem:[%s6073_s19 + $0x18] sm:$0xff] }
  0xa6   :  { %4120 = vmatprep.subr.mxu0 %v252_v3  ;;  %v247_v14 = vld [vmem:[%s6071_s13] sm:$0xff]  ;;  %4142 = vmatprep.subr.mxu1 %v445_v13  ;;  %v444_v26 = vld [vmem:[%s6073_s19 + $0x10] sm:$0xff]  ;;  %v443_v27 = vld [vmem:[%s6073_s19 + $0x8] sm:$0xff] }
  0xa7   :  { %4121 = vmatpush3.msra.mxu0 %v252_v3  ;;  %239 = vperm.xlu0 %4512, %v234_v4   ;;  %v442_v28 = vld [vmem:[%s6073_s19] sm:$0xff]  ;;  %v5228_v29 = vld [vmem:[%s6074_s9 + $0x18] sm:$0xff]  ;;  %v5235_v30 = vld [vmem:[%s6074_s9 + $0x10] sm:$0xff]  ;;  %s4983_s19 = smov 64  }
  0xa8   :  { %4122 = vmatprep.subr.mxu0 %v251_v5  ;;  %v5241_v31 = vld [vmem:[%s6074_s9 + $0x8] sm:$0xff]  ;;  %v5248_v32 = vld [vmem:[%s6074_s9] sm:$0xff] }
  0xa9   :  { %4123 = vmatpush3.msra.mxu0 %v251_v5  ;;  %346 = vperm.xlu1 %4513, %v341_v9   ;;  %v3904_v37 = vld [vmem:[%s6075_s27] ss:$0 sm:$0xff] }
  0xaa   :  { %4124 = vmatprep.subr.mxu0 %v250_v8  ;;  %v5293_v45 = vld [vmem:[%s6076_s18] sm:$0x3] }
  0xab   :  { %4125 = vmatpush3.msra.mxu0 %v250_v8  ;;  %vm635_vm10 = vcmp.gt.s32.totalorder %v5293_v45, 0  ;;  %vm747_vm12 = vcmp.gt.s32.totalorder %v5293_v45, 1  ;;  %vm874_vm14 = vcmp.gt.s32.totalorder %v5293_v45, 2  ;;  %vm6058_vm0 = vcmp.gt.s32.totalorder %v5293_v45, 7 }
  0xac   :  { %4126 = vmatprep.subr.mxu0 %v249_v10  ;;  %v636_v47 = vsel %vm635_vm10, 1, %v4980_v0  ;;  %v748_v11 = vsel %vm747_vm12, 1, %v4980_v0 }
  0xad   :  { %4127 = vmatpush3.msra.mxu0 %v249_v10 }
  0xae   :  { %4128 = vmatprep.subr.mxu0 %v248_v12 }
  0xaf   :  { %4129 = vmatpush3.msra.mxu0 %v248_v12 }
  0xb0   :  { %4130 = vmatprep.subr.mxu0 %v247_v14 }
  0xb1   :  { %4131 = vmatpush3.msra.mxu0 %v247_v14 }
  0xb2   :  { %4164 = vmatprep.subr.mxu0 %v4981_v15 }
 0x11e   :  { %v237_v18 = vpop.permute.xlu0 %236 }
 0x11f   :  { %vm241_vm3 = vcmp.eq.s32.totalorder %v232_v17, %v237_v18 }
 0x120   :  { %v3894_v19 = vsel %vm241_vm3, 1.0, %v4981_v15  ;;  %v344_v20 = vpop.permute.xlu1 %343 }
 0x121   :  { %4132 = vmatprep.mubr.msk.f32.mxu0 %vm254_vm2, %v3894_v19  ;;  %vm348_vm5 = vcmp.eq.s32.totalorder %v232_v17, %v344_v20 }
 0x122   :  { %v240_v21 = vpop.permute.xlu0 %239  ;;  %v3899_v22 = vsel %vm348_vm5, 1.0, %v4981_v15 }
 0x123   :  { %vm242_vm6 = vcmp.eq.s32.totalorder %v232_v17, %v240_v21  ;;  %4139 = vmatprep.mubr.msk.f32.mxu1 %vm356_vm4, %v3899_v22 }
 0x124   :  { %v3895_v23 = vsel %vm242_vm6, 1.0, %v4981_v15  ;;  %v347_v24 = vpop.permute.xlu1 %346  ;;  %vm1232_vm6 = vcmp.gt.s32.totalorder %v5293_v45, 5 }
 0x125   :  { %4133 = vmatmul.mubr.msk.f32.vlgmr.msra.gmra.mxu0 %vm254_vm2, %v3895_v23  ;;  %vm349_vm7 = vcmp.eq.s32.totalorder %v232_v17, %v347_v24  ;;  %vm997_vm2 = vcmp.gt.s32.totalorder %v5293_v45, 3 }
 0x126   :  { %v3900_v25 = vsel %vm349_vm7, 1.0, %v4981_v15  ;;  %4165 = vmatpush3.msra.mxu0 %v5228_v29  ;;  %4172 = vmatprep.mubr.msk.f32.mxu0 %vm6059_vm8, %v4981_v15 }
 0x127   :  { %4140 = vmatmul.mubr.msk.f32.vlgmr.msra.gmra.mxu1 %vm356_vm4, %v3900_v25  ;;  %4166 = vmatprep.subr.mxu0 %v4981_v15  ;;  %vm1116_vm4 = vcmp.gt.s32.totalorder %v5293_v45, 4 }
 0x128   :  { %4143 = vmatpush3.msra.mxu1 %v445_v13  ;;  %4167 = vmatpush3.msra.mxu0 %v5235_v30 }
 0x129   :  { %4144 = vmatprep.subr.mxu1 %v444_v26  ;;  %4168 = vmatprep.subr.mxu0 %v4981_v15 }
 0x12a   :  { %4145 = vmatpush3.msra.mxu1 %v444_v26  ;;  %4169 = vmatpush3.msra.mxu0 %v5241_v31 }
 0x12b   :  { %4146 = vmatprep.subr.mxu1 %v443_v27  ;;  %4170 = vmatprep.subr.mxu0 %v4981_v15 }
 0x12c   :  { %4147 = vmatpush3.msra.mxu1 %v443_v27  ;;  %4171 = vmatpush3.msra.mxu0 %v5248_v32 }
 0x12d   :  { %4148 = vmatprep.subr.mxu1 %v442_v28  ;;  %4186 = vmatprep.subr.mxu0 %v4981_v15 }
 0x12e   :  { %4149 = vmatpush3.msra.mxu1 %v442_v28 }
 0x12f   :  { %4153 = vmatprep.subr.mxu1 %v4981_v15 }
 0x1e5   :  { %v4134_v33 = vpop.f32.mrf.mxu0 }
 0x1e7   :  { %v331_v34 = vpop.f32.mrf.mxu0  ;;  %v5278_v35 = vpop.f32.mrf.mxu1 }
 0x1e8   :  { %4150 = vmatprep.mubr.msk.f32.mxu1 %vm453_vm9, %v331_v34 }
 0x1e9   :  { %4151 = vmatmul.mubr.msk.f32.vlgmr.msra.gmra.mxu1 %vm453_vm9, %v4134_v33  ;;  %v5280_v36 = vpop.f32.mrf.mxu1 }
 0x1ea   :  { %4154 = vmatpush3.msra.mxu1 %v5228_v29  ;;  %4161 = vmatprep.mubr.msk.f32.mxu1 %vm6059_vm8, %v4981_v15 }
 0x1eb   :  { %4155 = vmatprep.subr.mxu1 %v4981_v15 }
 0x1ec   :  { %4156 = vmatpush3.msra.mxu1 %v5235_v30 }
 0x1ed   :  { %4157 = vmatprep.subr.mxu1 %v4981_v15 }
 0x1ee   :  { %4158 = vmatpush3.msra.mxu1 %v5241_v31 }
 0x1ef   :  { %4159 = vmatprep.subr.mxu1 %v4981_v15 }
 0x1f0   :  { %4160 = vmatpush3.msra.mxu1 %v5248_v32 }
 0x1f1   :  { %4162 = vmatmul.mubr.f32.vlgmr.msra.gmra.mxu1 %v4981_v15  ;;  %4175 = vmatprep.subr.mxu1 %v4981_v15 }
 0x1f2   :  { %4176 = vmatpush3.msra.mxu1 %v5228_v29  ;;  %4183 = vmatprep.mubr.msk.f32.mxu1 %vm6059_vm8, %v4981_v15 }
 0x1f3   :  { %4177 = vmatprep.subr.mxu1 %v4981_v15 }
 0x1f4   :  { %4178 = vmatpush3.msra.mxu1 %v5235_v30 }
 0x1f5   :  { %4179 = vmatprep.subr.mxu1 %v4981_v15 }
 0x1f6   :  { %4180 = vmatpush3.msra.mxu1 %v5241_v31 }
 0x1f7   :  { %4181 = vmatprep.subr.mxu1 %v4981_v15 }
 0x1f8   :  { %4182 = vmatpush3.msra.mxu1 %v5248_v32 }
 0x1f9   :  { %4197 = vmatprep.subr.mxu1 %v4981_v15 }
 0x2a9   :  { %v4152_v38 = vpop.f32.mrf.mxu1 }
 0x2aa   :  { %v5285_v39 = vadd.f32 %v4152_v38, %v3904_v37 }
 0x2ab   :  { %v526_v40 = vpop.f32.mrf.mxu1 }
 0x2ac   :  { %v5287_v41 = vadd.f32 %v3904_v37, %v526_v40 }
 0x2b1   :  { %v608_v42 = vpop.f32.mrf.mxu1 }
 0x2b2   :  { %v612_v43 = vadd.f32 %v608_v42, %v5287_v41 }
 0x2b3   :  { %v4163_v44 = vpop.f32.mrf.mxu1 }
 0x2b4   :  { %4514 = vtanh.f32 %v612_v43  ;;  %v613_v48 = vmul.f32 0.5, %v612_v43 }
 0x2b6   :  { %4516 = vtanh.f32 %v613_v48 }
 0x2c1   :  { %v4515_v46 = vpop.eup %4514 }
 0x2c2   :  { %620 = vrot.lane.b32.xlu0 %v4515_v46, %s4983_s19 }
 0x2c3   :  { %v4517_v49 = vpop.eup %4516 }
 0x2c4   :  { %v615_v50 = vmul.f32 0.5, %v4517_v49 }
 0x2c6   :  { %638 = vperm.xlu0 %4512, %v636_v47   ;;  %v616_v51 = vadd.f32 0.5, %v615_v50  ;;  %v875_v50 = vsel %vm874_vm14, 1, %v4980_v0 }
 0x2c8   :  { %v618_v54 = vmul.f32 0.0, %v616_v51 }
 0x334   :  { %v621_v52 = vpop.permute.xlu0 %620 }
 0x335   :  { %v623_v53 = vmul.f32 %v621_v52, %v616_v51 }
 0x337   :  { %625 = vrot.lane.b32.xlu1 %v623_v53, %s4984_s29 }
 0x341   :  { %v639_v58 = vpop.permute.xlu0 %638 }
 0x342   :  { %vm640_vm11 = vcmp.eq.s32.totalorder %v639_v58, 1 }
 0x3a9   :  { %v626_v55 = vpop.permute.xlu1 %625 }
 0x3aa   :  { %v628_v56 = vadd.f32 %v626_v55, %v618_v54 }
 0x3ac   :  { %4518 = vtanh.f32 %v628_v56  ;;  %v642_v12 = vsel %vm640_vm11, %v628_v56, 0.0 }
 0x3ad   :  { %v728_v13 = vrot.slane %v642_v12, 6 }
 0x3b9   :  { %v4519_v57 = vpop.eup %4518 }
 0x3ba   :  { %631 = vrot.lane.b32.xlu1 %v4519_v57, %s4983_s19 }
 0x42c   :  { %v632_v59 = vpop.permute.xlu1 %631 }
 0x42d   :  { %v634_v60 = vmul.f32 %v632_v59, %v616_v51 }
 0x42f   :  { %v5303_v61 = vsel %vm640_vm11, %v634_v60, 0.0  ;;  %vm1359_vm11 = vcmp.gt.s32.totalorder %v5293_v45, 6 }
 0x430   :  { %644 = vrot.lane.b32.xlu0 %v5303_v61, %s4984_s29 }
 0x4a2   :  { %v645_v62 = vpop.permute.xlu0 %644 }
 0x4a3   :  { %4173 = vmatmul.mubr.msk.f32.vlgmr.msra.gmra.mxu0 %vm453_vm9, %v645_v62 }
 0x4a4   :  { %4187 = vmatpush3.msra.mxu0 %v5228_v29  ;;  %4194 = vmatprep.mubr.msk.f32.mxu0 %vm6059_vm8, %v4981_v15 }
 0x4a5   :  { %4188 = vmatprep.subr.mxu0 %v4981_v15 }
 0x4a6   :  { %4189 = vmatpush3.msra.mxu0 %v5235_v30 }
 0x4a7   :  { %4190 = vmatprep.subr.mxu0 %v4981_v15 }
 0x4a8   :  { %4191 = vmatpush3.msra.mxu0 %v5241_v31 }
 0x4a9   :  { %4192 = vmatprep.subr.mxu0 %v4981_v15 }
 0x4aa   :  { %4193 = vmatpush3.msra.mxu0 %v5248_v32 }
 0x4ab   :  { %4208 = vmatprep.subr.mxu0 %v4981_v15 }
 0x563   :  { %v714_v63 = vpop.f32.mrf.mxu0 }
 0x564   :  { %v719_v1 = vrot.slane %v714_v63, 6 }
 0x565   :  { %v4174_v2 = vpop.f32.mrf.mxu0 }
 0x566   :  { %v721_v3 = vadd.f32 %v719_v1, %v5287_v41 }
 0x568   :  { %4520 = vtanh.f32 %v721_v3  ;;  %v722_v5 = vmul.f32 0.5, %v721_v3 }
 0x56a   :  { %4522 = vtanh.f32 %v722_v5 }
 0x575   :  { %v4521_v4 = vpop.eup %4520 }
 0x576   :  { %732 = vrot.lane.b32.xlu1 %v4521_v4, %s4983_s19 }
 0x577   :  { %v4523_v6 = vpop.eup %4522 }
 0x578   :  { %v724_v7 = vmul.f32 0.5, %v4523_v6 }
 0x57a   :  { %v725_v8 = vadd.f32 0.5, %v724_v7 }
 0x57c   :  { %v730_v14 = vmul.f32 %v728_v13, %v725_v8 }
 0x5e8   :  { %v733_v9 = vpop.permute.xlu1 %732 }
 0x5e9   :  { %v735_v10 = vmul.f32 %v733_v9, %v725_v8 }
 0x5eb   :  { %737 = vrot.lane.b32.xlu0 %v735_v10, %s4984_s29 }
 0x5ef   :  { %750 = vperm.xlu0 %4512, %v748_v11  }
 0x65d   :  { %v738_v16 = vpop.permute.xlu0 %737 }
 0x65e   :  { %v740_v17 = vadd.f32 %v738_v16, %v730_v14  ;;  %v998_v16 = vsel %vm997_vm2, 1, %v4980_v0 }
 0x660   :  { %4524 = vtanh.f32 %v740_v17  ;;  %v761_v18 = vrot.slane %v740_v17, 2 }
 0x662   :  { %762 = vrot.lane.b32.xlu0 %v761_v18, %s4985_s3 }
 0x66a   :  { %v5330_v23 = vpop.permute.xlu0 %750 }
 0x66b   :  { %vm752_vm13 = vcmp.eq.s32.totalorder %v5330_v23, 1 }
 0x66d   :  { %v4525_v19 = vpop.eup %4524 }
 0x66e   :  { %743 = vrot.lane.b32.xlu1 %v4525_v19, %s4983_s19 }
 0x6d4   :  { %v763_v26 = vpop.permute.xlu0 %762 }
 0x6e0   :  { %v744_v20 = vpop.permute.xlu1 %743 }
 0x6e1   :  { %v746_v21 = vmul.f32 %v744_v20, %v725_v8 }
 0x6e3   :  { %v754_v22 = vrot.slane %v746_v21, 2 }
 0x6e5   :  { %755 = vrot.lane.b32.xlu1 %v754_v22, %s4984_s29 }
 0x6e9   :  { %765 = vrot.lane.b32.xlu1 %v642_v12, %s4985_s3 }
 0x757   :  { %v5333_v24 = vpop.permute.xlu1 %755 }
 0x758   :  { %v759_v25 = vsel %vm752_vm13, %v5333_v24, %v645_v62 }
 0x759   :  { %4184 = vmatmul.mubr.msk.f32.vlgmr.msra.gmra.mxu1 %vm453_vm9, %v759_v25 }
 0x75a   :  { %4198 = vmatpush3.msra.mxu1 %v5228_v29  ;;  %4205 = vmatprep.mubr.msk.f32.mxu1 %vm6059_vm8, %v4981_v15 }
 0x75b   :  { %v766_v27 = vpop.permute.xlu1 %765  ;;  %4199 = vmatprep.subr.mxu1 %v4981_v15 }
 0x75c   :  { %v768_v28 = vsel %vm752_vm13, %v763_v26, %v766_v27  ;;  %4200 = vmatpush3.msra.mxu1 %v5235_v30  ;;  %v1117_v27 = vsel %vm1116_vm4, 1, %v4980_v0 }
 0x75d   :  { %v853_v33 = vrot.slane %v768_v28, 4  ;;  %4201 = vmatprep.subr.mxu1 %v4981_v15 }
 0x75e   :  { %4202 = vmatpush3.msra.mxu1 %v5241_v31 }
 0x75f   :  { %854 = vrot.lane.b32.xlu1 %v853_v33, %s4984_s29  ;;  %4203 = vmatprep.subr.mxu1 %v4981_v15 }
 0x760   :  { %4204 = vmatpush3.msra.mxu1 %v5248_v32 }
 0x761   :  { %4219 = vmatprep.subr.mxu1 %v4981_v15 }
 0x7d1   :  { %v855_v51 = vpop.permute.xlu1 %854 }
 0x819   :  { %v839_v34 = vpop.f32.mrf.mxu1 }
 0x81a   :  { %v844_v37 = vrot.slane %v839_v34, 4 }
 0x81b   :  { %v4185_v38 = vpop.f32.mrf.mxu1 }
 0x81c   :  { %v846_v40 = vadd.f32 %v844_v37, %v5287_v41 }
 0x81e   :  { %4526 = vtanh.f32 %v846_v40  ;;  %v847_v43 = vmul.f32 0.5, %v846_v40 }
 0x820   :  { %4528 = vtanh.f32 %v847_v43 }
 0x82b   :  { %v4527_v42 = vpop.eup %4526 }
 0x82c   :  { %859 = vrot.lane.b32.xlu0 %v4527_v42, %s4983_s19 }
 0x82d   :  { %v4529_v44 = vpop.eup %4528 }
 0x82e   :  { %v849_v46 = vmul.f32 0.5, %v4529_v44 }
 0x830   :  { %v850_v47 = vadd.f32 0.5, %v849_v46 }
 0x832   :  { %v857_v52 = vmul.f32 %v855_v51, %v850_v47 }
 0x89e   :  { %v860_v48 = vpop.permute.xlu0 %859 }
 0x89f   :  { %v862_v49 = vmul.f32 %v860_v48, %v850_v47 }
 0x8a1   :  { %864 = vrot.lane.b32.xlu0 %v862_v49, %s4984_s29 }
 0x8a5   :  { %877 = vperm.xlu0 %4512, %v875_v50  }
 0x913   :  { %v865_v53 = vpop.permute.xlu0 %864 }
 0x914   :  { %v867_v54 = vadd.f32 %v865_v53, %v857_v52 }
 0x916   :  { %4530 = vtanh.f32 %v867_v54  ;;  %v887_v55 = vrot.slane %v867_v54, 4 }
 0x918   :  { %888 = vrot.lane.b32.xlu0 %v887_v55, %s4985_s3 }
 0x920   :  { %v5361_v57 = vpop.permute.xlu0 %877 }
 0x921   :  { %vm879_vm15 = vcmp.eq.s32.totalorder %v5361_v57, 1 }
 0x923   :  { %v4531_v56 = vpop.eup %4530 }
 0x924   :  { %870 = vrot.lane.b32.xlu1 %v4531_v56, %s4983_s19 }
 0x98a   :  { %v889_v58 = vpop.permute.xlu0 %888 }
 0x98b   :  { %v891_v59 = vsel %vm879_vm15, %v889_v58, %v768_v28 }
 0x98c   :  { %v976_v60 = vrot.slane %v891_v59, 2 }
 0x98e   :  { %977 = vrot.lane.b32.xlu0 %v976_v60, %s4984_s29 }
 0x996   :  { %v871_v62 = vpop.permute.xlu1 %870 }
 0x997   :  { %v873_v63 = vmul.f32 %v871_v62, %v850_v47 }
 0x999   :  { %v881_v1 = vrot.slane %v873_v63, 4 }
 0x99b   :  { %882 = vrot.lane.b32.xlu1 %v881_v1, %s4984_s29 }
 0xa0d   :  { %v5368_v2 = vpop.permute.xlu1 %882 }
 0xa0e   :  { %v885_v3 = vsel %vm879_vm15, %v5368_v2, %v759_v25 }
 0xa0f   :  { %4195 = vmatmul.mubr.msk.f32.vlgmr.msra.gmra.mxu0 %vm453_vm9, %v885_v3 }
 0xa10   :  { %4209 = vmatpush3.msra.mxu0 %v5228_v29  ;;  %4216 = vmatprep.mubr.msk.f32.mxu0 %vm6059_vm8, %v4981_v15 }
 0xa11   :  { %4210 = vmatprep.subr.mxu0 %v4981_v15 }
 0xa12   :  { %4211 = vmatpush3.msra.mxu0 %v5235_v30 }
 0xa13   :  { %4212 = vmatprep.subr.mxu0 %v4981_v15 }
 0xa14   :  { %4213 = vmatpush3.msra.mxu0 %v5241_v31 }
 0xa15   :  { %4214 = vmatprep.subr.mxu0 %v4981_v15 }
 0xa16   :  { %4215 = vmatpush3.msra.mxu0 %v5248_v32 }
 0xa17   :  { %4230 = vmatprep.subr.mxu0 %v4981_v15 }
 0xacf   :  { %v962_v4 = vpop.f32.mrf.mxu0 }
 0xad0   :  { %v967_v5 = vrot.slane %v962_v4, 2 }
 0xad1   :  { %v4196_v6 = vpop.f32.mrf.mxu0 }
 0xad2   :  { %v969_v7 = vadd.f32 %v967_v5, %v5287_v41  ;;  %v978_v41 = vpop.permute.xlu0 %977 }
 0xad4   :  { %4532 = vtanh.f32 %v969_v7  ;;  %v970_v9 = vmul.f32 0.5, %v969_v7 }
 0xad6   :  { %4534 = vtanh.f32 %v970_v9 }
 0xae1   :  { %v4533_v8 = vpop.eup %4532 }
 0xae2   :  { %982 = vrot.lane.b32.xlu1 %v4533_v8, %s4983_s19 }
 0xae3   :  { %v4535_v10 = vpop.eup %4534 }
 0xae4   :  { %v972_v11 = vmul.f32 0.5, %v4535_v10 }
 0xae6   :  { %v973_v12 = vadd.f32 0.5, %v972_v11 }
 0xae8   :  { %v980_v17 = vmul.f32 %v978_v41, %v973_v12 }
 0xb54   :  { %v983_v13 = vpop.permute.xlu1 %982 }
 0xb55   :  { %v985_v14 = vmul.f32 %v983_v13, %v973_v12 }
 0xb57   :  { %987 = vrot.lane.b32.xlu1 %v985_v14, %s4984_s29 }
 0xb5b   :  { %1000 = vperm.xlu1 %4513, %v998_v16  }
 0xbc9   :  { %v988_v18 = vpop.permute.xlu1 %987 }
 0xbca   :  { %v990_v19 = vadd.f32 %v988_v18, %v980_v17 }
 0xbcc   :  { %4536 = vtanh.f32 %v990_v19  ;;  %v1010_v20 = vrot.slane %v990_v19, 6 }
 0xbce   :  { %1011 = vrot.lane.b32.xlu1 %v1010_v20, %s4985_s3 }
 0xbd6   :  { %v5393_v22 = vpop.permute.xlu1 %1000 }
 0xbd7   :  { %vm1002_vm3 = vcmp.eq.s32.totalorder %v5393_v22, 1 }
 0xbd9   :  { %v4537_v21 = vpop.eup %4536 }
 0xbda   :  { %993 = vrot.lane.b32.xlu0 %v4537_v21, %s4983_s19 }
 0xc40   :  { %v1012_v25 = vpop.permute.xlu1 %1011 }
 0xc41   :  { %v1014_v26 = vsel %vm1002_vm3, %v1012_v25, %v891_v59 }
 0xc42   :  { %1096 = vrot.lane.b32.xlu1 %v1014_v26, %s4984_s29 }
 0xc46   :  { %1119 = vperm.xlu1 %4513, %v1117_v27  }
 0xc4c   :  { %v994_v28 = vpop.permute.xlu0 %993 }
 0xc4d   :  { %v996_v33 = vmul.f32 %v994_v28, %v973_v12 }
 0xc4f   :  { %v1004_v34 = vrot.slane %v996_v33, 6 }
 0xc51   :  { %1005 = vrot.lane.b32.xlu0 %v1004_v34, %s4984_s29 }
 0xcb4   :  { %v1097_v52 = vpop.permute.xlu1 %1096 }
 0xcc1   :  { %v5425_v58 = vpop.permute.xlu1 %1119 }
 0xcc2   :  { %vm1121_vm5 = vcmp.eq.s32.totalorder %v5425_v58, 1  ;;  %v5567_v58 = vsel %vm752_vm13, %v5333_v24, 0.0  ;;  %vm6080_vm13 = vmmov 0  }
 0xcc3   :  { %v5404_v37 = vpop.permute.xlu0 %1005 }
 0xcc4   :  { %v1008_v38 = vsel %vm1002_vm3, %v5404_v37, %v885_v3  ;;  %v5575_v57 = vsel %vm1002_vm3, %v5404_v37, 0.0 }
 0xcc5   :  { %1122 = vrot.lane.b32.xlu1 %v1008_v38, %s4985_s3  ;;  %4206 = vmatmul.mubr.msk.f32.vlgmr.msra.gmra.mxu1 %vm453_vm9, %v1008_v38 }
 0xcc6   :  { %4220 = vmatpush3.msra.mxu1 %v5228_v29  ;;  %4227 = vmatprep.mubr.msk.f32.mxu1 %vm6059_vm8, %v4981_v15 }
 0xcc7   :  { %4221 = vmatprep.subr.mxu1 %v4981_v15 }
 0xcc8   :  { %4222 = vmatpush3.msra.mxu1 %v5235_v30 }
 0xcc9   :  { %4223 = vmatprep.subr.mxu1 %v4981_v15 }
 0xcca   :  { %4224 = vmatpush3.msra.mxu1 %v5241_v31 }
 0xccb   :  { %4225 = vmatprep.subr.mxu1 %v4981_v15 }
 0xccc   :  { %4226 = vmatpush3.msra.mxu1 %v5248_v32 }
 0xccd   :  { %4241 = vmatprep.subr.mxu1 %v4981_v15 }
 0xd37   :  { %v1123_v62 = vpop.permute.xlu1 %1122 }
 0xd85   :  { %v1085_v40 = vpop.f32.mrf.mxu1 }
 0xd86   :  { %v1089_v42 = vadd.f32 %v1085_v40, %v5285_v39 }
 0xd87   :  { %v4207_v43 = vpop.f32.mrf.mxu1 }
 0xd88   :  { %4538 = vtanh.f32 %v1089_v42  ;;  %v1090_v46 = vmul.f32 0.5, %v1089_v42 }
 0xd8a   :  { %4540 = vtanh.f32 %v1090_v46 }
 0xd95   :  { %v4539_v44 = vpop.eup %4538 }
 0xd96   :  { %1101 = vrot.lane.b32.xlu0 %v4539_v44, %s4983_s19 }
 0xd97   :  { %v4541_v47 = vpop.eup %4540 }
 0xd98   :  { %v1092_v48 = vmul.f32 0.5, %v4541_v47 }
 0xd9a   :  { %v1093_v49 = vadd.f32 0.5, %v1092_v48 }
 0xd9c   :  { %v1099_v53 = vmul.f32 %v1097_v52, %v1093_v49 }
 0xe08   :  { %v1102_v50 = vpop.permute.xlu0 %1101 }
 0xe09   :  { %v1104_v51 = vmul.f32 %v1102_v50, %v1093_v49 }
 0xe0b   :  { %1106 = vrot.lane.b32.xlu0 %v1104_v51, %s4984_s29 }
 0xe7d   :  { %v1107_v54 = vpop.permute.xlu0 %1106 }
 0xe7e   :  { %v1109_v55 = vadd.f32 %v1107_v54, %v1099_v53 }
 0xe80   :  { %4542 = vtanh.f32 %v1109_v55  ;;  %v1126_v11 = vsel %vm1121_vm5, %v1109_v55, %v1097_v52  ;;  %v1360_v52 = vsel %vm1359_vm11, 1, %v4980_v0 }
 0xe81   :  { %v1213_v12 = vrot.slane %v1126_v11, 6 }
 0xe8d   :  { %v4543_v56 = vpop.eup %4542 }
 0xe8e   :  { %1112 = vrot.lane.b32.xlu0 %v4543_v56, %s4983_s19 }
 0xf00   :  { %v1113_v59 = vpop.permute.xlu0 %1112 }
 0xf01   :  { %v5427_v60 = vmul.f32 %v1113_v59, %v1093_v49 }
 0xf03   :  { %v1125_v63 = vsel %vm1121_vm5, %v5427_v60, %v1123_v62 }
 0xf04   :  { %1129 = vrot.lane.b32.xlu0 %v1125_v63, %s4984_s29 }
 0xf76   :  { %v1130_v1 = vpop.permute.xlu0 %1129 }
 0xf77   :  { %4217 = vmatmul.mubr.msk.f32.vlgmr.msra.gmra.mxu0 %vm453_vm9, %v1130_v1 }
 0xf78   :  { %4231 = vmatpush3.msra.mxu0 %v5228_v29  ;;  %4238 = vmatprep.mubr.msk.f32.mxu0 %vm6059_vm8, %v4981_v15 }
 0xf79   :  { %4232 = vmatprep.subr.mxu0 %v4981_v15 }
 0xf7a   :  { %4233 = vmatpush3.msra.mxu0 %v5235_v30 }
 0xf7b   :  { %4234 = vmatprep.subr.mxu0 %v4981_v15 }
 0xf7c   :  { %4235 = vmatpush3.msra.mxu0 %v5241_v31 }
 0xf7d   :  { %4236 = vmatprep.subr.mxu0 %v4981_v15 }
 0xf7e   :  { %4237 = vmatpush3.msra.mxu0 %v5248_v32  ;;  %v1233_v32 = vsel %vm1232_vm6, 1, %v4980_v0 }
 0xf7f   :  { %4252 = vmatprep.subr.mxu0 %v4981_v15 }
0x1037   :  { %v1199_v3 = vpop.f32.mrf.mxu0 }
0x1038   :  { %v1204_v4 = vrot.slane %v1199_v3, 6 }
0x1039   :  { %v4218_v29 = vpop.f32.mrf.mxu0 }
0x103a   :  { %v1206_v5 = vadd.f32 %v1204_v4, %v5285_v39 }
0x103c   :  { %4544 = vtanh.f32 %v1206_v5  ;;  %v1207_v30 = vmul.f32 0.5, %v1206_v5 }
0x103e   :  { %4546 = vtanh.f32 %v1207_v30 }
0x1049   :  { %v4545_v6 = vpop.eup %4544 }
0x104a   :  { %1217 = vrot.lane.b32.xlu1 %v4545_v6, %s4983_s19 }
0x104b   :  { %v4547_v7 = vpop.eup %4546 }
0x104c   :  { %v1209_v8 = vmul.f32 0.5, %v4547_v7 }
0x104e   :  { %v1210_v31 = vadd.f32 0.5, %v1209_v8 }
0x1050   :  { %v1215_v13 = vmul.f32 %v1213_v12, %v1210_v31 }
0x10bc   :  { %v1218_v9 = vpop.permute.xlu1 %1217 }
0x10bd   :  { %v1220_v10 = vmul.f32 %v1218_v9, %v1210_v31 }
0x10bf   :  { %1222 = vrot.lane.b32.xlu0 %v1220_v10, %s4984_s29 }
0x10c3   :  { %1235 = vperm.xlu0 %4512, %v1233_v32  }
0x1131   :  { %v1223_v14 = vpop.permute.xlu0 %1222 }
0x1132   :  { %v1225_v16 = vadd.f32 %v1223_v14, %v1215_v13 }
0x1134   :  { %4548 = vtanh.f32 %v1225_v16  ;;  %v1246_v41 = vrot.slane %v1225_v16, 2 }
0x1136   :  { %1247 = vrot.lane.b32.xlu0 %v1246_v41, %s4985_s3 }
0x113e   :  { %v5458_v21 = vpop.permute.xlu0 %1235 }
0x113f   :  { %vm1237_vm7 = vcmp.eq.s32.totalorder %v5458_v21, 1 }
0x1141   :  { %v4549_v17 = vpop.eup %4548 }
0x1142   :  { %1228 = vrot.lane.b32.xlu1 %v4549_v17, %s4983_s19  ;;  %v1483_v17 = vsel %vm6058_vm0, 1, %v4980_v0  ;;  %v1502_v0 = vld [vmem:[%s6035_s8 + $0x8] sm:$0xff] }
0x11a8   :  { %v1248_v27 = vpop.permute.xlu0 %1247 }
0x11b4   :  { %v1229_v18 = vpop.permute.xlu1 %1228 }
0x11b5   :  { %v1231_v19 = vmul.f32 %v1229_v18, %v1210_v31 }
0x11b7   :  { %v1239_v20 = vrot.slane %v1231_v19, 2 }
0x11b9   :  { %1240 = vrot.lane.b32.xlu1 %v1239_v20, %s4984_s29 }
0x11bd   :  { %1250 = vrot.lane.b32.xlu1 %v1126_v11, %s4985_s3 }
0x122b   :  { %v5461_v25 = vpop.permute.xlu1 %1240 }
0x122c   :  { %v1244_v26 = vsel %vm1237_vm7, %v5461_v25, %v1130_v1  ;;  %v5589_v22 = vsel %vm1237_vm7, %v5461_v25, 0.0 }
0x122d   :  { %4228 = vmatmul.mubr.msk.f32.vlgmr.msra.gmra.mxu1 %vm453_vm9, %v1244_v26 }
0x122e   :  { %4249 = vmatprep.mubr.msk.f32.mxu1 %vm6059_vm8, %v4981_v15 }
0x122f   :  { %v1251_v28 = vpop.permute.xlu1 %1250 }
0x1230   :  { %v1253_v33 = vsel %vm1237_vm7, %v1248_v27, %v1251_v28  ;;  %v1503_v27 = vld [vmem:[%s6035_s8 + $0x10] sm:$0xff]  ;;  %v1501_v28 = vld [vmem:[%s6035_s8] sm:$0xff] }
0x1231   :  { %v1338_v34 = vrot.slane %v1253_v33, 4 }
0x1233   :  { %1339 = vrot.lane.b32.xlu1 %v1338_v34, %s4984_s29 }
0x12a5   :  { %v1340_v53 = vpop.permute.xlu1 %1339 }
0x12ed   :  { %v1324_v38 = vpop.f32.mrf.mxu1 }
0x12ee   :  { %v1329_v40 = vrot.slane %v1324_v38, 4 }
0x12ef   :  { %v4229_v42 = vpop.f32.mrf.mxu1 }
0x12f0   :  { %v1331_v43 = vadd.f32 %v1329_v40, %v5285_v39 }
0x12f2   :  { %4550 = vtanh.f32 %v1331_v43  ;;  %v1332_v46 = vmul.f32 0.5, %v1331_v43 }
0x12f4   :  { %4552 = vtanh.f32 %v1332_v46 }
0x12ff   :  { %v4551_v44 = vpop.eup %4550 }
0x1300   :  { %1344 = vrot.lane.b32.xlu0 %v4551_v44, %s4983_s19  ;;  %v1767_v44 = vld [vmem:[#allocation5 + $0x18] sm:$0xff] }
0x1301   :  { %v4553_v47 = vpop.eup %4552 }
0x1302   :  { %v1334_v48 = vmul.f32 0.5, %v4553_v47  ;;  %v1766_v47 = vld [vmem:[#allocation5 + $0x10] sm:$0xff] }
0x1304   :  { %v1335_v49 = vadd.f32 0.5, %v1334_v48  ;;  %v1765_v48 = vld [vmem:[#allocation5 + $0x8] sm:$0xff] }
0x1306   :  { %v1342_v54 = vmul.f32 %v1340_v53, %v1335_v49 }
0x1372   :  { %v1345_v50 = vpop.permute.xlu0 %1344 }
0x1373   :  { %v1347_v51 = vmul.f32 %v1345_v50, %v1335_v49 }
0x1375   :  { %1349 = vrot.lane.b32.xlu0 %v1347_v51, %s4984_s29 }
0x1379   :  { %1362 = vperm.xlu0 %4512, %v1360_v52  }
0x13e7   :  { %v1350_v55 = vpop.permute.xlu0 %1349 }
0x13e8   :  { %v1352_v56 = vadd.f32 %v1350_v55, %v1342_v54  ;;  %v5552_v54 = vsel %vm1121_vm5, %v5427_v60, 0.0 }
0x13ea   :  { %4554 = vtanh.f32 %v1352_v56  ;;  %v1372_v59 = vrot.slane %v1352_v56, 4 }
0x13ec   :  { %1373 = vrot.lane.b32.xlu0 %v1372_v59, %s4985_s3 }
0x13f4   :  { %v5481_v63 = vpop.permute.xlu0 %1362 }
0x13f5   :  { %vm1364_vm1 = vcmp.eq.s32.totalorder %v5481_v63, 1 }
0x13f7   :  { %v4555_v62 = vpop.eup %4554 }
0x13f8   :  { %1355 = vrot.lane.b32.xlu1 %v4555_v62, %s4983_s19  ;;  %v5561_v62 = vsel %vm879_vm15, %v5368_v2, 0.0 }
0x145e   :  { %v1374_v1 = vpop.permute.xlu0 %1373 }
0x145f   :  { %v5486_v3 = vsel %vm1364_vm1, %v1374_v1, %v1253_v33 }
0x1460   :  { %v1461_v4 = vrot.slane %v5486_v3, 2 }
0x1462   :  { %1462 = vrot.lane.b32.xlu0 %v1461_v4, %s4984_s29 }
0x146a   :  { %v1356_v29 = vpop.permute.xlu1 %1355 }
0x146b   :  { %v1358_v5 = vmul.f32 %v1356_v29, %v1335_v49  ;;  %v1764_v49 = vld [vmem:[#allocation5] sm:$0xff] }
0x146d   :  { %v1366_v6 = vrot.slane %v1358_v5, 4 }
0x146f   :  { %1367 = vrot.lane.b32.xlu1 %v1366_v6, %s4984_s29 }
0x14e1   :  { %v5491_v30 = vpop.permute.xlu1 %1367 }
0x14e2   :  { %v1370_v7 = vsel %vm1364_vm1, %v5491_v30, %v1244_v26  ;;  %v1504_v26 = vld [vmem:[%s6035_s8 + $0x18] sm:$0xff]  ;;  %v5580_v2 = vsel %vm1364_vm1, %v5491_v30, 0.0  ;;  %vm6077_vm1 = vcmp.gt.s32.totalorder %v5293_v45, 7 }
0x14e3   :  { %4239 = vmatmul.mubr.msk.f32.vlgmr.msra.gmra.mxu0 %vm453_vm9, %v1370_v7  ;;  %4242 = vmatpush3.msra.mxu1 %v1504_v26 }
0x14e4   :  { %4260 = vmatprep.mubr.msk.f32.mxu0 %vm6059_vm8, %v4981_v15  ;;  %4243 = vmatprep.subr.mxu1 %v4981_v15 }
0x14e5   :  { %4244 = vmatpush3.msra.mxu1 %v1503_v27 }
0x14e6   :  { %4245 = vmatprep.subr.mxu1 %v4981_v15 }
0x14e7   :  { %4246 = vmatpush3.msra.mxu1 %v1502_v0 }
0x14e8   :  { %4247 = vmatprep.subr.mxu1 %v4981_v15 }
0x14e9   :  { %4248 = vmatpush3.msra.mxu1 %v1501_v28 }
0x14ea   :  { %4263 = vmatprep.subr.mxu1 %v4981_v15 }
0x15a3   :  { %v1447_v8 = vpop.f32.mrf.mxu0 }
0x15a4   :  { %v1452_v31 = vrot.slane %v1447_v8, 2 }
0x15a5   :  { %v4240_v9 = vpop.f32.mrf.mxu0 }
0x15a6   :  { %v1454_v10 = vadd.f32 %v1452_v31, %v5285_v39  ;;  %v1463_v39 = vpop.permute.xlu0 %1462 }
0x15a8   :  { %4556 = vtanh.f32 %v1454_v10  ;;  %v1455_v11 = vmul.f32 0.5, %v1454_v10 }
0x15aa   :  { %4558 = vtanh.f32 %v1455_v11 }
0x15b5   :  { %v4557_v32 = vpop.eup %4556 }
0x15b6   :  { %1467 = vrot.lane.b32.xlu1 %v4557_v32, %s4983_s19 }
0x15b7   :  { %v4559_v12 = vpop.eup %4558 }
0x15b8   :  { %v1457_v13 = vmul.f32 0.5, %v4559_v12 }
0x15ba   :  { %v1458_v14 = vadd.f32 0.5, %v1457_v13 }
0x15bc   :  { %v1465_v18 = vmul.f32 %v1463_v39, %v1458_v14 }
0x1628   :  { %v1468_v16 = vpop.permute.xlu1 %1467 }
0x1629   :  { %v1470_v41 = vmul.f32 %v1468_v16, %v1458_v14 }
0x162b   :  { %1472 = vrot.lane.b32.xlu1 %v1470_v41, %s4984_s29 }
0x162f   :  { %1485 = vperm.xlu1 %4513, %v1483_v17  }
0x169d   :  { %v1473_v19 = vpop.permute.xlu1 %1472 }
0x169e   :  { %v5506_v20 = vadd.f32 %v1473_v19, %v1465_v18 }
0x16a0   :  { %4560 = vtanh.f32 %v5506_v20 }
0x16aa   :  { %v5527_v42 = vpop.permute.xlu1 %1485 }
0x16ab   :  { %vm1487_vm0 = vcmp.eq.s32.totalorder %v5527_v42, 1 }
0x16ad   :  { %v4561_v33 = vpop.eup %4560 }
0x16ae   :  { %1478 = vrot.lane.b32.xlu0 %v4561_v33, %s4983_s19 }
0x1720   :  { %v1479_v34 = vpop.permute.xlu0 %1478 }
0x1721   :  { %v1481_v38 = vmul.f32 %v1479_v34, %v1458_v14 }
0x1723   :  { %v1489_v40 = vrot.slane %v1481_v38, 6 }
0x1725   :  { %1490 = vrot.lane.b32.xlu0 %v1489_v40, %s4984_s29 }
0x1797   :  { %v1491_v43 = vpop.permute.xlu0 %1490 }
0x1798   :  { %v5532_v46 = vsel %vm1487_vm0, %v1491_v43, %v1370_v7  ;;  %v5596_v31 = vsel %vm1487_vm0, %v1491_v43, 0.0 }
0x1799   :  { %4250 = vmatmul.mubr.msk.f32.vlgmr.msra.gmra.mxu1 %vm453_vm9, %v5532_v46 }
0x179a   :  { %4264 = vmatpush3.msra.mxu1 %v1767_v44  ;;  %4271 = vmatprep.mubr.msk.f32.mxu1 %vm6059_vm8, %v4981_v15 }
0x179b   :  { %4265 = vmatprep.subr.mxu1 %v4981_v15 }
0x179c   :  { %4266 = vmatpush3.msra.mxu1 %v1766_v47 }
0x179d   :  { %4267 = vmatprep.subr.mxu1 %v4981_v15 }
0x179e   :  { %4268 = vmatpush3.msra.mxu1 %v1765_v48 }
0x179f   :  { %4269 = vmatprep.subr.mxu1 %v4981_v15 }
0x17a0   :  { %4270 = vmatpush3.msra.mxu1 %v1764_v49 }
0x17a1   :  { %4272 = vmatmul.mubr.msk.f32.vlgmr.msra.gmra.mxu1 %vm453_vm9, %v5532_v46  ;;  %4285 = vmatprep.subr.mxu1 %v4981_v15 }
0x17a2   :  { %4293 = vmatprep.mubr.msk.f32.mxu1 %vm6059_vm8, %v4981_v15  ;;  %vm1587_vm8 = vcmask 254976  }
0x1859   :  { %v1574_v50 = vpop.f32.mrf.mxu1 }
0x185a   :  { %1579 = vrot.lane.b32.xlu1 %v1574_v50, %s4985_s3  ;;  %v1599_v1 = vmul.f32 %v1574_v50, %v5561_v62  ;;  %v1593_v4 = vmul.f32 %v1574_v50, %v5567_v58  ;;  %v1605_v7 = vmul.f32 %v1574_v50, %v5575_v57  ;;  %v1627_v8 = vmul.f32 %v1574_v50, %v5580_v2 }
0x185b   :  { %v4251_v51 = vpop.f32.mrf.mxu1  ;;  %v1621_v30 = vmul.f32 %v1574_v50, %v5589_v22  ;;  %v1633_v10 = vmul.f32 %v1574_v50, %v5596_v31 }
0x185c   :  { %v1600_v60 = vsel %vm1587_vm8, %v1599_v1, 0.0  ;;  %v1594_v29 = vsel %vm1587_vm8, %v1593_v4, 0.0  ;;  %v1606_v37 = vsel %vm1587_vm8, %v1605_v7, 0.0  ;;  %v1628_v63 = vsel %vm1587_vm8, %v1627_v8, 0.0 }
0x185d   :  { %v1622_v9 = vsel %vm1587_vm8, %v1621_v30, 0.0  ;;  %v1634_v21 = vsel %vm1587_vm8, %v1633_v10, 0.0 }
0x1861   :  { %v5547_v52 = vpop.f32.mrf.mxu1 }
0x1863   :  { %v4273_v53 = vpop.f32.mrf.mxu1 }
0x18cc   :  { %v1580_v55 = vpop.permute.xlu1 %1579 }
0x18cd   :  { %v1582_v56 = vmul.f32 %v1580_v55, %v5303_v61  ;;  %v1611_v59 = vmul.f32 %v1580_v55, %v5552_v54 }
0x18cf   :  { %1613 = vrot.lane.b32.xlu1 %v1611_v59, %s4984_s29  ;;  %1584 = vrot.lane.b32.xlu0 %v1582_v56, %s4984_s29 }
0x18ee   :  { %1601 = vadd.xlane.f32.xlu0 %v1600_v60 }
0x18f3   :  { %1595 = vadd.xlane.f32.xlu1 %v1594_v29 }
0x1941   :  { %v1614_v23 = vpop.permute.xlu1 %1613  ;;  %v1585_v24 = vpop.permute.xlu0 %1584 }
0x1942   :  { %v1588_v5 = vsel %vm1587_vm8, %v1585_v24, 0.0  ;;  %v1616_v6 = vsel %vm1587_vm8, %v1614_v23, 0.0  ;;  %vm6078_vm8 = vcmask 1041408  }
0x1943   :  { %1589 = vadd.xlane.f32.xlu0 %v1588_v5  ;;  %1617 = vadd.xlane.f32.xlu1 %v1616_v6 }
0x1947   :  { %1607 = vadd.xlane.f32.xlu0 %v1606_v37  ;;  %1629 = vadd.xlane.f32.xlu1 %v1628_v63 }
0x194b   :  { %1623 = vadd.xlane.f32.xlu0 %v1622_v9 }
0x194f   :  { %1635 = vadd.xlane.f32.xlu0 %v1634_v21 }
0x1977   :  { %v1602_v25 = vpop.xlane.xlu0 %1601 }
0x1978   :  { %v1603_v14 = vmul.f32 0.17677669, %v1602_v25 }
0x197a   :  { %v1604_v19 = vsel %vm874_vm14, %v1603_v14, -1e+30  ;;  %vm6081_vm14 = vmmov %vm6078_vm8 }
0x197c   :  { %v1596_v32 = vpop.xlane.xlu1 %1595 }
0x197d   :  { %v1597_v11 = vmul.f32 0.17677669, %v1596_v32 }
0x197f   :  { %v1598_v41 = vsel %vm747_vm12, %v1597_v11, -1e+30  ;;  %vm2233_vm12 = vcmask 130048  }
0x19cc   :  { %v1590_v12 = vpop.xlane.xlu0 %1589  ;;  %v1618_v13 = vpop.xlane.xlu1 %1617 }
0x19cd   :  { %v1591_v16 = vmul.f32 0.17677669, %v1590_v12  ;;  %v1619_v26 = vmul.f32 0.17677669, %v1618_v13 }
0x19cf   :  { %v1592_v17 = vsel %vm635_vm10, %v1591_v16, -1e+30  ;;  %v1620_v40 = vsel %vm1116_vm4, %v1619_v26, -1e+30  ;;  %vm6079_vm10 = vcmask 1043456  }
0x19d0   :  { %v1639_v39 = vmax.f32 %v1592_v17, %v1598_v41  ;;  %v1608_v18 = vpop.xlane.xlu0 %1607  ;;  %v1630_v28 = vpop.xlane.xlu1 %1629  ;;  %vm6082_vm15 = vmmov %vm6079_vm10 }
0x19d1   :  { %v1609_v27 = vmul.f32 0.17677669, %v1608_v18  ;;  %v1631_v43 = vmul.f32 0.17677669, %v1630_v28 }
0x19d2   :  { %v1640_v0 = vmax.f32 %v1639_v39, %v1604_v19 }
0x19d3   :  { %v1610_v33 = vsel %vm997_vm2, %v1609_v27, -1e+30  ;;  %v1632_v51 = vsel %vm1359_vm11, %v1631_v43, -1e+30  ;;  %vm6083_vm2 = vmmov %vm6078_vm8 }
0x19d4   :  { %v1641_v34 = vmax.f32 %v1640_v0, %v1610_v33  ;;  %v1624_v38 = vpop.xlane.xlu0 %1623  ;;  %vm6084_vm3 = vmmov %vm6083_vm2 }
0x19d5   :  { %v1625_v44 = vmul.f32 0.17677669, %v1624_v38  ;;  %vm6085_vm4 = vmmov %vm6083_vm2 }
0x19d6   :  { %v1642_v47 = vmax.f32 %v1641_v34, %v1620_v40  ;;  %vm6086_vm5 = vmmov %vm6083_vm2 }
0x19d7   :  { %v1626_v48 = vsel %vm1232_vm6, %v1625_v44, -1e+30  ;;  %vm6087_vm6 = vmmov %vm6083_vm2 }
0x19d8   :  { %v1643_v49 = vmax.f32 %v1642_v47, %v1626_v48  ;;  %v1636_v50 = vpop.xlane.xlu0 %1635  ;;  %vm6088_vm7 = vmmov %vm6083_vm2 }
0x19d9   :  { %v1637_v53 = vmul.f32 0.17677669, %v1636_v50  ;;  %vm6089_vm11 = vmmov %vm6083_vm2 }
0x19da   :  { %v1644_v55 = vmax.f32 %v1643_v49, %v1632_v51  ;;  %v2023_v49 = vld [vmem:[#allocation13 + $0x18] sm:$0xff] }
0x19db   :  { %v1638_v56 = vsel %vm6077_vm1, %v1637_v53, -1e+30  ;;  %4286 = vmatpush3.msra.mxu1 %v2023_v49  ;;  %v2022_v53 = vld [vmem:[#allocation13 + $0x10] sm:$0xff]  ;;  %vm6090_vm1 = vmmov %vm6083_vm2 }
0x19dc   :  { %v1645_v59 = vmax.f32 %v1644_v55, %v1638_v56  ;;  %4287 = vmatprep.subr.mxu1 %v4981_v15  ;;  %v2021_v55 = vld [vmem:[#allocation13 + $0x8] sm:$0xff] }
0x19dd   :  { %4288 = vmatpush3.msra.mxu1 %v2022_v53 }
0x19de   :  { %v1652_v1 = vsub.f32 %v1604_v19, %v1645_v59  ;;  %v1649_v60 = vsub.f32 %v1598_v41, %v1645_v59  ;;  %v1664_v4 = vsub.f32 %v1632_v51, %v1645_v59  ;;  %v1655_v29 = vsub.f32 %v1610_v33, %v1645_v59  ;;  %4289 = vmatprep.subr.mxu1 %v4981_v15 }
0x19df   :  { %v1646_v5 = vsub.f32 %v1592_v17, %v1645_v59  ;;  %v1661_v8 = vsub.f32 %v1626_v48, %v1645_v59  ;;  %v1658_v63 = vsub.f32 %v1620_v40, %v1645_v59  ;;  %v1667_v30 = vsub.f32 %v1638_v56, %v1645_v59  ;;  %4290 = vmatpush3.msra.mxu1 %v2021_v55  ;;  %v2020_v59 = vld [vmem:[#allocation13] sm:$0xff] }
0x19e0   :  { %v1653_v23 = vmul.f32 1.442695, %v1652_v1  ;;  %v1650_v24 = vmul.f32 1.442695, %v1649_v60  ;;  %v1665_v6 = vmul.f32 1.442695, %v1664_v4  ;;  %4291 = vmatprep.subr.mxu1 %v4981_v15 }
0x19e1   :  { %v1656_v7 = vmul.f32 1.442695, %v1655_v29  ;;  %v1647_v37 = vmul.f32 1.442695, %v1646_v5  ;;  %v1662_v45 = vmul.f32 1.442695, %v1661_v8  ;;  %4292 = vmatpush3.msra.mxu1 %v2020_v59 }
0x19e2   :  { %4562 = vpow2.f32 %v1653_v23  ;;  %v1659_v9 = vmul.f32 1.442695, %v1658_v63  ;;  %v1668_v10 = vmul.f32 1.442695, %v1667_v30  ;;  %v2106_v56 = vrot.slane %v5567_v58, 6  ;;  %v2143_v1 = vld [vmem:[#allocation16 + $0x8] sm:$0xff] }
0x19e3   :  { %4564 = vpow2.f32 %v1650_v24  ;;  %4307 = vmatprep.subr.mxu1 %v2143_v1  ;;  %v2121_v60 = vrot.slane %v5589_v22, 6  ;;  %v1771_v4 = vld [vmem:[#allocation7 + $0x18] sm:$0xff]  ;;  %v1770_v29 = vld [vmem:[#allocation7 + $0x10] sm:$0xff]  ;;  %v2126_v23 = vrot.slane %v5580_v2, 4  ;;  %v1768_v24 = vld [vmem:[#allocation7] sm:$0xff]  ;;  %v1495_v5 = vrot.slane %v5506_v20, 6 }
0x19e4   :  { %4566 = vpow2.f32 %v1665_v6  ;;  %4253 = vmatpush3.msra.mxu0 %v1771_v4  ;;  %v5683_v59 = vld [vmem:[#allocation19 + $0x18] sm:$0xff]  ;;  %v5692_v4 = vld [vmem:[#allocation19 + $0x8] sm:$0xff] }
0x19e5   :  { %4568 = vpow2.f32 %v1656_v7  ;;  %4254 = vmatprep.subr.mxu0 %v4981_v15 }
0x19e6   :  { %4570 = vpow2.f32 %v1647_v37  ;;  %4255 = vmatpush3.msra.mxu0 %v1770_v29  ;;  %v5696_v29 = vld [vmem:[#allocation19] sm:$0xff] }
0x19e7   :  { %4572 = vpow2.f32 %v1662_v45  ;;  %4256 = vmatprep.subr.mxu0 %v4981_v15 }
0x19e8   :  { %4574 = vpow2.f32 %v1659_v9 }
0x19e9   :  { %4576 = vpow2.f32 %v1668_v10 }
0x19ef   :  { %v4563_v21 = vpop.eup %4562 }
0x19f0   :  { %v4565_v25 = vpop.eup %4564  ;;  %1697 = vperm.xlu0 %4512, %v4563_v21  }
0x19f1   :  { %1686 = vperm.xlu1 %4513, %v4565_v25   ;;  %v4567_v32 = vpop.eup %4566 }
0x19f2   :  { %v4569_v11 = vpop.eup %4568 }
0x19f3   :  { %v4571_v12 = vpop.eup %4570 }
0x19f4   :  { %1737 = vperm.xlu0 %4512, %v4567_v32   ;;  %v1670_v13 = vadd.f32 %v4571_v12, %v4565_v25  ;;  %v4573_v16 = vpop.eup %4572 }
0x19f5   :  { %1708 = vperm.xlu1 %4513, %v4569_v11   ;;  %v4575_v17 = vpop.eup %4574 }
0x19f6   :  { %v1671_v14 = vadd.f32 %v4563_v21, %v1670_v13  ;;  %v4577_v18 = vpop.eup %4576 }
0x19f8   :  { %1679 = vperm.xlu0 %4512, %v4571_v12   ;;  %v1672_v41 = vadd.f32 %v4569_v11, %v1671_v14 }
0x19f9   :  { %1726 = vperm.xlu1 %4513, %v4573_v16  }
0x19fa   :  { %v1673_v39 = vadd.f32 %v4575_v17, %v1672_v41 }
0x19fc   :  { %1719 = vperm.xlu0 %4512, %v4575_v17   ;;  %v1674_v19 = vadd.f32 %v4573_v16, %v1673_v39  ;;  %v2111_v17 = vrot.slane %v5561_v62, 4 }
0x19fd   :  { %1748 = vperm.xlu1 %4513, %v4577_v18  }
0x19fe   :  { %v1675_v26 = vadd.f32 %v4567_v32, %v1674_v19 }
0x1a00   :  { %v1676_v27 = vadd.f32 %v4577_v18, %v1675_v26  ;;  %v2116_v18 = vrot.slane %v5575_v57, 2 }
0x1a02   :  { %1759 = vperm.xlu1 %4513, %v1676_v27  }
0x1a6b   :  { %v1698_v0 = vpop.permute.xlu0 %1697 }
0x1a6c   :  { %v1700_v28 = vmul.f32 %v1698_v0, %v5561_v62  ;;  %v1687_v33 = vpop.permute.xlu1 %1686  ;;  %v2131_v0 = vrot.slane %v5596_v31, 2 }
0x1a6d   :  { %v1689_v34 = vmul.f32 %v1687_v33, %v5567_v58  ;;  %v1769_v58 = vld [vmem:[#allocation7 + $0x8] sm:$0xff] }
0x1a6e   :  { %1702 = vrot.lane.b32.xlu0 %v1700_v28, %s4985_s3  ;;  %4257 = vmatpush3.msra.mxu0 %v1769_v58  ;;  %v2142_v33 = vld [vmem:[#allocation16] sm:$0xff] }
0x1a6f   :  { %1691 = vrot.lane.b32.xlu1 %v1689_v34, %s4985_s3  ;;  %v1738_v43 = vpop.permute.xlu0 %1737  ;;  %4258 = vmatprep.subr.mxu0 %v4981_v15 }
0x1a70   :  { %v1709_v38 = vpop.permute.xlu1 %1708  ;;  %v1740_v47 = vmul.f32 %v1738_v43, %v5580_v2  ;;  %4259 = vmatpush3.msra.mxu0 %v1768_v24  ;;  %v2146_v43 = vld [vmem:[#allocation17 + $0x10] sm:$0xff]  ;;  %v3918_v24 = vld [vmem:[#allocation11] ss:$0 sm:$0xff] }
0x1a71   :  { %v1711_v40 = vmul.f32 %v1709_v38, %v5575_v57  ;;  %4274 = vmatprep.subr.mxu0 %v4981_v15 }
0x1a73   :  { %1713 = vrot.lane.b32.xlu1 %v1711_v40, %s4985_s3  ;;  %v1680_v2 = vpop.permute.xlu0 %1679 }
0x1a74   :  { %v1727_v44 = vpop.permute.xlu1 %1726  ;;  %v1682_v7 = vmul.f32 %v1680_v2, %v5303_v61 }
0x1a75   :  { %v1729_v48 = vmul.f32 %v1727_v44, %v5589_v22 }
0x1a77   :  { %1731 = vrot.lane.b32.xlu0 %v1729_v48, %s4985_s3  ;;  %1742 = vrot.lane.b32.xlu1 %v1740_v47, %s4985_s3  ;;  %v1720_v6 = vpop.permute.xlu0 %1719  ;;  %v2145_v47 = vld [vmem:[#allocation17 + $0x8] sm:$0xff] }
0x1a78   :  { %v1749_v50 = vpop.permute.xlu1 %1748  ;;  %v1722_v20 = vmul.f32 %v1720_v6, %v5552_v54 }
0x1a79   :  { %v1751_v51 = vmul.f32 %v1749_v50, %v5596_v31  ;;  %v2147_v31 = vld [vmem:[#allocation17 + $0x18] sm:$0xff] }
0x1a7b   :  { %1753 = vrot.lane.b32.xlu0 %v1751_v51, %s4985_s3 }
0x1a7d   :  { %v1760_v22 = vpop.permute.xlu1 %1759 }
0x1a7e   :  { %4578 = vrcp.f32 %v1760_v22 }
0x1a7f   :  { %2107 = vrot.lane.b32.xlu0 %v2106_v56, %s4985_s3 }
0x1a83   :  { %2122 = vrot.lane.b32.xlu0 %v2121_v60, %s4985_s3  ;;  %v5686_v60 = vld [vmem:[#allocation19 + $0x10] sm:$0xff] }
0x1a87   :  { %2127 = vrot.lane.b32.xlu0 %v2126_v23, %s4985_s3 }
0x1a8b   :  { %1496 = vrot.lane.b32.xlu0 %v1495_v5, %s4985_s3  ;;  %v4579_v14 = vpop.eup %4578 }
0x1ae0   :  { %v1703_v63 = vpop.permute.xlu0 %1702 }
0x1ae1   :  { %v1692_v8 = vpop.permute.xlu1 %1691 }
0x1ae2   :  { %v1694_v37 = vadd.f32 %v1692_v8, %v1682_v7 }
0x1ae4   :  { %v1705_v30 = vadd.f32 %v1703_v63, %v1694_v37  ;;  %v3926_v37 = vld [vmem:[#allocation20] ss:$0 sm:$0xff] }
0x1ae5   :  { %v1714_v45 = vpop.permute.xlu1 %1713 }
0x1ae6   :  { %v1716_v9 = vadd.f32 %v1714_v45, %v1705_v30 }
0x1ae8   :  { %v1723_v10 = vadd.f32 %v1722_v20, %v1716_v9 }
0x1ae9   :  { %v1732_v21 = vpop.permute.xlu0 %1731  ;;  %v1743_v32 = vpop.permute.xlu1 %1742 }
0x1aea   :  { %v1734_v25 = vadd.f32 %v1732_v21, %v1723_v10 }
0x1aec   :  { %v1745_v11 = vadd.f32 %v1743_v32, %v1734_v25 }
0x1aed   :  { %v1754_v12 = vpop.permute.xlu0 %1753 }
0x1aee   :  { %v1756_v13 = vadd.f32 %v1754_v12, %v1745_v11 }
0x1af0   :  { %v1763_v16 = vmul.f32 %v4579_v14, %v1756_v13 }
0x1af1   :  { %v2108_v41 = vpop.permute.xlu0 %2107 }
0x1af2   :  { %1773 = vrot.lane.b32.xlu1 %v1763_v16, %s4984_s29  ;;  %v2135_v34 = vsel %vm6081_vm14, %v5303_v61, %v2108_v41  ;;  %v2144_v61 = vld [vmem:[#allocation17] sm:$0xff]  ;;  %vm6096_vm14 = vmmov %vm6090_vm1 }
0x1af5   :  { %v2123_v39 = vpop.permute.xlu0 %2122 }
0x1af6   :  { %2112 = vrot.lane.b32.xlu1 %v2111_v17, %s4985_s3  ;;  %v2139_v19 = vsel %vm6078_vm8, %v5552_v54, %v2123_v39  ;;  %v1941_v54 = vld [vmem:[#allocation10 + $0x18] sm:$0xff]  ;;  %vm6091_vm8 = vmmov %vm6090_vm1 }
0x1af9   :  { %v2128_v26 = vpop.permute.xlu0 %2127 }
0x1afa   :  { %v2140_v27 = vsel %vm6079_vm10, %v2139_v19, %v2128_v26  ;;  %2117 = vrot.lane.b32.xlu1 %v2116_v18, %s4985_s3  ;;  %vm6092_vm10 = vmmov %vm6090_vm1 }
0x1afd   :  { %v1497_v28 = vpop.permute.xlu0 %1496 }
0x1afe   :  { %v1499_v62 = vsel %vm1487_vm0, %v1497_v28, %v5486_v3  ;;  %2132 = vrot.lane.b32.xlu1 %v2131_v0, %s4985_s3  ;;  %v1940_v3 = vld [vmem:[#allocation10 + $0x10] sm:$0xff]  ;;  %vm2137_vm0 = vcmask 1045504   ;;  %v5730_v0 = vld [vmem:[%s6047_s20 + $0x10] sm:$0xff] }
0x1aff   :  { %4294 = vmatmul.mubr.msk.f32.vlgmr.msra.gmra.mxu1 %vm453_vm9, %v1499_v62  ;;  %v5737_v28 = vld [vmem:[%s6047_s20 + $0x8] sm:$0xff]  ;;  %v5744_v62 = vld [vmem:[%s6047_s20] sm:$0xff] }
0x1b00   :  { %4308 = vmatpush3.msra.mxu1 %v2143_v1  ;;  %4311 = vmatprep.mubr.msk.f32.mxu1 %vm2233_vm12, %v5280_v36  ;;  %v1939_v36 = vld [vmem:[#allocation10 + $0x8] sm:$0xff] }
0x1b01   :  { %4309 = vmatprep.subr.mxu1 %v2142_v33 }
0x1b02   :  { %4310 = vmatpush3.msra.mxu1 %v2142_v33 }
0x1b03   :  { %4312 = vmatmul.mubr.msk.f32.vlgmr.msra.gmra.mxu1 %vm2233_vm12, %v5278_v35  ;;  %4325 = vmatprep.subr.mxu1 %v4981_v15  ;;  %v1938_v35 = vld [vmem:[#allocation10] sm:$0xff]  ;;  %vm6094_vm12 = vmmov %vm6090_vm1 }
0x1b04   :  { %4333 = vmatprep.mubr.msk.f32.mxu1 %vm6080_vm13, %v4981_v15 }
0x1b64   :  { %v1774_v42 = vpop.permute.xlu1 %1773 }
0x1b65   :  { %4261 = vmatmul.mubr.msk.f32.vlgmr.msra.gmra.mxu0 %vm453_vm9, %v1774_v42 }
0x1b66   :  { %4275 = vmatpush3.msra.mxu0 %v1941_v54  ;;  %4282 = vmatprep.mubr.msk.f32.mxu0 %vm6080_vm13, %v4981_v15 }
0x1b67   :  { %4276 = vmatprep.subr.mxu0 %v4981_v15 }
0x1b68   :  { %4277 = vmatpush3.msra.mxu0 %v1940_v3  ;;  %v2113_v57 = vpop.permute.xlu1 %2112 }
0x1b69   :  { %4278 = vmatprep.subr.mxu0 %v4981_v15  ;;  %v2136_v38 = vsel %vm6082_vm15, %v2135_v34, %v2113_v57  ;;  %vm6097_vm15 = vmmov %vm6090_vm1 }
0x1b6a   :  { %4279 = vmatpush3.msra.mxu0 %v1939_v36 }
0x1b6b   :  { %4280 = vmatprep.subr.mxu0 %v4981_v15 }
0x1b6c   :  { %4281 = vmatpush3.msra.mxu0 %v1938_v35  ;;  %v2118_v40 = vpop.permute.xlu1 %2117 }
0x1b6d   :  { %4283 = vmatmul.mubr.msk.f32.vlgmr.msra.gmra.mxu0 %vm453_vm9, %v5532_v46  ;;  %v2138_v44 = vsel %vm2137_vm0, %v2136_v38, %v2118_v40  ;;  %4296 = vmatprep.subr.mxu0 %v2147_v31  ;;  %v3920_v46 = vld [vmem:[#allocation14] ss:$0 sm:$0xff] }
0x1b6e   :  { %2150 = vrot.lane.b32.xlu1 %v2138_v44, %s4984_s29  ;;  %4297 = vmatpush3.msra.mxu0 %v2147_v31 }
0x1b6f   :  { %4298 = vmatprep.subr.mxu0 %v2146_v43 }
0x1b70   :  { %v2133_v48 = vpop.permute.xlu1 %2132  ;;  %4299 = vmatpush3.msra.mxu0 %v2146_v43 }
0x1b71   :  { %v2141_v49 = vsel %vm2137_vm0, %v2140_v27, %v2133_v48  ;;  %4300 = vmatprep.subr.mxu0 %v2145_v47  ;;  %v5725_v27 = vld [vmem:[%s6047_s20 + $0x18] sm:$0xff] }
0x1b72   :  { %2152 = vrot.lane.b32.xlu0 %v2141_v49, %s4984_s29  ;;  %4301 = vmatpush3.msra.mxu0 %v2145_v47 }
0x1b73   :  { %4302 = vmatprep.subr.mxu0 %v2144_v61  ;;  %4326 = vmatpush3.msra.mxu1 %v5725_v27 }
0x1b74   :  { %4303 = vmatpush3.msra.mxu0 %v2144_v61  ;;  %4327 = vmatprep.subr.mxu1 %v4981_v15 }
0x1b75   :  { %4314 = vmatprep.subr.mxu0 %v4981_v15  ;;  %4328 = vmatpush3.msra.mxu1 %v5730_v0 }
0x1b76   :  { %4329 = vmatprep.subr.mxu1 %v4981_v15 }
0x1b77   :  { %4330 = vmatpush3.msra.mxu1 %v5737_v28 }
0x1b78   :  { %4331 = vmatprep.subr.mxu1 %v4981_v15 }
0x1b79   :  { %4332 = vmatpush3.msra.mxu1 %v5744_v62 }
0x1b7a   :  { %4347 = vmatprep.subr.mxu1 %v4981_v15 }
0x1bbf   :  { %v2100_v50 = vpop.f32.mrf.mxu1 }
0x1bc0   :  { %v2101_v51 = vadd.f32 %v3920_v46, %v2100_v50 }
0x1bc1   :  { %v4295_v53 = vpop.f32.mrf.mxu1 }
0x1bc2   :  { %4580 = vtanh.f32 %v2101_v51 }
0x1bc3   :  { %v4313_v7 = vpop.f32.mrf.mxu1 }
0x1bc5   :  { %v2306_v20 = vpop.f32.mrf.mxu1 }
0x1bcf   :  { %v4581_v55 = vpop.eup %4580 }
0x1bd0   :  { %2419 = vrot.lane.b32.xlu0 %v4581_v55, %s4984_s29 }
0x1be0   :  { %v2151_v56 = vpop.permute.xlu1 %2150 }
0x1be1   :  { %4304 = vmatprep.mubr.msk.f32.mxu0 %vm453_vm9, %v2151_v56 }
0x1be4   :  { %v2153_v1 = vpop.permute.xlu0 %2152 }
0x1be5   :  { %4305 = vmatmul.mubr.msk.f32.vlgmr.msra.gmra.mxu0 %vm453_vm9, %v2153_v1 }
0x1be6   :  { %4315 = vmatpush3.msra.mxu0 %v5683_v59  ;;  %4322 = vmatprep.mubr.msk.f32.mxu0 %vm6080_vm13, %v4981_v15 }
0x1be7   :  { %4316 = vmatprep.subr.mxu0 %v4981_v15 }
0x1be8   :  { %4317 = vmatpush3.msra.mxu0 %v5686_v60 }
0x1be9   :  { %4318 = vmatprep.subr.mxu0 %v4981_v15 }
0x1bea   :  { %4319 = vmatpush3.msra.mxu0 %v5692_v4 }
0x1beb   :  { %4320 = vmatprep.subr.mxu0 %v4981_v15 }
0x1bec   :  { %4321 = vmatpush3.msra.mxu0 %v5696_v29 }
0x1bed   :  { %4336 = vmatprep.subr.mxu0 %v4981_v15 }
0x1c25   :  { %v5702_v23 = vpop.f32.mrf.mxu0 }
0x1c27   :  { %v4262_v58 = vpop.f32.mrf.mxu0 }
0x1c2d   :  { %v2015_v5 = vpop.f32.mrf.mxu0 }
0x1c2e   :  { %v2016_v2 = vadd.f32 %v3918_v24, %v2015_v5 }
0x1c2f   :  { %v4284_v22 = vpop.f32.mrf.mxu0 }
0x1c30   :  { %4582 = vtanh.f32 %v2016_v2 }
0x1c3d   :  { %v4583_v6 = vpop.eup %4582 }
0x1c3e   :  { %4323 = vmatmul.mubr.msk.f32.vlgmr.msra.gmra.mxu0 %vm453_vm9, %v4583_v6 }
0x1c3f   :  { %4337 = vmatpush3.msra.mxu0 %v5683_v59  ;;  %4344 = vmatprep.mubr.msk.f32.mxu0 %vm6080_vm13, %v4981_v15 }
0x1c40   :  { %4338 = vmatprep.subr.mxu0 %v4981_v15 }
0x1c41   :  { %4339 = vmatpush3.msra.mxu0 %v5686_v60 }
0x1c42   :  { %4340 = vmatprep.subr.mxu0 %v4981_v15  ;;  %v2420_v39 = vpop.permute.xlu0 %2419 }
0x1c43   :  { %4341 = vmatpush3.msra.mxu0 %v5692_v4 }
0x1c44   :  { %4342 = vmatprep.subr.mxu0 %v4981_v15 }
0x1c45   :  { %4343 = vmatpush3.msra.mxu0 %v5696_v29 }
0x1c46   :  { %4358 = vmatprep.subr.mxu0 %v4981_v15 }
0x1ca5   :  { %v4306_v8 = vpop.f32.mrf.mxu0 }
0x1ca6   :  { %v2312_v63 = vadd.f32 %v4313_v7, %v4306_v8 }
0x1ca7   :  { %v2224_v45 = vpop.f32.mrf.mxu0 }
0x1ca8   :  { %v5715_v30 = vadd.f32 %v3926_v37, %v2312_v63  ;;  %v2307_v9 = vadd.f32 %v2306_v20, %v2224_v45 }
0x1caa   :  { %v5717_v10 = vadd.f32 %v3926_v37, %v2307_v9 }
0x1cfe   :  { %v2408_v21 = vpop.f32.mrf.mxu0 }
0x1cff   :  { %v2412_v25 = vadd.f32 %v2408_v21, %v5717_v10 }
0x1d00   :  { %v4324_v32 = vpop.f32.mrf.mxu0 }
0x1d01   :  { %4584 = vtanh.f32 %v2412_v25  ;;  %v2413_v12 = vmul.f32 0.5, %v2412_v25 }
0x1d03   :  { %4586 = vtanh.f32 %v2413_v12 }
0x1d0e   :  { %v4585_v11 = vpop.eup %4584 }
0x1d0f   :  { %2424 = vrot.lane.b32.xlu1 %v4585_v11, %s4983_s19 }
0x1d10   :  { %v4587_v13 = vpop.eup %4586 }
0x1d11   :  { %v2415_v14 = vmul.f32 0.5, %v4587_v13 }
0x1d13   :  { %v2416_v16 = vadd.f32 0.5, %v2415_v14 }
0x1d15   :  { %v2422_v18 = vmul.f32 %v2420_v39, %v2416_v16 }
0x1d81   :  { %v2425_v41 = vpop.permute.xlu1 %2424 }
0x1d82   :  { %v2427_v17 = vmul.f32 %v2425_v41, %v2416_v16 }
0x1d84   :  { %2429 = vrot.lane.b32.xlu1 %v2427_v17, %s4984_s29 }
0x1df6   :  { %v2430_v19 = vpop.permute.xlu1 %2429 }
0x1df7   :  { %v2432_v26 = vadd.f32 %v2430_v19, %v2422_v18 }
0x1df9   :  { %4588 = vtanh.f32 %v2432_v26  ;;  %v2606_v46 = vrot.slane %v2432_v26, 6 }
0x1e06   :  { %v4589_v33 = vpop.eup %4588 }
0x1e07   :  { %2435 = vrot.lane.b32.xlu0 %v4589_v33, %s4983_s19 }
0x1e79   :  { %v2436_v54 = vpop.permute.xlu0 %2435 }
0x1e7a   :  { %v2438_v42 = vmul.f32 %v2436_v54, %v2416_v16 }
0x1e7c   :  { %2440 = vrot.lane.b32.xlu1 %v2438_v42, %s4984_s29 }
0x1eee   :  { %v2441_v3 = vpop.permute.xlu1 %2440 }
0x1eef   :  { %4334 = vmatmul.mubr.msk.f32.vlgmr.msra.gmra.mxu1 %vm453_vm9, %v2441_v3  ;;  %4345 = vmatmul.mubr.msk.f32.vlgmr.msra.gmra.mxu0 %vm453_vm9, %v2441_v3 }
0x1ef0   :  { %4348 = vmatpush3.msra.mxu1 %v5725_v27  ;;  %4359 = vmatpush3.msra.mxu0 %v5683_v59 }
0x1ef1   :  { %4349 = vmatprep.subr.mxu1 %v4981_v15  ;;  %4360 = vmatprep.subr.mxu0 %v4981_v15 }
0x1ef2   :  { %4350 = vmatpush3.msra.mxu1 %v5730_v0  ;;  %4361 = vmatpush3.msra.mxu0 %v5686_v60 }
0x1ef3   :  { %4351 = vmatprep.subr.mxu1 %v4981_v15  ;;  %4362 = vmatprep.subr.mxu0 %v4981_v15 }
0x1ef4   :  { %4352 = vmatpush3.msra.mxu1 %v5737_v28  ;;  %4363 = vmatpush3.msra.mxu0 %v5692_v4 }
0x1ef5   :  { %4353 = vmatprep.subr.mxu1 %v4981_v15  ;;  %4364 = vmatprep.subr.mxu0 %v4981_v15 }
0x1ef6   :  { %4365 = vmatpush3.msra.mxu0 %v5696_v29  ;;  %4366 = vmatprep.mubr.msk.f32.mxu0 %vm6080_vm13, %v4981_v15 }
0x1ef7   :  { %4354 = vmatpush3.msra.mxu1 %v5744_v62  ;;  %4355 = vmatprep.mubr.msk.f32.mxu1 %vm6080_vm13, %v4981_v15 }
0x1ef8   :  { %4369 = vmatprep.subr.mxu1 %v4981_v15  ;;  %4380 = vmatprep.subr.mxu0 %v4981_v15 }
0x1faf   :  { %v5774_v36 = vpop.f32.mrf.mxu1  ;;  %v2592_v57 = vpop.f32.mrf.mxu0 }
0x1fb0   :  { %v2597_v35 = vrot.slane %v2592_v57, 6 }
0x1fb1   :  { %v4335_v31 = vpop.f32.mrf.mxu1  ;;  %v4346_v34 = vpop.f32.mrf.mxu0 }
0x1fb2   :  { %v2599_v38 = vadd.f32 %v2597_v35, %v5717_v10 }
0x1fb4   :  { %4590 = vtanh.f32 %v2599_v38  ;;  %v2600_v43 = vmul.f32 0.5, %v2599_v38 }
0x1fb6   :  { %4592 = vtanh.f32 %v2600_v43 }
0x1fc1   :  { %v4591_v40 = vpop.eup %4590 }
0x1fc2   :  { %2610 = vrot.lane.b32.xlu0 %v4591_v40, %s4983_s19 }
0x1fc3   :  { %v4593_v44 = vpop.eup %4592 }
0x1fc4   :  { %v2602_v47 = vmul.f32 0.5, %v4593_v44 }
0x1fc6   :  { %v2603_v48 = vadd.f32 0.5, %v2602_v47 }
0x1fc8   :  { %v2608_v50 = vmul.f32 %v2606_v46, %v2603_v48 }
0x2034   :  { %v2611_v61 = vpop.permute.xlu0 %2610 }
0x2035   :  { %v2613_v49 = vmul.f32 %v2611_v61, %v2603_v48 }
0x2037   :  { %2615 = vrot.lane.b32.xlu1 %v2613_v49, %s4984_s29 }
0x20a9   :  { %v2616_v51 = vpop.permute.xlu1 %2615 }
0x20aa   :  { %v2618_v53 = vadd.f32 %v2616_v51, %v2608_v50 }
0x20ac   :  { %4594 = vtanh.f32 %v2618_v53  ;;  %v2793_v32 = vrot.slane %v2618_v53, 6 }
0x20b9   :  { %v4595_v55 = vpop.eup %4594 }
0x20ba   :  { %2621 = vrot.lane.b32.xlu0 %v4595_v55, %s4983_s19 }
0x212c   :  { %v2622_v56 = vpop.permute.xlu0 %2621 }
0x212d   :  { %v2624_v1 = vmul.f32 %v2622_v56, %v2603_v48 }
0x212f   :  { %v2626_v58 = vrot.slane %v2624_v1, 2 }
0x2131   :  { %2627 = vrot.lane.b32.xlu1 %v2626_v58, %s4984_s29 }
0x21a3   :  { %v2628_v24 = vpop.permute.xlu1 %2627 }
0x21a4   :  { %4356 = vmatmul.mubr.msk.f32.vlgmr.msra.gmra.mxu1 %vm453_vm9, %v2628_v24  ;;  %4367 = vmatmul.mubr.msk.f32.vlgmr.msra.gmra.mxu0 %vm453_vm9, %v2628_v24 }
0x21a5   :  { %4370 = vmatpush3.msra.mxu1 %v5725_v27  ;;  %4381 = vmatpush3.msra.mxu0 %v5683_v59 }
0x21a6   :  { %4371 = vmatprep.subr.mxu1 %v4981_v15  ;;  %4382 = vmatprep.subr.mxu0 %v4981_v15 }
0x21a7   :  { %4372 = vmatpush3.msra.mxu1 %v5730_v0  ;;  %4383 = vmatpush3.msra.mxu0 %v5686_v60 }
0x21a8   :  { %4373 = vmatprep.subr.mxu1 %v4981_v15  ;;  %4384 = vmatprep.subr.mxu0 %v4981_v15 }
0x21a9   :  { %4374 = vmatpush3.msra.mxu1 %v5737_v28  ;;  %4385 = vmatpush3.msra.mxu0 %v5692_v4 }
0x21aa   :  { %4375 = vmatprep.subr.mxu1 %v4981_v15  ;;  %4386 = vmatprep.subr.mxu0 %v4981_v15 }
0x21ab   :  { %4387 = vmatpush3.msra.mxu0 %v5696_v29  ;;  %4388 = vmatprep.mubr.msk.f32.mxu0 %vm6080_vm13, %v4981_v15 }
0x21ac   :  { %4376 = vmatpush3.msra.mxu1 %v5744_v62  ;;  %4377 = vmatprep.mubr.msk.f32.mxu1 %vm6080_vm13, %v4981_v15 }
0x21ad   :  { %4391 = vmatprep.subr.mxu1 %v4981_v15  ;;  %4402 = vmatprep.subr.mxu0 %v4981_v15 }
0x2264   :  { %v5803_v5 = vpop.f32.mrf.mxu1  ;;  %v2779_v2 = vpop.f32.mrf.mxu0 }
0x2265   :  { %v2784_v22 = vrot.slane %v2779_v2, 4 }
0x2266   :  { %v4357_v6 = vpop.f32.mrf.mxu1  ;;  %v4368_v7 = vpop.f32.mrf.mxu0 }
0x2267   :  { %v2786_v8 = vadd.f32 %v2784_v22, %v5717_v10 }
0x2269   :  { %4596 = vtanh.f32 %v2786_v8  ;;  %v2787_v63 = vmul.f32 0.5, %v2786_v8 }
0x226b   :  { %4598 = vtanh.f32 %v2787_v63 }
0x2276   :  { %v4597_v37 = vpop.eup %4596 }
0x2277   :  { %2797 = vrot.lane.b32.xlu0 %v4597_v37, %s4983_s19 }
0x2278   :  { %v4599_v45 = vpop.eup %4598 }
0x2279   :  { %v2789_v20 = vmul.f32 0.5, %v4599_v45 }
0x227b   :  { %v2790_v9 = vadd.f32 0.5, %v2789_v20 }
0x227d   :  { %v2795_v11 = vmul.f32 %v2793_v32, %v2790_v9 }
0x22e9   :  { %v2798_v21 = vpop.permute.xlu0 %2797 }
0x22ea   :  { %v2800_v25 = vmul.f32 %v2798_v21, %v2790_v9 }
0x22ec   :  { %2802 = vrot.lane.b32.xlu1 %v2800_v25, %s4984_s29 }
0x235e   :  { %v2803_v12 = vpop.permute.xlu1 %2802 }
0x235f   :  { %v2805_v13 = vadd.f32 %v2803_v12, %v2795_v11 }
0x2361   :  { %4600 = vtanh.f32 %v2805_v13  ;;  %v2980_v43 = vrot.slane %v2805_v13, 6 }
0x236e   :  { %v4601_v14 = vpop.eup %4600 }
0x236f   :  { %2808 = vrot.lane.b32.xlu0 %v4601_v14, %s4983_s19 }
0x23e1   :  { %v2809_v16 = vpop.permute.xlu0 %2808 }
0x23e2   :  { %v2811_v41 = vmul.f32 %v2809_v16, %v2790_v9 }
0x23e4   :  { %v2813_v17 = vrot.slane %v2811_v41, 4 }
0x23e6   :  { %2814 = vrot.lane.b32.xlu1 %v2813_v17, %s4984_s29 }
0x2458   :  { %v2815_v39 = vpop.permute.xlu1 %2814 }
0x2459   :  { %4378 = vmatmul.mubr.msk.f32.vlgmr.msra.gmra.mxu1 %vm453_vm9, %v2815_v39  ;;  %4389 = vmatmul.mubr.msk.f32.vlgmr.msra.gmra.mxu0 %vm453_vm9, %v2815_v39 }
0x245a   :  { %4392 = vmatpush3.msra.mxu1 %v5725_v27  ;;  %4403 = vmatpush3.msra.mxu0 %v5683_v59 }
0x245b   :  { %4393 = vmatprep.subr.mxu1 %v4981_v15  ;;  %4404 = vmatprep.subr.mxu0 %v4981_v15 }
0x245c   :  { %4394 = vmatpush3.msra.mxu1 %v5730_v0  ;;  %4405 = vmatpush3.msra.mxu0 %v5686_v60 }
0x245d   :  { %4395 = vmatprep.subr.mxu1 %v4981_v15  ;;  %4406 = vmatprep.subr.mxu0 %v4981_v15 }
0x245e   :  { %4396 = vmatpush3.msra.mxu1 %v5737_v28  ;;  %4407 = vmatpush3.msra.mxu0 %v5692_v4 }
0x245f   :  { %4397 = vmatprep.subr.mxu1 %v4981_v15  ;;  %4408 = vmatprep.subr.mxu0 %v4981_v15 }
0x2460   :  { %4409 = vmatpush3.msra.mxu0 %v5696_v29  ;;  %4410 = vmatprep.mubr.msk.f32.mxu0 %vm6080_vm13, %v4981_v15 }
0x2461   :  { %4398 = vmatpush3.msra.mxu1 %v5744_v62  ;;  %4399 = vmatprep.mubr.msk.f32.mxu1 %vm6080_vm13, %v4981_v15 }
0x2462   :  { %4413 = vmatprep.subr.mxu1 %v4981_v15  ;;  %4424 = vmatprep.subr.mxu0 %v4981_v15 }
0x2519   :  { %v5832_v18 = vpop.f32.mrf.mxu1  ;;  %v2966_v19 = vpop.f32.mrf.mxu0 }
0x251a   :  { %v2971_v26 = vrot.slane %v2966_v19, 2 }
0x251b   :  { %v4379_v33 = vpop.f32.mrf.mxu1  ;;  %v4390_v54 = vpop.f32.mrf.mxu0 }
0x251c   :  { %v2973_v42 = vadd.f32 %v2971_v26, %v5717_v10 }
0x251e   :  { %4602 = vtanh.f32 %v2973_v42  ;;  %v2974_v57 = vmul.f32 0.5, %v2973_v42 }
0x2520   :  { %4604 = vtanh.f32 %v2974_v57 }
0x252b   :  { %v4603_v3 = vpop.eup %4602 }
0x252c   :  { %2984 = vrot.lane.b32.xlu0 %v4603_v3, %s4983_s19 }
0x252d   :  { %v4605_v35 = vpop.eup %4604 }
0x252e   :  { %v2976_v31 = vmul.f32 0.5, %v4605_v35 }
0x2530   :  { %v2977_v34 = vadd.f32 0.5, %v2976_v31 }
0x2532   :  { %v2982_v44 = vmul.f32 %v2980_v43, %v2977_v34 }
0x259e   :  { %v2985_v38 = vpop.permute.xlu0 %2984 }
0x259f   :  { %v2987_v40 = vmul.f32 %v2985_v38, %v2977_v34 }
0x25a1   :  { %2989 = vrot.lane.b32.xlu1 %v2987_v40, %s4984_s29 }
0x2613   :  { %v2990_v47 = vpop.permute.xlu1 %2989 }
0x2614   :  { %v2992_v48 = vadd.f32 %v2990_v47, %v2982_v44 }
0x2616   :  { %4606 = vtanh.f32 %v2992_v48  ;;  %v3164_v37 = vrot.slane %v2992_v48, 6 }
0x2623   :  { %v4607_v61 = vpop.eup %4606 }
0x2624   :  { %2995 = vrot.lane.b32.xlu0 %v4607_v61, %s4983_s19 }
0x2696   :  { %v2996_v10 = vpop.permute.xlu0 %2995 }
0x2697   :  { %v2998_v49 = vmul.f32 %v2996_v10, %v2977_v34 }
0x2699   :  { %v3000_v46 = vrot.slane %v2998_v49, 6 }
0x269b   :  { %3001 = vrot.lane.b32.xlu1 %v3000_v46, %s4984_s29 }
0x270d   :  { %v3002_v50 = vpop.permute.xlu1 %3001 }
0x270e   :  { %4400 = vmatmul.mubr.msk.f32.vlgmr.msra.gmra.mxu1 %vm453_vm9, %v3002_v50  ;;  %4411 = vmatmul.mubr.msk.f32.vlgmr.msra.gmra.mxu0 %vm453_vm9, %v3002_v50 }
0x270f   :  { %4414 = vmatpush3.msra.mxu1 %v5725_v27  ;;  %4425 = vmatpush3.msra.mxu0 %v5683_v59 }
0x2710   :  { %4415 = vmatprep.subr.mxu1 %v4981_v15  ;;  %4426 = vmatprep.subr.mxu0 %v4981_v15 }
0x2711   :  { %4416 = vmatpush3.msra.mxu1 %v5730_v0  ;;  %4427 = vmatpush3.msra.mxu0 %v5686_v60 }
0x2712   :  { %4417 = vmatprep.subr.mxu1 %v4981_v15  ;;  %4428 = vmatprep.subr.mxu0 %v4981_v15 }
0x2713   :  { %4418 = vmatpush3.msra.mxu1 %v5737_v28  ;;  %4429 = vmatpush3.msra.mxu0 %v5692_v4 }
0x2714   :  { %4419 = vmatprep.subr.mxu1 %v4981_v15  ;;  %4430 = vmatprep.subr.mxu0 %v4981_v15 }
0x2715   :  { %4431 = vmatpush3.msra.mxu0 %v5696_v29  ;;  %4432 = vmatprep.mubr.msk.f32.mxu0 %vm6080_vm13, %v4981_v15 }
0x2716   :  { %4420 = vmatpush3.msra.mxu1 %v5744_v62  ;;  %4421 = vmatprep.mubr.msk.f32.mxu1 %vm6080_vm13, %v4981_v15 }
0x2717   :  { %4435 = vmatprep.subr.mxu1 %v4981_v15  ;;  %4446 = vmatprep.subr.mxu0 %v4981_v15 }
0x27ce   :  { %v5861_v51 = vpop.f32.mrf.mxu1  ;;  %v3153_v53 = vpop.f32.mrf.mxu0 }
0x27cf   :  { %v3157_v55 = vadd.f32 %v3153_v53, %v5715_v30 }
0x27d0   :  { %v4401_v56 = vpop.f32.mrf.mxu1  ;;  %v4412_v1 = vpop.f32.mrf.mxu0 }
0x27d1   :  { %4608 = vtanh.f32 %v3157_v55  ;;  %v3158_v24 = vmul.f32 0.5, %v3157_v55 }
0x27d3   :  { %4610 = vtanh.f32 %v3158_v24 }
0x27de   :  { %v4609_v58 = vpop.eup %4608 }
0x27df   :  { %3168 = vrot.lane.b32.xlu0 %v4609_v58, %s4983_s19 }
0x27e0   :  { %v4611_v2 = vpop.eup %4610 }
0x27e1   :  { %v3160_v22 = vmul.f32 0.5, %v4611_v2 }
0x27e3   :  { %v3161_v6 = vadd.f32 0.5, %v3160_v22 }
0x27e5   :  { %v3166_v63 = vmul.f32 %v3164_v37, %v3161_v6 }
0x2851   :  { %v3169_v7 = vpop.permute.xlu0 %3168 }
0x2852   :  { %v3171_v8 = vmul.f32 %v3169_v7, %v3161_v6 }
0x2854   :  { %3173 = vrot.lane.b32.xlu1 %v3171_v8, %s4984_s29 }
0x28c6   :  { %v3174_v45 = vpop.permute.xlu1 %3173 }
0x28c7   :  { %v3176_v20 = vadd.f32 %v3174_v45, %v3166_v63 }
0x28c9   :  { %4612 = vtanh.f32 %v3176_v20  ;;  %v3350_v3 = vrot.slane %v3176_v20, 6 }
0x28d6   :  { %v4613_v9 = vpop.eup %4612 }
0x28d7   :  { %3179 = vrot.lane.b32.xlu0 %v4613_v9, %s4983_s19 }
0x2949   :  { %v3180_v21 = vpop.permute.xlu0 %3179 }
0x294a   :  { %v3182_v25 = vmul.f32 %v3180_v21, %v3161_v6 }
0x294c   :  { %3184 = vrot.lane.b32.xlu1 %v3182_v25, %s4984_s29 }
0x29be   :  { %v3185_v32 = vpop.permute.xlu1 %3184 }
0x29bf   :  { %4422 = vmatmul.mubr.msk.f32.vlgmr.msra.gmra.mxu1 %vm453_vm9, %v3185_v32  ;;  %4433 = vmatmul.mubr.msk.f32.vlgmr.msra.gmra.mxu0 %vm453_vm9, %v3185_v32 }
0x29c0   :  { %4436 = vmatpush3.msra.mxu1 %v5725_v27  ;;  %4447 = vmatpush3.msra.mxu0 %v5683_v59 }
0x29c1   :  { %4437 = vmatprep.subr.mxu1 %v4981_v15  ;;  %4448 = vmatprep.subr.mxu0 %v4981_v15 }
0x29c2   :  { %4438 = vmatpush3.msra.mxu1 %v5730_v0  ;;  %4449 = vmatpush3.msra.mxu0 %v5686_v60 }
0x29c3   :  { %4439 = vmatprep.subr.mxu1 %v4981_v15  ;;  %4450 = vmatprep.subr.mxu0 %v4981_v15 }
0x29c4   :  { %4440 = vmatpush3.msra.mxu1 %v5737_v28  ;;  %4451 = vmatpush3.msra.mxu0 %v5692_v4 }
0x29c5   :  { %4441 = vmatprep.subr.mxu1 %v4981_v15  ;;  %4452 = vmatprep.subr.mxu0 %v4981_v15 }
0x29c6   :  { %4453 = vmatpush3.msra.mxu0 %v5696_v29  ;;  %4454 = vmatprep.mubr.msk.f32.mxu0 %vm6080_vm13, %v4981_v15 }
0x29c7   :  { %4442 = vmatpush3.msra.mxu1 %v5744_v62  ;;  %4443 = vmatprep.mubr.msk.f32.mxu1 %vm6080_vm13, %v4981_v15 }
0x29c8   :  { %4457 = vmatprep.subr.mxu1 %v4981_v15  ;;  %4468 = vmatprep.subr.mxu0 %v4981_v15 }
0x2a7f   :  { %v5890_v11 = vpop.f32.mrf.mxu1  ;;  %v3336_v12 = vpop.f32.mrf.mxu0 }
0x2a80   :  { %v3341_v13 = vrot.slane %v3336_v12, 6 }
0x2a81   :  { %v4423_v14 = vpop.f32.mrf.mxu1  ;;  %v4434_v16 = vpop.f32.mrf.mxu0 }
0x2a82   :  { %v3343_v41 = vadd.f32 %v3341_v13, %v5715_v30 }
0x2a84   :  { %4614 = vtanh.f32 %v3343_v41  ;;  %v3344_v39 = vmul.f32 0.5, %v3343_v41 }
0x2a86   :  { %4616 = vtanh.f32 %v3344_v39 }
0x2a91   :  { %v4615_v17 = vpop.eup %4614 }
0x2a92   :  { %3354 = vrot.lane.b32.xlu0 %v4615_v17, %s4983_s19  ;;  %v3917_v17 = vld [vmem:[#allocation8] ss:$0 sm:$0xff] }
0x2a93   :  { %v4617_v19 = vpop.eup %4616 }
0x2a94   :  { %v3346_v26 = vmul.f32 0.5, %v4617_v19  ;;  %v5947_v19 = vld [vmem:[%s6048_s21] ss:$0 sm:$0xff]  ;;  %s4986_s21 = smov [#allocation23]  }
0x2a95   :  { %s3875_s16 = sshll.u32 %s4986_s21, 4  ;;  %s3876_s16 = int_to_ptr.vmem [resolvable:$true] %s3875_s16 }
0x2a96   :  { %v3347_v33 = vadd.f32 0.5, %v3346_v26  ;;  %v2511_v26 = vadd.f32 %v5947_v19, %v5774_v36  ;;  %s4908_s27 = scalar_lea.vmem %s3876_s16, 32  ;;  %p4913_p5 = scmp.lt.s32.totalorder %s3876_s16, %s3876_s16 }
0x2a97   :  { %p4909_p4 = scmp.ne.s32.totalorder %s3876_s16, %s4908_s27  ;;  %p4914_p6 = scmp.lt.s32.totalorder %s4908_s27, %s4908_s27 }
0x2a98   :  { %v3352_v57 = vmul.f32 %v3350_v3, %v3347_v33 }
0x2a99   :  { %p4915_p7 = por %p4914_p6, %p4913_p5 }
0x2a9b   :  { %p4916_p8 = pnand %p4915_p7, %p4909_p4 }
0x2b04   :  { %v3355_v54 = vpop.permute.xlu0 %3354 }
0x2b05   :  { %v3357_v42 = vmul.f32 %v3355_v54, %v3347_v33  ;;  %v2514_v54 = vsel %vm6084_vm3, %v2511_v26, -inf  ;;  %vm6099_vm3 = vmmov %vm6090_vm1 }
0x2b07   :  { %3359 = vrot.lane.b32.xlu1 %v3357_v42, %s4984_s29 }
0x2b79   :  { %v3360_v35 = vpop.permute.xlu1 %3359 }
0x2b7a   :  { %v3362_v31 = vadd.f32 %v3360_v35, %v3352_v57 }
0x2b7c   :  { %4618 = vtanh.f32 %v3362_v31  ;;  %v3537_v56 = vrot.slane %v3362_v31, 6 }
0x2b89   :  { %v4619_v34 = vpop.eup %4618 }
0x2b8a   :  { %3365 = vrot.lane.b32.xlu0 %v4619_v34, %s4983_s19 }
0x2bfc   :  { %v3366_v38 = vpop.permute.xlu0 %3365 }
0x2bfd   :  { %v3368_v40 = vmul.f32 %v3366_v38, %v3347_v33 }
0x2bff   :  { %v3370_v43 = vrot.slane %v3368_v40, 2  ;;  %v2698_v40 = vadd.f32 %v5947_v19, %v5803_v5  ;;  %v3255_v5 = vadd.f32 %v5947_v19, %v5890_v11 }
0x2c01   :  { %3371 = vrot.lane.b32.xlu1 %v3370_v43, %s4984_s29 }
0x2c73   :  { %v3372_v44 = vpop.permute.xlu1 %3371 }
0x2c74   :  { %4444 = vmatmul.mubr.msk.f32.vlgmr.msra.gmra.mxu1 %vm453_vm9, %v3372_v44  ;;  %4455 = vmatmul.mubr.msk.f32.vlgmr.msra.gmra.mxu0 %vm453_vm9, %v3372_v44 }
0x2c75   :  { %4458 = vmatpush3.msra.mxu1 %v5725_v27  ;;  %4469 = vmatpush3.msra.mxu0 %v5683_v59 }
0x2c76   :  { %4459 = vmatprep.subr.mxu1 %v4981_v15  ;;  %4470 = vmatprep.subr.mxu0 %v4981_v15 }
0x2c77   :  { %4460 = vmatpush3.msra.mxu1 %v5730_v0  ;;  %4471 = vmatpush3.msra.mxu0 %v5686_v60 }
0x2c78   :  { %4461 = vmatprep.subr.mxu1 %v4981_v15  ;;  %4472 = vmatprep.subr.mxu0 %v4981_v15 }
0x2c79   :  { %4462 = vmatpush3.msra.mxu1 %v5737_v28  ;;  %4473 = vmatpush3.msra.mxu0 %v5692_v4 }
0x2c7a   :  { %4463 = vmatprep.subr.mxu1 %v4981_v15  ;;  %4474 = vmatprep.subr.mxu0 %v4981_v15 }
0x2c7b   :  { %4475 = vmatpush3.msra.mxu0 %v5696_v29  ;;  %4476 = vmatprep.mubr.msk.f32.mxu0 %vm6080_vm13, %v4981_v15 }
0x2c7c   :  { %4464 = vmatpush3.msra.mxu1 %v5744_v62  ;;  %4465 = vmatprep.mubr.msk.f32.mxu1 %vm6080_vm13, %v4981_v15 }
0x2c7d   :  { %4479 = vmatprep.subr.mxu1 %v4981_v15 }
0x2d34   :  { %v5918_v59 = vpop.f32.mrf.mxu1  ;;  %v3523_v60 = vpop.f32.mrf.mxu0 }
0x2d35   :  { %v3528_v4 = vrot.slane %v3523_v60, 4  ;;  %v2885_v60 = vadd.f32 %v5947_v19, %v5832_v18  ;;  %v3442_v18 = vadd.f32 %v5947_v19, %v5918_v59 }
0x2d36   :  { %v4445_v47 = vpop.f32.mrf.mxu1  ;;  %v4456_v48 = vpop.f32.mrf.mxu0 }
0x2d37   :  { %v3530_v61 = vadd.f32 %v3528_v4, %v5715_v30  ;;  %v2701_v47 = vsel %vm6087_vm6, %v2698_v40, -inf  ;;  %v3072_v48 = vadd.f32 %v5947_v19, %v5861_v51  ;;  %v3445_v51 = vsel %vm6091_vm8, %v3442_v18, -inf  ;;  %vm6102_vm6 = vmmov %vm6090_vm1 }
0x2d39   :  { %4620 = vtanh.f32 %v3530_v61  ;;  %v3531_v10 = vmul.f32 0.5, %v3530_v61  ;;  %v2888_v61 = vsel %vm6088_vm7, %v2885_v60, -inf }
0x2d3b   :  { %4622 = vtanh.f32 %v3531_v10  ;;  %v3258_v10 = vsel %vm6090_vm1, %v3255_v5, -inf }
0x2d46   :  { %v4621_v29 = vpop.eup %4620 }
0x2d47   :  { %3541 = vrot.lane.b32.xlu0 %v4621_v29, %s4983_s19  ;;  %v3075_v29 = vsel %vm6089_vm11, %v3072_v48, -inf }
0x2d48   :  { %v4623_v49 = vpop.eup %4622 }
0x2d49   :  { %v3533_v46 = vmul.f32 0.5, %v4623_v49 }
0x2d4b   :  { %v3534_v50 = vadd.f32 0.5, %v3533_v46 }
0x2d4d   :  { %v3539_v1 = vmul.f32 %v3537_v56, %v3534_v50 }
0x2db9   :  { %v3542_v53 = vpop.permute.xlu0 %3541 }
0x2dba   :  { %v3544_v55 = vmul.f32 %v3542_v53, %v3534_v50 }
0x2dbc   :  { %3546 = vrot.lane.b32.xlu1 %v3544_v55, %s4984_s29 }
0x2e2e   :  { %v3547_v58 = vpop.permute.xlu1 %3546 }
0x2e2f   :  { %v3549_v24 = vadd.f32 %v3547_v58, %v3539_v1 }
0x2e31   :  { %4624 = vtanh.f32 %v3549_v24 }
0x2e3e   :  { %v4625_v2 = vpop.eup %4624 }
0x2e3f   :  { %3552 = vrot.lane.b32.xlu0 %v4625_v2, %s4983_s19 }
0x2eb1   :  { %v3553_v22 = vpop.permute.xlu0 %3552 }
0x2eb2   :  { %v3555_v6 = vmul.f32 %v3553_v22, %v3534_v50 }
0x2eb4   :  { %v3557_v7 = vrot.slane %v3555_v6, 4 }
0x2eb6   :  { %3558 = vrot.lane.b32.xlu1 %v3557_v7, %s4984_s29 }
0x2f28   :  { %v3559_v8 = vpop.permute.xlu1 %3558 }
0x2f29   :  { %4466 = vmatmul.mubr.msk.f32.vlgmr.msra.gmra.mxu1 %vm453_vm9, %v3559_v8  ;;  %4477 = vmatmul.mubr.msk.f32.vlgmr.msra.gmra.mxu0 %vm453_vm9, %v3559_v8 }
0x2f2a   :  { %4480 = vmatpush3.msra.mxu1 %v5725_v27  ;;  %4487 = vmatprep.mubr.msk.f32.mxu1 %vm6080_vm13, %v4981_v15  ;;  %vm6095_vm13 = vmmov %vm6090_vm1 }
0x2f2b   :  { %4481 = vmatprep.subr.mxu1 %v4981_v15 }
0x2f2c   :  { %4482 = vmatpush3.msra.mxu1 %v5730_v0 }
0x2f2d   :  { %4483 = vmatprep.subr.mxu1 %v4981_v15 }
0x2f2e   :  { %4484 = vmatpush3.msra.mxu1 %v5737_v28 }
0x2f2f   :  { %4485 = vmatprep.subr.mxu1 %v4981_v15 }
0x2f30   :  { %4486 = vmatpush3.msra.mxu1 %v5744_v62  ;;  %v3724_v62 = vrot.slane %v3549_v24, 6 }
0x2fe9   :  { %v5936_v37 = vpop.f32.mrf.mxu1  ;;  %v3710_v63 = vpop.f32.mrf.mxu0 }
0x2fea   :  { %v3715_v45 = vrot.slane %v3710_v63, 2  ;;  %v3629_v49 = vadd.f32 %v5947_v19, %v5936_v37 }
0x2feb   :  { %v4467_v27 = vpop.f32.mrf.mxu1  ;;  %v4478_v20 = vpop.f32.mrf.mxu0 }
0x2fec   :  { %v3717_v9 = vadd.f32 %v3715_v45, %v5715_v30  ;;  %v1914_v30 = vadd.f32 %v5547_v52, %v5702_v23  ;;  %v3632_v46 = vsel %vm6092_vm10, %v3629_v49, -inf }
0x2fee   :  { %4626 = vtanh.f32 %v3717_v9  ;;  %v3718_v0 = vmul.f32 0.5, %v3717_v9  ;;  %v1924_v39 = vadd.f32 %v3917_v17, %v1914_v30 }
0x2ff0   :  { %4628 = vtanh.f32 %v3718_v0  ;;  %v1925_v33 = vsel %vm6083_vm2, %v1924_v39, -inf  ;;  %vm6098_vm2 = vmmov %vm6090_vm1 }
0x2ffb   :  { %v4627_v21 = vpop.eup %4626 }
0x2ffc   :  { %3728 = vrot.lane.b32.xlu0 %v4627_v21, %s4983_s19 }
0x2ffd   :  { %v4629_v25 = vpop.eup %4628 }
0x2ffe   :  { %v3720_v28 = vmul.f32 0.5, %v4629_v25 }
0x3000   :  { %v3721_v32 = vadd.f32 0.5, %v3720_v28 }
0x3002   :  { %v3726_v13 = vmul.f32 %v3724_v62, %v3721_v32 }
0x306e   :  { %v3729_v15 = vpop.permute.xlu0 %3728 }
0x306f   :  { %v3731_v12 = vmul.f32 %v3729_v15, %v3721_v32 }
0x3071   :  { %3733 = vrot.lane.b32.xlu1 %v3731_v12, %s4984_s29 }
0x30e3   :  { %v3734_v14 = vpop.permute.xlu1 %3733 }
0x30e4   :  { %v3736_v16 = vadd.f32 %v3734_v14, %v3726_v13 }
0x30e6   :  { %4630 = vtanh.f32 %v3736_v16 }
0x30f3   :  { %v4631_v41 = vpop.eup %4630 }
0x30f4   :  { %3739 = vrot.lane.b32.xlu0 %v4631_v41, %s4983_s19 }
0x3113   :  { %1926 = vmax.xlane.f32.xlu0 %v1925_v33 }
0x3117   :  { %2515 = vmax.xlane.f32.xlu0 %v2514_v54 }
0x3166   :  { %v3740_v42 = vpop.permute.xlu0 %3739 }
0x3167   :  { %v3742_v3 = vmul.f32 %v3740_v42, %v3721_v32 }
0x3169   :  { %v3744_v57 = vrot.slane %v3742_v3, 6 }
0x316b   :  { %3745 = vrot.lane.b32.xlu1 %v3744_v57, %s4984_s29 }
0x319c   :  { %v1927_v52 = vpop.xlane.xlu0 %1926 }
0x319d   :  { %v1928_v23 = vsub.f32 %v1924_v39, %v1927_v52 }
0x319f   :  { %v1929_v35 = vmul.f32 1.442695, %v1928_v23 }
0x31a0   :  { %v2516_v31 = vpop.xlane.xlu0 %2515 }
0x31a1   :  { %4632 = vpow2.f32 %v1929_v35  ;;  %v5954_v34 = vsub.f32 %v2511_v26, %v2516_v31 }
0x31a3   :  { %v2518_v36 = vmul.f32 1.442695, %v5954_v34 }
0x31a5   :  { %4634 = vpow2.f32 %v2518_v36 }
0x31ae   :  { %v4633_v38 = vpop.eup %4632 }
0x31af   :  { %v1931_v43 = vsel %vm6085_vm4, %v4633_v38, 0.0  ;;  %vm6100_vm4 = vmmov %vm6090_vm1 }
0x31b0   :  { %1932 = vadd.xlane.f32.xlu1 %v1931_v43 }
0x31b2   :  { %v4635_v44 = vpop.eup %4634 }
0x31b3   :  { %v2520_v4 = vsel %vm6086_vm5, %v4635_v44, 0.0  ;;  %vm6101_vm5 = vcmask 1043456  }
0x31b4   :  { %2521 = vadd.xlane.f32.xlu0 %v2520_v4  ;;  %2702 = vmax.xlane.f32.xlu1 %v2701_v47 }
0x31b8   :  { %2889 = vmax.xlane.f32.xlu1 %v2888_v61 }
0x31bc   :  { %3076 = vmax.xlane.f32.xlu1 %v3075_v29 }
0x31c0   :  { %3259 = vmax.xlane.f32.xlu1 %v3258_v10 }
0x31c4   :  { %3446 = vmax.xlane.f32.xlu1 %v3445_v51 }
0x31c8   :  { %3633 = vmax.xlane.f32.xlu1 %v3632_v46 }
0x31dd   :  { %v3746_v50 = vpop.permute.xlu1 %3745 }
0x31de   :  { %4488 = vmatmul.mubr.msk.f32.vlgmr.msra.gmra.mxu1 %vm453_vm9, %v3746_v50  ;;  %vm6093_vm9 = vmmov %vm6090_vm1 }
0x3239   :  { %v1933_v11 = vpop.xlane.xlu1 %1932 }
0x323a   :  { %4636 = vlog2.f32 %v1933_v11 }
0x323d   :  { %v2703_v53 = vpop.xlane.xlu1 %2702  ;;  %v2522_v3 = vpop.xlane.xlu0 %2521 }
0x323e   :  { %v5978_v55 = vsub.f32 %v2698_v40, %v2703_v53 }
0x3240   :  { %v2705_v59 = vmul.f32 1.442695, %v5978_v55 }
0x3241   :  { %v2890_v56 = vpop.xlane.xlu1 %2889 }
0x3242   :  { %4638 = vpow2.f32 %v2705_v59  ;;  %v5981_v1 = vsub.f32 %v2885_v60, %v2890_v56 }
0x3244   :  { %v2892_v58 = vmul.f32 1.442695, %v5981_v1 }
0x3245   :  { %v3077_v24 = vpop.xlane.xlu1 %3076 }
0x3246   :  { %4640 = vpow2.f32 %v2892_v58  ;;  %v5984_v2 = vsub.f32 %v3072_v48, %v3077_v24 }
0x3247   :  { %v4637_v22 = vpop.eup %4636 }
0x3248   :  { %v1935_v6 = vmul.f32 0.6931472, %v4637_v22  ;;  %v3079_v7 = vmul.f32 1.442695, %v5984_v2 }
0x3249   :  { %v3260_v8 = vpop.xlane.xlu1 %3259 }
0x324a   :  { %4642 = vpow2.f32 %v3079_v7  ;;  %v5987_v37 = vsub.f32 %v3255_v5, %v3260_v8  ;;  %v1936_v63 = vsub.f32 %v1928_v23, %v1935_v6 }
0x324c   :  { %v3262_v45 = vmul.f32 1.442695, %v5987_v37  ;;  %1937 = vst [vmem:[#allocation23] sm:$0x3] %v1936_v63 }
0x324d   :  { %v3447_v27 = vpop.xlane.xlu1 %3446 }
0x324e   :  { %4644 = vpow2.f32 %v3262_v45  ;;  %v5990_v20 = vsub.f32 %v3442_v18, %v3447_v27 }
0x324f   :  { %v4639_v9 = vpop.eup %4638 }
0x3250   :  { %v3449_v21 = vmul.f32 1.442695, %v5990_v20  ;;  %v2707_v0 = vsel %vm6093_vm9, %v4639_v9, 0.0 }
0x3251   :  { %2708 = vadd.xlane.f32.xlu0 %v2707_v0  ;;  %v3634_v25 = vpop.xlane.xlu1 %3633 }
0x3252   :  { %4646 = vpow2.f32 %v3449_v21  ;;  %v5994_v28 = vsub.f32 %v3629_v49, %v3634_v25 }
0x3253   :  { %v4641_v32 = vpop.eup %4640 }
0x3254   :  { %v3636_v15 = vmul.f32 1.442695, %v5994_v28  ;;  %v2894_v12 = vsel %vm6094_vm12, %v4641_v32, 0.0 }
0x3255   :  { %2895 = vadd.xlane.f32.xlu0 %v2894_v12 }
0x3256   :  { %4648 = vpow2.f32 %v3636_v15 }
0x3257   :  { %v4643_v62 = vpop.eup %4642 }
0x3258   :  { %v3081_v13 = vsel %vm6095_vm13, %v4643_v62, 0.0 }
0x3259   :  { %3082 = vadd.xlane.f32.xlu0 %v3081_v13 }
0x325b   :  { %v4645_v14 = vpop.eup %4644 }
0x325c   :  { %v3264_v16 = vsel %vm6096_vm14, %v4645_v14, 0.0 }
0x325d   :  { %3265 = vadd.xlane.f32.xlu0 %v3264_v16 }
0x325f   :  { %v4647_v41 = vpop.eup %4646 }
0x3260   :  { %v3451_v30 = vsel %vm6097_vm15, %v4647_v41, 0.0 }
0x3261   :  { %3452 = vadd.xlane.f32.xlu0 %v3451_v30 }
0x3263   :  { %v4649_v17 = vpop.eup %4648 }
0x3264   :  { %v3638_v39 = vsel %vm6098_vm2, %v4649_v17, 0.0 }
0x3265   :  { %3639 = vadd.xlane.f32.xlu0 %v3638_v39 }
0x329e   :  { %v3815_v26 = vpop.f32.mrf.mxu1 }
0x329f   :  { %v3816_v33 = vadd.f32 %v5947_v19, %v3815_v26 }
0x32a0   :  { %v4489_v54 = vpop.f32.mrf.mxu1 }
0x32a1   :  { %v3819_v42 = vsel %vm6099_vm3, %v3816_v33, -inf }
0x32a2   :  { %3820 = vmax.xlane.f32.xlu1 %v3819_v42 }
0x32da   :  { %v2709_v57 = vpop.xlane.xlu0 %2708 }
0x32db   :  { %4650 = vlog2.f32 %v2709_v57 }
0x32dc   :  { %4652 = vlog2.f32 %v2522_v3 }
0x32de   :  { %v2896_v52 = vpop.xlane.xlu0 %2895 }
0x32df   :  { %4654 = vlog2.f32 %v2896_v52 }
0x32e2   :  { %v3083_v23 = vpop.xlane.xlu0 %3082 }
0x32e3   :  { %4656 = vlog2.f32 %v3083_v23 }
0x32e8   :  { %v4651_v35 = vpop.eup %4650 }
0x32e9   :  { %v2711_v31 = vmul.f32 0.6931472, %v4651_v35  ;;  %v4653_v36 = vpop.eup %4652 }
0x32ea   :  { %v2524_v19 = vmul.f32 0.6931472, %v4653_v36 }
0x32eb   :  { %v2712_v40 = vsub.f32 %v5978_v55, %v2711_v31 }
0x32ec   :  { %v4655_v38 = vpop.eup %4654  ;;  %v2525_v61 = vsub.f32 %v5954_v34, %v2524_v19 }
0x32ed   :  { %v2898_v43 = vmul.f32 0.6931472, %v4655_v38  ;;  %v3832_v4 = vrot.slane %v2712_v40, 6 }
0x32ef   :  { %v2899_v44 = vsub.f32 %v5981_v1, %v2898_v43  ;;  %v3849_v18 = vsel %vm6100_vm4, %v2525_v61, %v3832_v4 }
0x32f0   :  { %v4657_v60 = vpop.eup %4656 }
0x32f1   :  { %v3085_v47 = vmul.f32 0.6931472, %v4657_v60  ;;  %v3835_v48 = vrot.slane %v2899_v44, 4 }
0x32f3   :  { %v3086_v5 = vsub.f32 %v5984_v2, %v3085_v47  ;;  %v3850_v10 = vsel %vm6101_vm5, %v3849_v18, %v3835_v48 }
0x32f5   :  { %v3838_v29 = vrot.slane %v3086_v5, 2 }
0x32f7   :  { %v3851_v49 = vsel %vm2137_vm0, %v3850_v10, %v3838_v29 }
0x32f8   :  { %3855 = vst [vmem:[#allocation22] sm:$0xff] %v3851_v49 }
0x332b   :  { %v3821_v51 = vpop.xlane.xlu1 %3820 }
0x332c   :  { %v3822_v46 = vsub.f32 %v3816_v33, %v3821_v51 }
0x332e   :  { %v3823_v50 = vmul.f32 1.442695, %v3822_v46 }
0x3330   :  { %4658 = vpow2.f32 %v3823_v50 }
0x333d   :  { %v4659_v11 = vpop.eup %4658 }
0x333e   :  { %v3825_v53 = vsel %vm6102_vm6, %v4659_v11, 0.0 }
0x333f   :  { %3826 = vadd.xlane.f32.xlu0 %v3825_v53 }
0x3340   :  { %4919 = shalt.err (!%p4916_p8)
}
0x3341   :  { %3878 = dma.vmem_to_hbm [thread:$0]  %s3876_s16, 32, %s6050_s23, [#allocation24]   ;;  %v3266_v34 = vpop.xlane.xlu0 %3265  ;;  %vm6103_vm7 = vmmov %vm6090_vm1 }
0x3342   :  { %s4987_s23 = smov [#allocation22]   ;;  %vm6104_vm11 = vmmov %vm6101_vm5 }
0x3343   :  { %s3862_s18 = sshll.u32 %s4987_s23, 4  ;;  %s3863_s18 = int_to_ptr.vmem [resolvable:$true] %s3862_s18 }
0x3344   :  { %s4928_s19 = scalar_lea.vmem %s3863_s18, 256  ;;  %p4933_p10 = scmp.lt.s32.totalorder %s3863_s18, %s3863_s18 }
0x3345   :  { %v3453_v55 = vpop.xlane.xlu0 %3452  ;;  %p4929_p9 = scmp.ne.s32.totalorder %s3863_s18, %s4928_s19  ;;  %p4934_p11 = scmp.lt.s32.totalorder %s4928_s19, %s4928_s19 }
0x3346   :  { %4660 = vlog2.f32 %v3453_v55 }
0x3347   :  { %p4935_p12 = por %p4934_p11, %p4933_p10 }
0x3349   :  { %v3640_v59 = vpop.xlane.xlu0 %3639  ;;  %p4936_p13 = pnand %p4935_p12, %p4929_p9 }
0x334a   :  { %4662 = vlog2.f32 %v3640_v59 }
0x334b   :  { %4664 = vlog2.f32 %v3266_v34 }
0x3353   :  { %v4661_v1 = vpop.eup %4660 }
0x3354   :  { %v3455_v24 = vmul.f32 0.6931472, %v4661_v1 }
0x3356   :  { %v3456_v6 = vsub.f32 %v5990_v20, %v3455_v24 }
0x3357   :  { %v4663_v58 = vpop.eup %4662 }
0x3358   :  { %v3642_v2 = vmul.f32 0.6931472, %v4663_v58  ;;  %v4665_v22 = vpop.eup %4664  ;;  %v3841_v45 = vrot.slane %v3456_v6, 6 }
0x3359   :  { %v3268_v8 = vmul.f32 0.6931472, %v4665_v22 }
0x335a   :  { %v3643_v7 = vsub.f32 %v5994_v28, %v3642_v2 }
0x335b   :  { %v3269_v21 = vsub.f32 %v5987_v37, %v3268_v8 }
0x335c   :  { %v3844_v9 = vrot.slane %v3643_v7, 4 }
0x335d   :  { %v3852_v32 = vsel %vm6103_vm7, %v3269_v21, %v3841_v45 }
0x335e   :  { %v3853_v15 = vsel %vm6104_vm11, %v3852_v32, %v3844_v9 }
0x33c8   :  { %v3827_v56 = vpop.xlane.xlu0 %3826 }
0x33c9   :  { %4666 = vlog2.f32 %v3827_v56 }
0x33d6   :  { %v4667_v63 = vpop.eup %4666 }
0x33d7   :  { %v3829_v27 = vmul.f32 0.6931472, %v4667_v63 }
0x33d9   :  { %v3830_v0 = vsub.f32 %v3822_v46, %v3829_v27 }
0x33db   :  { %v3847_v25 = vrot.slane %v3830_v0, 2 }
0x33dd   :  { %v3854_v20 = vsel %vm2137_vm0, %v3853_v15, %v3847_v25 }
0x33de   :  { %3856 = vst [vmem:[#allocation22 + $0x8] sm:$0xff] %v3854_v20 }
0x33df   :  { %4939 = shalt.err (!%p4936_p13)
}
0x33e0   :  { %3868 = dma.vmem_to_hbm [thread:$0]  %s3863_s18, 256, %s6049_s22, [#allocation4], %s4968_s1, %s4968_s1, %s4969_s26  }
0x33e1   :  { %4962 = dma.done.wait [#allocation4], 256  }
0x33e2   :  { %4963 = vsyncadd [#allocation4], 4294967040 }
0x33e3   :  { %4964 = dma.done.wait [#allocation24], 32  }
0x33e4   :  { %4965 = vsyncadd [#allocation24], 4294967264 }
0x33e5   :  { %3885 = vsyncpa [#allocation3], 1 }
0x33e6   :  { %3886 = vsyncpa [#allocation6], 1 }
0x33e7   :  { %3887 = vsyncpa [#allocation9], 1 }
0x33e8   :  { %3888 = vsyncpa [#allocation12], 1 }
0x33e9   :  { %3889 = vsyncpa [#allocation15], 1 }
0x33ea   :  { %3890 = vsyncpa [#allocation18], 1 }
0x33eb   :  { %3891 = vsyncpa [#allocation21], 1 }
0x33ec   :  { %3892 = vsyncpa [#allocation4], 1 }
0x33ed   :  { %3893 = vsyncpa [#allocation24], 1 }

</bundles_post_ra>
